<compile_context>
chip_gen: v6e
topology: v6e:2x2x1
jax: 0.10.0
libtpu: 0.0.40
codegen_flags: <defaults>
</compile_context>

<pallas_src>
import functools
import math

import jax
import jax.numpy as jnp
from jax.experimental import pallas as pl

EPS = 1e-5


# ----------------------------- in-kernel helpers -----------------------------

def _ln(x, g, b):
    # x: (N, D) f32, g/b: (1, D) f32
    m = jnp.mean(x, axis=-1, keepdims=True)
    v = jnp.mean((x - m) ** 2, axis=-1, keepdims=True)
    return (x - m) * jax.lax.rsqrt(v + EPS) * g + b


def _softmax(x):
    m = jnp.max(x, axis=-1, keepdims=True)
    e = jnp.exp(x - m)
    return e * pl.reciprocal(jnp.sum(e, axis=-1, keepdims=True), approx=True)


def _mha(q, k, v, relb, wo, bo, *, B, Lq, Lk, num_heads):
    """Multi-head attention on batch-folded rows.

    q: (B*Lq, Da) f32, k/v: (B*Lk, Da) f32, relb: (H, Lq, Lk) f32,
    wo: (Da, Dm) bf16, bo: (1, Dm) f32.  Returns (B*Lq, Dm) f32.
    Per-head context is accumulated straight into the output projection
    (no lane-dim concat).
    """
    d_att = q.shape[-1]
    dh = d_att // num_heads
    scale = 1.0 / math.sqrt(dh)
    q16 = (q * scale).astype(jnp.bfloat16)   # fold scale into q once (f32 mul)
    k16 = k.astype(jnp.bfloat16)
    v16 = v.astype(jnp.bfloat16)

    outs = []
    for b in range(B):                         # tiny static batch loop (B=2)
        qb = q16[b * Lq:(b + 1) * Lq]
        kb = k16[b * Lk:(b + 1) * Lk]
        vb = v16[b * Lk:(b + 1) * Lk]
        acc = jnp.zeros((Lq, wo.shape[-1]), jnp.float32)
        for h in range(num_heads):             # tiny static head loop (H=4)
            sl = slice(h * dh, (h + 1) * dh)
            # q @ k^T via dot_general (contract last dims; no transpose op)
            logits = jax.lax.dot_general(
                qb[:, sl], kb[:, sl], (((1,), (1,)), ((), ())),
                preferred_element_type=jnp.float32) + relb[h]
            p = _softmax(logits)
            ctx = jnp.dot(p.astype(jnp.bfloat16), vb[:, sl],
                          preferred_element_type=jnp.float32)
            acc = acc + jnp.dot(ctx.astype(jnp.bfloat16), wo[sl, :],
                                preferred_element_type=jnp.float32)
        outs.append(acc)
    return jnp.concatenate(outs, axis=0) + bo   # sublane concat only


# ----------------------------- fused Pallas kernel ----------------------------

def encoder_layer_kernel(
        lat_ref, inp_ref,
        ln1l_g, ln1l_b, ln1i_g, ln1i_b, ln2_g, ln2_b, ln3_g, ln3_b,
        c_wq, c_bq, c_wkv, c_bkv, c_wo, c_bo, c_relb,
        s_wqkv, s_bqkv, s_wo, s_bo, s_relb,
        m1_w1, m1_b1, m1_w2, m1_b2,
        m2_w1, m2_b1, m2_w2, m2_b2,
        out_ref, *, num_heads, B, L, S, d_att):
    x = lat_ref[...]                           # (B*L, Dl) f32
    inp = inp_ref[...]                         # (B*S, Di) f32

    # ---- x = CrossAttn(LN1_lat(x), LN1_in(inp)) + x ----
    latn = _ln(x, ln1l_g[...], ln1l_b[...]).astype(jnp.bfloat16)
    inpn = _ln(inp, ln1i_g[...], ln1i_b[...]).astype(jnp.bfloat16)
    q = jnp.dot(latn, c_wq[...], preferred_element_type=jnp.float32) + c_bq[...]
    kv = jnp.dot(inpn, c_wkv[...], preferred_element_type=jnp.float32) + c_bkv[...]
    k = kv[:, :d_att]
    v = kv[:, d_att:]
    x = x + _mha(q, k, v, c_relb[...], c_wo[...], c_bo[...],
                 B=B, Lq=L, Lk=S, num_heads=num_heads)

    # ---- x = x + MLP1(LN2(x)) ----
    h = _ln(x, ln2_g[...], ln2_b[...]).astype(jnp.bfloat16)
    h = jnp.dot(h, m1_w1[...], preferred_element_type=jnp.float32) + m1_b1[...]
    h = jnp.maximum(h, 0.0).astype(jnp.bfloat16)
    x = x + jnp.dot(h, m1_w2[...], preferred_element_type=jnp.float32) + m1_b2[...]

    # ---- x = SelfAttn(LN3(x)) + x  (fused Q|K|V projection) ----
    xn = _ln(x, ln3_g[...], ln3_b[...]).astype(jnp.bfloat16)
    qkv = jnp.dot(xn, s_wqkv[...], preferred_element_type=jnp.float32) + s_bqkv[...]
    q = qkv[:, :d_att]
    k = qkv[:, d_att:2 * d_att]
    v = qkv[:, 2 * d_att:]
    x = x + _mha(q, k, v, s_relb[...], s_wo[...], s_bo[...],
                 B=B, Lq=L, Lk=L, num_heads=num_heads)

    # ---- x = x + MLP2(LN2(x))   (reference forward reuses LayerNorm2) ----
    h = _ln(x, ln2_g[...], ln2_b[...]).astype(jnp.bfloat16)
    h = jnp.dot(h, m2_w1[...], preferred_element_type=jnp.float32) + m2_b1[...]
    h = jnp.maximum(h, 0.0).astype(jnp.bfloat16)
    x = x + jnp.dot(h, m2_w2[...], preferred_element_type=jnp.float32) + m2_b2[...]

    out_ref[...] = x


# ----------------------------- wrapper -----------------------------------------

def encoder_layer(x_input, x_latent, p, *, num_heads, d_att):
    B, L, Dl = x_latent.shape
    _, S, Di = x_input.shape
    args = (
        x_latent.reshape(B * L, Dl),           # 0: aliased with the output
        x_input.reshape(B * S, Di),
        p["ln1_lat_g"], p["ln1_lat_b"], p["ln1_in_g"], p["ln1_in_b"],
        p["ln2_g"], p["ln2_b"], p["ln3_g"], p["ln3_b"],
        p["c_wq"], p["c_bq"], p["c_wkv"], p["c_bkv"], p["c_wo"], p["c_bo"],
        p["cross_rel_bias"],
        p["s_wqkv"], p["s_bqkv"], p["s_wo"], p["s_bo"], p["self_rel_bias"],
        p["m1_w1"], p["m1_b1"], p["m1_w2"], p["m1_b2"],
        p["m2_w1"], p["m2_b1"], p["m2_w2"], p["m2_b2"],
    )
    out = pl.pallas_call(
        functools.partial(encoder_layer_kernel, num_heads=num_heads,
                          B=B, L=L, S=S, d_att=d_att),
        out_shape=jax.ShapeDtypeStruct((B * L, Dl), x_latent.dtype),
        input_output_aliases={0: 0},            # residual slab reuses the buffer
    )(*args)
    return out.reshape(B, L, Dl)


# ----------------------------- parameter setup (glue) --------------------------

def rel_bias_from_table(table, q_len, k_len, clip):
    # table: (H, 2*clip + 1)  ->  (H, q_len, k_len)
    i = jnp.arange(q_len)[:, None]
    j = jnp.arange(k_len)[None, :]
    rel = jnp.clip(i - j, -clip, clip) + clip
    return table[:, rel]


def init_params(key, *, d_latent, d_input, d_att, num_heads,
                latent_len, input_len, width, max_len):
    ks = iter(jax.random.split(key, 32))
    w = lambda shape: jax.random.normal(next(ks), shape, jnp.float32) * 0.02
    bf = jnp.bfloat16
    ones = lambda d: jnp.ones((1, d), jnp.float32)
    zeros = lambda d: jnp.zeros((1, d), jnp.float32)

    # cross attention (Q from latent, K/V from input) -> fused [K|V]
    c_wq = w((d_latent, d_att))
    c_wk = w((d_input, d_att))
    c_wv = w((d_input, d_att))
    c_wo = w((d_att, d_latent))
    # self attention (Q/K/V all from latent) -> fused [Q|K|V]
    s_wq = w((d_latent, d_att))
    s_wk = w((d_latent, d_att))
    s_wv = w((d_latent, d_att))
    s_wo = w((d_att, d_latent))

    p = dict(
        ln1_lat_g=ones(d_latent), ln1_lat_b=zeros(d_latent),
        ln1_in_g=ones(d_input), ln1_in_b=zeros(d_input),
        ln2_g=ones(d_latent), ln2_b=zeros(d_latent),
        ln3_g=ones(d_latent), ln3_b=zeros(d_latent),
        c_wq=c_wq.astype(bf), c_bq=zeros(d_att),
        c_wkv=jnp.concatenate([c_wk, c_wv], axis=1).astype(bf),
        c_bkv=zeros(2 * d_att),
        c_wo=c_wo.astype(bf), c_bo=zeros(d_latent),
        s_wqkv=jnp.concatenate([s_wq, s_wk, s_wv], axis=1).astype(bf),
        s_bqkv=zeros(3 * d_att),
        s_wo=s_wo.astype(bf), s_bo=zeros(d_latent),
        m1_w1=w((d_latent, width)).astype(bf), m1_b1=zeros(width),
        m1_w2=w((width, d_latent)).astype(bf), m1_b2=zeros(d_latent),
        m2_w1=w((d_latent, width)).astype(bf), m2_b1=zeros(width),
        m2_w2=w((width, d_latent)).astype(bf), m2_b2=zeros(d_latent),
    )
    # relative-position bias tables (RPR_len = latent_len for cross, max_len for self)
    cross_tbl = w((num_heads, 2 * latent_len - 1))
    self_tbl = w((num_heads, 2 * max_len - 1))
    p["cross_rel_bias"] = rel_bias_from_table(cross_tbl, latent_len, input_len,
                                              latent_len - 1)
    p["self_rel_bias"] = rel_bias_from_table(self_tbl, latent_len, latent_len,
                                             max_len - 1)
    return p


# ----------------------------- main --------------------------------------------

if __name__ == "__main__":
    B = 2
    S_IN = 8           # input sequence length
    LATENT_LEN = 16    # latent_len
    D_LATENT = 32
    D_INPUT = 16
    D_ATT = 32
    NUM_HEADS = 4
    WIDTH = 64         # WidthsFeedForward=[64]
    MAX_LEN = 64

    key = jax.random.PRNGKey(0)
    k_in, k_lat, k_p = jax.random.split(key, 3)
    x_input = jax.random.normal(k_in, (B, S_IN, D_INPUT), jnp.float32)
    x_latent = jax.random.normal(k_lat, (B, LATENT_LEN, D_LATENT), jnp.float32)

    params = init_params(k_p, d_latent=D_LATENT, d_input=D_INPUT, d_att=D_ATT,
                         num_heads=NUM_HEADS, latent_len=LATENT_LEN,
                         input_len=S_IN, width=WIDTH, max_len=MAX_LEN)

    fwd = jax.jit(functools.partial(encoder_layer,
                                    num_heads=NUM_HEADS, d_att=D_ATT))
    out = fwd(x_input, x_latent, params)
    out = jax.block_until_ready(out)
    assert out.shape == (B, LATENT_LEN, D_LATENT), out.shape
    assert bool(jnp.all(jnp.isfinite(out)))
    print("KERNEL_OK")
</pallas_src>

<mosaic_0001>
module attributes {stable_mosaic.version = 11 : i64} {
  func.func @encoder_layer_kernel(%arg0: memref<32x32xf32, #tpu.memory_space<vmem>>, %arg1: memref<16x16xf32, #tpu.memory_space<vmem>>, %arg2: memref<1x32xf32, #tpu.memory_space<vmem>>, %arg3: memref<1x32xf32, #tpu.memory_space<vmem>>, %arg4: memref<1x16xf32, #tpu.memory_space<vmem>>, %arg5: memref<1x16xf32, #tpu.memory_space<vmem>>, %arg6: memref<1x32xf32, #tpu.memory_space<vmem>>, %arg7: memref<1x32xf32, #tpu.memory_space<vmem>>, %arg8: memref<1x32xf32, #tpu.memory_space<vmem>>, %arg9: memref<1x32xf32, #tpu.memory_space<vmem>>, %arg10: memref<32x32xbf16, #tpu.memory_space<vmem>>, %arg11: memref<1x32xf32, #tpu.memory_space<vmem>>, %arg12: memref<16x64xbf16, #tpu.memory_space<vmem>>, %arg13: memref<1x64xf32, #tpu.memory_space<vmem>>, %arg14: memref<32x32xbf16, #tpu.memory_space<vmem>>, %arg15: memref<1x32xf32, #tpu.memory_space<vmem>>, %arg16: memref<4x16x8xf32, #tpu.memory_space<vmem>>, %arg17: memref<32x96xbf16, #tpu.memory_space<vmem>>, %arg18: memref<1x96xf32, #tpu.memory_space<vmem>>, %arg19: memref<32x32xbf16, #tpu.memory_space<vmem>>, %arg20: memref<1x32xf32, #tpu.memory_space<vmem>>, %arg21: memref<4x16x16xf32, #tpu.memory_space<vmem>>, %arg22: memref<32x64xbf16, #tpu.memory_space<vmem>>, %arg23: memref<1x64xf32, #tpu.memory_space<vmem>>, %arg24: memref<64x32xbf16, #tpu.memory_space<vmem>>, %arg25: memref<1x32xf32, #tpu.memory_space<vmem>>, %arg26: memref<32x64xbf16, #tpu.memory_space<vmem>>, %arg27: memref<1x64xf32, #tpu.memory_space<vmem>>, %arg28: memref<64x32xbf16, #tpu.memory_space<vmem>>, %arg29: memref<1x32xf32, #tpu.memory_space<vmem>>, %arg30: memref<32x32xf32, #tpu.memory_space<vmem>>) attributes {dimension_semantics = [], scalar_prefetch = 0 : i64, scratch_operands = 0 : i64, tpu.core_type = #tpu.core_type<tc>} {
    %c0 = arith.constant 0 : index
    %c0_0 = arith.constant 0 : index
    %0 = vector.load %arg0[%c0, %c0_0] : memref<32x32xf32, #tpu.memory_space<vmem>>, vector<32x32xf32>
    %c0_1 = arith.constant 0 : index
    %c0_2 = arith.constant 0 : index
    %1 = vector.load %arg1[%c0_1, %c0_2] : memref<16x16xf32, #tpu.memory_space<vmem>>, vector<16x16xf32>
    %c0_3 = arith.constant 0 : index
    %c0_4 = arith.constant 0 : index
    %2 = vector.load %arg2[%c0_3, %c0_4] : memref<1x32xf32, #tpu.memory_space<vmem>>, vector<1x32xf32>
    %c0_5 = arith.constant 0 : index
    %c0_6 = arith.constant 0 : index
    %3 = vector.load %arg3[%c0_5, %c0_6] : memref<1x32xf32, #tpu.memory_space<vmem>>, vector<1x32xf32>
    %cst = arith.constant dense<0.000000e+00> : vector<32xf32>
    %4 = vector.multi_reduction <add>, %0, %cst [1] : vector<32x32xf32> to vector<32xf32>
    %5 = vector.shape_cast %4 : vector<32xf32> to vector<32x1xf32>
    %cst_7 = arith.constant 3.200000e+01 : f32
    %6 = vector.broadcast %cst_7 : f32 to vector<32x1xf32>
    %7 = arith.divf %5, %6 : vector<32x1xf32>
    %8 = vector.broadcast %7 : vector<32x1xf32> to vector<32x32xf32>
    %9 = arith.subf %0, %8 : vector<32x32xf32>
    %10 = arith.mulf %9, %9 : vector<32x32xf32>
    %cst_8 = arith.constant dense<0.000000e+00> : vector<32xf32>
    %11 = vector.multi_reduction <add>, %10, %cst_8 [1] : vector<32x32xf32> to vector<32xf32>
    %12 = vector.shape_cast %11 : vector<32xf32> to vector<32x1xf32>
    %cst_9 = arith.constant 3.200000e+01 : f32
    %13 = vector.broadcast %cst_9 : f32 to vector<32x1xf32>
    %14 = arith.divf %12, %13 : vector<32x1xf32>
    %15 = vector.broadcast %7 : vector<32x1xf32> to vector<32x32xf32>
    %16 = arith.subf %0, %15 : vector<32x32xf32>
    %cst_10 = arith.constant 9.99999974E-6 : f32
    %17 = vector.broadcast %cst_10 : f32 to vector<32x1xf32>
    %18 = arith.addf %14, %17 : vector<32x1xf32>
    %19 = math.rsqrt %18 : vector<32x1xf32>
    %20 = vector.broadcast %19 : vector<32x1xf32> to vector<32x32xf32>
    %21 = arith.mulf %16, %20 : vector<32x32xf32>
    %22 = vector.broadcast %2 : vector<1x32xf32> to vector<32x32xf32>
    %23 = arith.mulf %21, %22 : vector<32x32xf32>
    %24 = vector.broadcast %3 : vector<1x32xf32> to vector<32x32xf32>
    %25 = arith.addf %23, %24 : vector<32x32xf32>
    %26 = arith.truncf %25 : vector<32x32xf32> to vector<32x32xbf16>
    %c0_11 = arith.constant 0 : index
    %c0_12 = arith.constant 0 : index
    %27 = vector.load %arg4[%c0_11, %c0_12] : memref<1x16xf32, #tpu.memory_space<vmem>>, vector<1x16xf32>
    %c0_13 = arith.constant 0 : index
    %c0_14 = arith.constant 0 : index
    %28 = vector.load %arg5[%c0_13, %c0_14] : memref<1x16xf32, #tpu.memory_space<vmem>>, vector<1x16xf32>
    %cst_15 = arith.constant dense<0.000000e+00> : vector<16xf32>
    %29 = vector.multi_reduction <add>, %1, %cst_15 [1] : vector<16x16xf32> to vector<16xf32>
    %30 = vector.shape_cast %29 : vector<16xf32> to vector<16x1xf32>
    %cst_16 = arith.constant 1.600000e+01 : f32
    %31 = vector.broadcast %cst_16 : f32 to vector<16x1xf32>
    %32 = arith.divf %30, %31 : vector<16x1xf32>
    %33 = vector.broadcast %32 : vector<16x1xf32> to vector<16x16xf32>
    %34 = arith.subf %1, %33 : vector<16x16xf32>
    %35 = arith.mulf %34, %34 : vector<16x16xf32>
    %cst_17 = arith.constant dense<0.000000e+00> : vector<16xf32>
    %36 = vector.multi_reduction <add>, %35, %cst_17 [1] : vector<16x16xf32> to vector<16xf32>
    %37 = vector.shape_cast %36 : vector<16xf32> to vector<16x1xf32>
    %cst_18 = arith.constant 1.600000e+01 : f32
    %38 = vector.broadcast %cst_18 : f32 to vector<16x1xf32>
    %39 = arith.divf %37, %38 : vector<16x1xf32>
    %40 = vector.broadcast %32 : vector<16x1xf32> to vector<16x16xf32>
    %41 = arith.subf %1, %40 : vector<16x16xf32>
    %cst_19 = arith.constant 9.99999974E-6 : f32
    %42 = vector.broadcast %cst_19 : f32 to vector<16x1xf32>
    %43 = arith.addf %39, %42 : vector<16x1xf32>
    %44 = math.rsqrt %43 : vector<16x1xf32>
    %45 = vector.broadcast %44 : vector<16x1xf32> to vector<16x16xf32>
    %46 = arith.mulf %41, %45 : vector<16x16xf32>
    %47 = vector.broadcast %27 : vector<1x16xf32> to vector<16x16xf32>
    %48 = arith.mulf %46, %47 : vector<16x16xf32>
    %49 = vector.broadcast %28 : vector<1x16xf32> to vector<16x16xf32>
    %50 = arith.addf %48, %49 : vector<16x16xf32>
    %51 = arith.truncf %50 : vector<16x16xf32> to vector<16x16xbf16>
    %c0_20 = arith.constant 0 : index
    %c0_21 = arith.constant 0 : index
    %52 = vector.load %arg10[%c0_20, %c0_21] : memref<32x32xbf16, #tpu.memory_space<vmem>>, vector<32x32xbf16>
    %cst_22 = arith.constant dense<0.000000e+00> : vector<32x32xf32>
    %53 = tpu.matmul %26, %52, %cst_22 {dimension_numbers = #tpu.dot_dimension_numbers<[1], [0], [0], [1], [0, 0, 1, 1], [], []>} : vector<32x32xbf16>, vector<32x32xbf16>, vector<32x32xf32> -> vector<32x32xf32>
    %c0_23 = arith.constant 0 : index
    %c0_24 = arith.constant 0 : index
    %54 = vector.load %arg11[%c0_23, %c0_24] : memref<1x32xf32, #tpu.memory_space<vmem>>, vector<1x32xf32>
    %55 = vector.broadcast %54 : vector<1x32xf32> to vector<32x32xf32>
    %56 = arith.addf %53, %55 : vector<32x32xf32>
    %c0_25 = arith.constant 0 : index
    %c0_26 = arith.constant 0 : index
    %57 = vector.load %arg12[%c0_25, %c0_26] : memref<16x64xbf16, #tpu.memory_space<vmem>>, vector<16x64xbf16>
    %cst_27 = arith.constant dense<0.000000e+00> : vector<16x64xf32>
    %58 = tpu.matmul %51, %57, %cst_27 {dimension_numbers = #tpu.dot_dimension_numbers<[1], [0], [0], [1], [0, 0, 1, 1], [], []>} : vector<16x16xbf16>, vector<16x64xbf16>, vector<16x64xf32> -> vector<16x64xf32>
    %c0_28 = arith.constant 0 : index
    %c0_29 = arith.constant 0 : index
    %59 = vector.load %arg13[%c0_28, %c0_29] : memref<1x64xf32, #tpu.memory_space<vmem>>, vector<1x64xf32>
    %60 = vector.broadcast %59 : vector<1x64xf32> to vector<16x64xf32>
    %61 = arith.addf %58, %60 : vector<16x64xf32>
    %62 = vector.extract_strided_slice %61 {offsets = [0, 0], sizes = [16, 32], strides = [1, 1]} : vector<16x64xf32> to vector<16x32xf32>
    %63 = vector.extract_strided_slice %61 {offsets = [0, 32], sizes = [16, 32], strides = [1, 1]} : vector<16x64xf32> to vector<16x32xf32>
    %c0_30 = arith.constant 0 : index
    %c0_31 = arith.constant 0 : index
    %c0_32 = arith.constant 0 : index
    %64 = vector.load %arg16[%c0_30, %c0_31, %c0_32] : memref<4x16x8xf32, #tpu.memory_space<vmem>>, vector<4x16x8xf32>
    %c0_33 = arith.constant 0 : index
    %c0_34 = arith.constant 0 : index
    %65 = vector.load %arg14[%c0_33, %c0_34] : memref<32x32xbf16, #tpu.memory_space<vmem>>, vector<32x32xbf16>
    %c0_35 = arith.constant 0 : index
    %c0_36 = arith.constant 0 : index
    %66 = vector.load %arg15[%c0_35, %c0_36] : memref<1x32xf32, #tpu.memory_space<vmem>>, vector<1x32xf32>
    %cst_37 = arith.constant 0.353553385 : f32
    %67 = vector.broadcast %cst_37 : f32 to vector<32x32xf32>
    %68 = arith.mulf %56, %67 : vector<32x32xf32>
    %69 = arith.truncf %68 : vector<32x32xf32> to vector<32x32xbf16>
    %70 = arith.truncf %62 : vector<16x32xf32> to vector<16x32xbf16>
    %71 = arith.truncf %63 : vector<16x32xf32> to vector<16x32xbf16>
    %72 = vector.extract_strided_slice %69 {offsets = [0, 0], sizes = [16, 32], strides = [1, 1]} : vector<32x32xbf16> to vector<16x32xbf16>
    %73 = vector.extract_strided_slice %70 {offsets = [0, 0], sizes = [8, 32], strides = [1, 1]} : vector<16x32xbf16> to vector<8x32xbf16>
    %74 = vector.extract_strided_slice %71 {offsets = [0, 0], sizes = [8, 32], strides = [1, 1]} : vector<16x32xbf16> to vector<8x32xbf16>
    %cst_38 = arith.constant 0.000000e+00 : f32
    %75 = vector.broadcast %cst_38 : f32 to vector<16x32xf32>
    %76 = vector.extract_strided_slice %72 {offsets = [0, 0], sizes = [16, 8], strides = [1, 1]} : vector<16x32xbf16> to vector<16x8xbf16>
    %77 = vector.extract_strided_slice %73 {offsets = [0, 0], sizes = [8, 8], strides = [1, 1]} : vector<8x32xbf16> to vector<8x8xbf16>
    %cst_39 = arith.constant dense<0.000000e+00> : vector<16x8xf32>
    %78 = tpu.matmul %76, %77, %cst_39 {dimension_numbers = #tpu.dot_dimension_numbers<[1], [1], [0], [0], [0, 0, 1, 0], [], []>} : vector<16x8xbf16>, vector<8x8xbf16>, vector<16x8xf32> -> vector<16x8xf32>
    %79 = vector.extract_strided_slice %64 {offsets = [0, 0, 0], sizes = [1, 16, 8], strides = [1, 1, 1]} : vector<4x16x8xf32> to vector<1x16x8xf32>
    %80 = vector.shape_cast %79 : vector<1x16x8xf32> to vector<16x8xf32>
    %81 = arith.addf %78, %80 : vector<16x8xf32>
    %cst_40 = arith.constant dense<0xFF800000> : vector<16xf32>
    %82 = vector.multi_reduction <maximumf>, %81, %cst_40 [1] : vector<16x8xf32> to vector<16xf32>
    %83 = vector.shape_cast %82 : vector<16xf32> to vector<16x1xf32>
    %84 = vector.broadcast %83 : vector<16x1xf32> to vector<16x8xf32>
    %85 = arith.subf %81, %84 : vector<16x8xf32>
    %86 = math.exp %85 : vector<16x8xf32>
    %cst_41 = arith.constant dense<0.000000e+00> : vector<16xf32>
    %87 = vector.multi_reduction <add>, %86, %cst_41 [1] : vector<16x8xf32> to vector<16xf32>
    %88 = vector.shape_cast %87 : vector<16xf32> to vector<16x1xf32>
    %89 = tpu.reciprocal %88 {approx = true} : vector<16x1xf32> -> vector<16x1xf32>
    %90 = vector.broadcast %89 : vector<16x1xf32> to vector<16x8xf32>
    %91 = arith.mulf %86, %90 : vector<16x8xf32>
    %92 = arith.truncf %91 : vector<16x8xf32> to vector<16x8xbf16>
    %93 = vector.extract_strided_slice %74 {offsets = [0, 0], sizes = [8, 8], strides = [1, 1]} : vector<8x32xbf16> to vector<8x8xbf16>
    %cst_42 = arith.constant dense<0.000000e+00> : vector<16x8xf32>
    %94 = tpu.matmul %92, %93, %cst_42 {dimension_numbers = #tpu.dot_dimension_numbers<[1], [0], [0], [1], [0, 0, 1, 1], [], []>} : vector<16x8xbf16>, vector<8x8xbf16>, vector<16x8xf32> -> vector<16x8xf32>
    %95 = arith.truncf %94 : vector<16x8xf32> to vector<16x8xbf16>
    %96 = vector.extract_strided_slice %65 {offsets = [0, 0], sizes = [8, 32], strides = [1, 1]} : vector<32x32xbf16> to vector<8x32xbf16>
    %cst_43 = arith.constant dense<0.000000e+00> : vector<16x32xf32>
    %97 = tpu.matmul %95, %96, %cst_43 {dimension_numbers = #tpu.dot_dimension_numbers<[1], [0], [0], [1], [0, 0, 1, 1], [], []>} : vector<16x8xbf16>, vector<8x32xbf16>, vector<16x32xf32> -> vector<16x32xf32>
    %98 = arith.addf %75, %97 : vector<16x32xf32>
    %99 = vector.extract_strided_slice %72 {offsets = [0, 8], sizes = [16, 8], strides = [1, 1]} : vector<16x32xbf16> to vector<16x8xbf16>
    %100 = vector.extract_strided_slice %73 {offsets = [0, 8], sizes = [8, 8], strides = [1, 1]} : vector<8x32xbf16> to vector<8x8xbf16>
    %cst_44 = arith.constant dense<0.000000e+00> : vector<16x8xf32>
    %101 = tpu.matmul %99, %100, %cst_44 {dimension_numbers = #tpu.dot_dimension_numbers<[1], [1], [0], [0], [0, 0, 1, 0], [], []>} : vector<16x8xbf16>, vector<8x8xbf16>, vector<16x8xf32> -> vector<16x8xf32>
    %102 = vector.extract_strided_slice %64 {offsets = [1, 0, 0], sizes = [1, 16, 8], strides = [1, 1, 1]} : vector<4x16x8xf32> to vector<1x16x8xf32>
    %103 = vector.shape_cast %102 : vector<1x16x8xf32> to vector<16x8xf32>
    %104 = arith.addf %101, %103 : vector<16x8xf32>
    %cst_45 = arith.constant dense<0xFF800000> : vector<16xf32>
    %105 = vector.multi_reduction <maximumf>, %104, %cst_45 [1] : vector<16x8xf32> to vector<16xf32>
    %106 = vector.shape_cast %105 : vector<16xf32> to vector<16x1xf32>
    %107 = vector.broadcast %106 : vector<16x1xf32> to vector<16x8xf32>
    %108 = arith.subf %104, %107 : vector<16x8xf32>
    %109 = math.exp %108 : vector<16x8xf32>
    %cst_46 = arith.constant dense<0.000000e+00> : vector<16xf32>
    %110 = vector.multi_reduction <add>, %109, %cst_46 [1] : vector<16x8xf32> to vector<16xf32>
    %111 = vector.shape_cast %110 : vector<16xf32> to vector<16x1xf32>
    %112 = tpu.reciprocal %111 {approx = true} : vector<16x1xf32> -> vector<16x1xf32>
    %113 = vector.broadcast %112 : vector<16x1xf32> to vector<16x8xf32>
    %114 = arith.mulf %109, %113 : vector<16x8xf32>
    %115 = arith.truncf %114 : vector<16x8xf32> to vector<16x8xbf16>
    %116 = vector.extract_strided_slice %74 {offsets = [0, 8], sizes = [8, 8], strides = [1, 1]} : vector<8x32xbf16> to vector<8x8xbf16>
    %cst_47 = arith.constant dense<0.000000e+00> : vector<16x8xf32>
    %117 = tpu.matmul %115, %116, %cst_47 {dimension_numbers = #tpu.dot_dimension_numbers<[1], [0], [0], [1], [0, 0, 1, 1], [], []>} : vector<16x8xbf16>, vector<8x8xbf16>, vector<16x8xf32> -> vector<16x8xf32>
    %118 = arith.truncf %117 : vector<16x8xf32> to vector<16x8xbf16>
    %119 = vector.extract_strided_slice %65 {offsets = [8, 0], sizes = [8, 32], strides = [1, 1]} : vector<32x32xbf16> to vector<8x32xbf16>
    %cst_48 = arith.constant dense<0.000000e+00> : vector<16x32xf32>
    %120 = tpu.matmul %118, %119, %cst_48 {dimension_numbers = #tpu.dot_dimension_numbers<[1], [0], [0], [1], [0, 0, 1, 1], [], []>} : vector<16x8xbf16>, vector<8x32xbf16>, vector<16x32xf32> -> vector<16x32xf32>
    %121 = arith.addf %98, %120 : vector<16x32xf32>
    %122 = vector.extract_strided_slice %72 {offsets = [0, 16], sizes = [16, 8], strides = [1, 1]} : vector<16x32xbf16> to vector<16x8xbf16>
    %123 = vector.extract_strided_slice %73 {offsets = [0, 16], sizes = [8, 8], strides = [1, 1]} : vector<8x32xbf16> to vector<8x8xbf16>
    %cst_49 = arith.constant dense<0.000000e+00> : vector<16x8xf32>
    %124 = tpu.matmul %122, %123, %cst_49 {dimension_numbers = #tpu.dot_dimension_numbers<[1], [1], [0], [0], [0, 0, 1, 0], [], []>} : vector<16x8xbf16>, vector<8x8xbf16>, vector<16x8xf32> -> vector<16x8xf32>
    %125 = vector.extract_strided_slice %64 {offsets = [2, 0, 0], sizes = [1, 16, 8], strides = [1, 1, 1]} : vector<4x16x8xf32> to vector<1x16x8xf32>
    %126 = vector.shape_cast %125 : vector<1x16x8xf32> to vector<16x8xf32>
    %127 = arith.addf %124, %126 : vector<16x8xf32>
    %cst_50 = arith.constant dense<0xFF800000> : vector<16xf32>
    %128 = vector.multi_reduction <maximumf>, %127, %cst_50 [1] : vector<16x8xf32> to vector<16xf32>
    %129 = vector.shape_cast %128 : vector<16xf32> to vector<16x1xf32>
    %130 = vector.broadcast %129 : vector<16x1xf32> to vector<16x8xf32>
    %131 = arith.subf %127, %130 : vector<16x8xf32>
    %132 = math.exp %131 : vector<16x8xf32>
    %cst_51 = arith.constant dense<0.000000e+00> : vector<16xf32>
    %133 = vector.multi_reduction <add>, %132, %cst_51 [1] : vector<16x8xf32> to vector<16xf32>
    %134 = vector.shape_cast %133 : vector<16xf32> to vector<16x1xf32>
    %135 = tpu.reciprocal %134 {approx = true} : vector<16x1xf32> -> vector<16x1xf32>
    %136 = vector.broadcast %135 : vector<16x1xf32> to vector<16x8xf32>
    %137 = arith.mulf %132, %136 : vector<16x8xf32>
    %138 = arith.truncf %137 : vector<16x8xf32> to vector<16x8xbf16>
    %139 = vector.extract_strided_slice %74 {offsets = [0, 16], sizes = [8, 8], strides = [1, 1]} : vector<8x32xbf16> to vector<8x8xbf16>
    %cst_52 = arith.constant dense<0.000000e+00> : vector<16x8xf32>
    %140 = tpu.matmul %138, %139, %cst_52 {dimension_numbers = #tpu.dot_dimension_numbers<[1], [0], [0], [1], [0, 0, 1, 1], [], []>} : vector<16x8xbf16>, vector<8x8xbf16>, vector<16x8xf32> -> vector<16x8xf32>
    %141 = arith.truncf %140 : vector<16x8xf32> to vector<16x8xbf16>
    %142 = vector.extract_strided_slice %65 {offsets = [16, 0], sizes = [8, 32], strides = [1, 1]} : vector<32x32xbf16> to vector<8x32xbf16>
    %cst_53 = arith.constant dense<0.000000e+00> : vector<16x32xf32>
    %143 = tpu.matmul %141, %142, %cst_53 {dimension_numbers = #tpu.dot_dimension_numbers<[1], [0], [0], [1], [0, 0, 1, 1], [], []>} : vector<16x8xbf16>, vector<8x32xbf16>, vector<16x32xf32> -> vector<16x32xf32>
    %144 = arith.addf %121, %143 : vector<16x32xf32>
    %145 = vector.extract_strided_slice %72 {offsets = [0, 24], sizes = [16, 8], strides = [1, 1]} : vector<16x32xbf16> to vector<16x8xbf16>
    %146 = vector.extract_strided_slice %73 {offsets = [0, 24], sizes = [8, 8], strides = [1, 1]} : vector<8x32xbf16> to vector<8x8xbf16>
    %cst_54 = arith.constant dense<0.000000e+00> : vector<16x8xf32>
    %147 = tpu.matmul %145, %146, %cst_54 {dimension_numbers = #tpu.dot_dimension_numbers<[1], [1], [0], [0], [0, 0, 1, 0], [], []>} : vector<16x8xbf16>, vector<8x8xbf16>, vector<16x8xf32> -> vector<16x8xf32>
    %148 = vector.extract_strided_slice %64 {offsets = [3, 0, 0], sizes = [1, 16, 8], strides = [1, 1, 1]} : vector<4x16x8xf32> to vector<1x16x8xf32>
    %149 = vector.shape_cast %148 : vector<1x16x8xf32> to vector<16x8xf32>
    %150 = arith.addf %147, %149 : vector<16x8xf32>
    %cst_55 = arith.constant dense<0xFF800000> : vector<16xf32>
    %151 = vector.multi_reduction <maximumf>, %150, %cst_55 [1] : vector<16x8xf32> to vector<16xf32>
    %152 = vector.shape_cast %151 : vector<16xf32> to vector<16x1xf32>
    %153 = vector.broadcast %152 : vector<16x1xf32> to vector<16x8xf32>
    %154 = arith.subf %150, %153 : vector<16x8xf32>
    %155 = math.exp %154 : vector<16x8xf32>
    %cst_56 = arith.constant dense<0.000000e+00> : vector<16xf32>
    %156 = vector.multi_reduction <add>, %155, %cst_56 [1] : vector<16x8xf32> to vector<16xf32>
    %157 = vector.shape_cast %156 : vector<16xf32> to vector<16x1xf32>
    %158 = tpu.reciprocal %157 {approx = true} : vector<16x1xf32> -> vector<16x1xf32>
    %159 = vector.broadcast %158 : vector<16x1xf32> to vector<16x8xf32>
    %160 = arith.mulf %155, %159 : vector<16x8xf32>
    %161 = arith.truncf %160 : vector<16x8xf32> to vector<16x8xbf16>
    %162 = vector.extract_strided_slice %74 {offsets = [0, 24], sizes = [8, 8], strides = [1, 1]} : vector<8x32xbf16> to vector<8x8xbf16>
    %cst_57 = arith.constant dense<0.000000e+00> : vector<16x8xf32>
    %163 = tpu.matmul %161, %162, %cst_57 {dimension_numbers = #tpu.dot_dimension_numbers<[1], [0], [0], [1], [0, 0, 1, 1], [], []>} : vector<16x8xbf16>, vector<8x8xbf16>, vector<16x8xf32> -> vector<16x8xf32>
    %164 = arith.truncf %163 : vector<16x8xf32> to vector<16x8xbf16>
    %165 = vector.extract_strided_slice %65 {offsets = [24, 0], sizes = [8, 32], strides = [1, 1]} : vector<32x32xbf16> to vector<8x32xbf16>
    %cst_58 = arith.constant dense<0.000000e+00> : vector<16x32xf32>
    %166 = tpu.matmul %164, %165, %cst_58 {dimension_numbers = #tpu.dot_dimension_numbers<[1], [0], [0], [1], [0, 0, 1, 1], [], []>} : vector<16x8xbf16>, vector<8x32xbf16>, vector<16x32xf32> -> vector<16x32xf32>
    %167 = arith.addf %144, %166 : vector<16x32xf32>
    %168 = vector.extract_strided_slice %69 {offsets = [16, 0], sizes = [16, 32], strides = [1, 1]} : vector<32x32xbf16> to vector<16x32xbf16>
    %169 = vector.extract_strided_slice %70 {offsets = [8, 0], sizes = [8, 32], strides = [1, 1]} : vector<16x32xbf16> to vector<8x32xbf16>
    %170 = vector.extract_strided_slice %71 {offsets = [8, 0], sizes = [8, 32], strides = [1, 1]} : vector<16x32xbf16> to vector<8x32xbf16>
    %cst_59 = arith.constant 0.000000e+00 : f32
    %171 = vector.broadcast %cst_59 : f32 to vector<16x32xf32>
    %172 = vector.extract_strided_slice %168 {offsets = [0, 0], sizes = [16, 8], strides = [1, 1]} : vector<16x32xbf16> to vector<16x8xbf16>
    %173 = vector.extract_strided_slice %169 {offsets = [0, 0], sizes = [8, 8], strides = [1, 1]} : vector<8x32xbf16> to vector<8x8xbf16>
    %cst_60 = arith.constant dense<0.000000e+00> : vector<16x8xf32>
    %174 = tpu.matmul %172, %173, %cst_60 {dimension_numbers = #tpu.dot_dimension_numbers<[1], [1], [0], [0], [0, 0, 1, 0], [], []>} : vector<16x8xbf16>, vector<8x8xbf16>, vector<16x8xf32> -> vector<16x8xf32>
    %175 = vector.extract_strided_slice %64 {offsets = [0, 0, 0], sizes = [1, 16, 8], strides = [1, 1, 1]} : vector<4x16x8xf32> to vector<1x16x8xf32>
    %176 = vector.shape_cast %175 : vector<1x16x8xf32> to vector<16x8xf32>
    %177 = arith.addf %174, %176 : vector<16x8xf32>
    %cst_61 = arith.constant dense<0xFF800000> : vector<16xf32>
    %178 = vector.multi_reduction <maximumf>, %177, %cst_61 [1] : vector<16x8xf32> to vector<16xf32>
    %179 = vector.shape_cast %178 : vector<16xf32> to vector<16x1xf32>
    %180 = vector.broadcast %179 : vector<16x1xf32> to vector<16x8xf32>
    %181 = arith.subf %177, %180 : vector<16x8xf32>
    %182 = math.exp %181 : vector<16x8xf32>
    %cst_62 = arith.constant dense<0.000000e+00> : vector<16xf32>
    %183 = vector.multi_reduction <add>, %182, %cst_62 [1] : vector<16x8xf32> to vector<16xf32>
    %184 = vector.shape_cast %183 : vector<16xf32> to vector<16x1xf32>
    %185 = tpu.reciprocal %184 {approx = true} : vector<16x1xf32> -> vector<16x1xf32>
    %186 = vector.broadcast %185 : vector<16x1xf32> to vector<16x8xf32>
    %187 = arith.mulf %182, %186 : vector<16x8xf32>
    %188 = arith.truncf %187 : vector<16x8xf32> to vector<16x8xbf16>
    %189 = vector.extract_strided_slice %170 {offsets = [0, 0], sizes = [8, 8], strides = [1, 1]} : vector<8x32xbf16> to vector<8x8xbf16>
    %cst_63 = arith.constant dense<0.000000e+00> : vector<16x8xf32>
    %190 = tpu.matmul %188, %189, %cst_63 {dimension_numbers = #tpu.dot_dimension_numbers<[1], [0], [0], [1], [0, 0, 1, 1], [], []>} : vector<16x8xbf16>, vector<8x8xbf16>, vector<16x8xf32> -> vector<16x8xf32>
    %191 = arith.truncf %190 : vector<16x8xf32> to vector<16x8xbf16>
    %192 = vector.extract_strided_slice %65 {offsets = [0, 0], sizes = [8, 32], strides = [1, 1]} : vector<32x32xbf16> to vector<8x32xbf16>
    %cst_64 = arith.constant dense<0.000000e+00> : vector<16x32xf32>
    %193 = tpu.matmul %191, %192, %cst_64 {dimension_numbers = #tpu.dot_dimension_numbers<[1], [0], [0], [1], [0, 0, 1, 1], [], []>} : vector<16x8xbf16>, vector<8x32xbf16>, vector<16x32xf32> -> vector<16x32xf32>
    %194 = arith.addf %171, %193 : vector<16x32xf32>
    %195 = vector.extract_strided_slice %168 {offsets = [0, 8], sizes = [16, 8], strides = [1, 1]} : vector<16x32xbf16> to vector<16x8xbf16>
    %196 = vector.extract_strided_slice %169 {offsets = [0, 8], sizes = [8, 8], strides = [1, 1]} : vector<8x32xbf16> to vector<8x8xbf16>
    %cst_65 = arith.constant dense<0.000000e+00> : vector<16x8xf32>
    %197 = tpu.matmul %195, %196, %cst_65 {dimension_numbers = #tpu.dot_dimension_numbers<[1], [1], [0], [0], [0, 0, 1, 0], [], []>} : vector<16x8xbf16>, vector<8x8xbf16>, vector<16x8xf32> -> vector<16x8xf32>
    %198 = vector.extract_strided_slice %64 {offsets = [1, 0, 0], sizes = [1, 16, 8], strides = [1, 1, 1]} : vector<4x16x8xf32> to vector<1x16x8xf32>
    %199 = vector.shape_cast %198 : vector<1x16x8xf32> to vector<16x8xf32>
    %200 = arith.addf %197, %199 : vector<16x8xf32>
    %cst_66 = arith.constant dense<0xFF800000> : vector<16xf32>
    %201 = vector.multi_reduction <maximumf>, %200, %cst_66 [1] : vector<16x8xf32> to vector<16xf32>
    %202 = vector.shape_cast %201 : vector<16xf32> to vector<16x1xf32>
    %203 = vector.broadcast %202 : vector<16x1xf32> to vector<16x8xf32>
    %204 = arith.subf %200, %203 : vector<16x8xf32>
    %205 = math.exp %204 : vector<16x8xf32>
    %cst_67 = arith.constant dense<0.000000e+00> : vector<16xf32>
    %206 = vector.multi_reduction <add>, %205, %cst_67 [1] : vector<16x8xf32> to vector<16xf32>
    %207 = vector.shape_cast %206 : vector<16xf32> to vector<16x1xf32>
    %208 = tpu.reciprocal %207 {approx = true} : vector<16x1xf32> -> vector<16x1xf32>
    %209 = vector.broadcast %208 : vector<16x1xf32> to vector<16x8xf32>
    %210 = arith.mulf %205, %209 : vector<16x8xf32>
    %211 = arith.truncf %210 : vector<16x8xf32> to vector<16x8xbf16>
    %212 = vector.extract_strided_slice %170 {offsets = [0, 8], sizes = [8, 8], strides = [1, 1]} : vector<8x32xbf16> to vector<8x8xbf16>
    %cst_68 = arith.constant dense<0.000000e+00> : vector<16x8xf32>
    %213 = tpu.matmul %211, %212, %cst_68 {dimension_numbers = #tpu.dot_dimension_numbers<[1], [0], [0], [1], [0, 0, 1, 1], [], []>} : vector<16x8xbf16>, vector<8x8xbf16>, vector<16x8xf32> -> vector<16x8xf32>
    %214 = arith.truncf %213 : vector<16x8xf32> to vector<16x8xbf16>
    %215 = vector.extract_strided_slice %65 {offsets = [8, 0], sizes = [8, 32], strides = [1, 1]} : vector<32x32xbf16> to vector<8x32xbf16>
    %cst_69 = arith.constant dense<0.000000e+00> : vector<16x32xf32>
    %216 = tpu.matmul %214, %215, %cst_69 {dimension_numbers = #tpu.dot_dimension_numbers<[1], [0], [0], [1], [0, 0, 1, 1], [], []>} : vector<16x8xbf16>, vector<8x32xbf16>, vector<16x32xf32> -> vector<16x32xf32>
    %217 = arith.addf %194, %216 : vector<16x32xf32>
    %218 = vector.extract_strided_slice %168 {offsets = [0, 16], sizes = [16, 8], strides = [1, 1]} : vector<16x32xbf16> to vector<16x8xbf16>
    %219 = vector.extract_strided_slice %169 {offsets = [0, 16], sizes = [8, 8], strides = [1, 1]} : vector<8x32xbf16> to vector<8x8xbf16>
    %cst_70 = arith.constant dense<0.000000e+00> : vector<16x8xf32>
    %220 = tpu.matmul %218, %219, %cst_70 {dimension_numbers = #tpu.dot_dimension_numbers<[1], [1], [0], [0], [0, 0, 1, 0], [], []>} : vector<16x8xbf16>, vector<8x8xbf16>, vector<16x8xf32> -> vector<16x8xf32>
    %221 = vector.extract_strided_slice %64 {offsets = [2, 0, 0], sizes = [1, 16, 8], strides = [1, 1, 1]} : vector<4x16x8xf32> to vector<1x16x8xf32>
    %222 = vector.shape_cast %221 : vector<1x16x8xf32> to vector<16x8xf32>
    %223 = arith.addf %220, %222 : vector<16x8xf32>
    %cst_71 = arith.constant dense<0xFF800000> : vector<16xf32>
    %224 = vector.multi_reduction <maximumf>, %223, %cst_71 [1] : vector<16x8xf32> to vector<16xf32>
    %225 = vector.shape_cast %224 : vector<16xf32> to vector<16x1xf32>
    %226 = vector.broadcast %225 : vector<16x1xf32> to vector<16x8xf32>
    %227 = arith.subf %223, %226 : vector<16x8xf32>
    %228 = math.exp %227 : vector<16x8xf32>
    %cst_72 = arith.constant dense<0.000000e+00> : vector<16xf32>
    %229 = vector.multi_reduction <add>, %228, %cst_72 [1] : vector<16x8xf32> to vector<16xf32>
    %230 = vector.shape_cast %229 : vector<16xf32> to vector<16x1xf32>
    %231 = tpu.reciprocal %230 {approx = true} : vector<16x1xf32> -> vector<16x1xf32>
    %232 = vector.broadcast %231 : vector<16x1xf32> to vector<16x8xf32>
    %233 = arith.mulf %228, %232 : vector<16x8xf32>
    %234 = arith.truncf %233 : vector<16x8xf32> to vector<16x8xbf16>
    %235 = vector.extract_strided_slice %170 {offsets = [0, 16], sizes = [8, 8], strides = [1, 1]} : vector<8x32xbf16> to vector<8x8xbf16>
    %cst_73 = arith.constant dense<0.000000e+00> : vector<16x8xf32>
    %236 = tpu.matmul %234, %235, %cst_73 {dimension_numbers = #tpu.dot_dimension_numbers<[1], [0], [0], [1], [0, 0, 1, 1], [], []>} : vector<16x8xbf16>, vector<8x8xbf16>, vector<16x8xf32> -> vector<16x8xf32>
    %237 = arith.truncf %236 : vector<16x8xf32> to vector<16x8xbf16>
    %238 = vector.extract_strided_slice %65 {offsets = [16, 0], sizes = [8, 32], strides = [1, 1]} : vector<32x32xbf16> to vector<8x32xbf16>
    %cst_74 = arith.constant dense<0.000000e+00> : vector<16x32xf32>
    %239 = tpu.matmul %237, %238, %cst_74 {dimension_numbers = #tpu.dot_dimension_numbers<[1], [0], [0], [1], [0, 0, 1, 1], [], []>} : vector<16x8xbf16>, vector<8x32xbf16>, vector<16x32xf32> -> vector<16x32xf32>
    %240 = arith.addf %217, %239 : vector<16x32xf32>
    %241 = vector.extract_strided_slice %168 {offsets = [0, 24], sizes = [16, 8], strides = [1, 1]} : vector<16x32xbf16> to vector<16x8xbf16>
    %242 = vector.extract_strided_slice %169 {offsets = [0, 24], sizes = [8, 8], strides = [1, 1]} : vector<8x32xbf16> to vector<8x8xbf16>
    %cst_75 = arith.constant dense<0.000000e+00> : vector<16x8xf32>
    %243 = tpu.matmul %241, %242, %cst_75 {dimension_numbers = #tpu.dot_dimension_numbers<[1], [1], [0], [0], [0, 0, 1, 0], [], []>} : vector<16x8xbf16>, vector<8x8xbf16>, vector<16x8xf32> -> vector<16x8xf32>
    %244 = vector.extract_strided_slice %64 {offsets = [3, 0, 0], sizes = [1, 16, 8], strides = [1, 1, 1]} : vector<4x16x8xf32> to vector<1x16x8xf32>
    %245 = vector.shape_cast %244 : vector<1x16x8xf32> to vector<16x8xf32>
    %246 = arith.addf %243, %245 : vector<16x8xf32>
    %cst_76 = arith.constant dense<0xFF800000> : vector<16xf32>
    %247 = vector.multi_reduction <maximumf>, %246, %cst_76 [1] : vector<16x8xf32> to vector<16xf32>
    %248 = vector.shape_cast %247 : vector<16xf32> to vector<16x1xf32>
    %249 = vector.broadcast %248 : vector<16x1xf32> to vector<16x8xf32>
    %250 = arith.subf %246, %249 : vector<16x8xf32>
    %251 = math.exp %250 : vector<16x8xf32>
    %cst_77 = arith.constant dense<0.000000e+00> : vector<16xf32>
    %252 = vector.multi_reduction <add>, %251, %cst_77 [1] : vector<16x8xf32> to vector<16xf32>
    %253 = vector.shape_cast %252 : vector<16xf32> to vector<16x1xf32>
    %254 = tpu.reciprocal %253 {approx = true} : vector<16x1xf32> -> vector<16x1xf32>
    %255 = vector.broadcast %254 : vector<16x1xf32> to vector<16x8xf32>
    %256 = arith.mulf %251, %255 : vector<16x8xf32>
    %257 = arith.truncf %256 : vector<16x8xf32> to vector<16x8xbf16>
    %258 = vector.extract_strided_slice %170 {offsets = [0, 24], sizes = [8, 8], strides = [1, 1]} : vector<8x32xbf16> to vector<8x8xbf16>
    %cst_78 = arith.constant dense<0.000000e+00> : vector<16x8xf32>
    %259 = tpu.matmul %257, %258, %cst_78 {dimension_numbers = #tpu.dot_dimension_numbers<[1], [0], [0], [1], [0, 0, 1, 1], [], []>} : vector<16x8xbf16>, vector<8x8xbf16>, vector<16x8xf32> -> vector<16x8xf32>
    %260 = arith.truncf %259 : vector<16x8xf32> to vector<16x8xbf16>
    %261 = vector.extract_strided_slice %65 {offsets = [24, 0], sizes = [8, 32], strides = [1, 1]} : vector<32x32xbf16> to vector<8x32xbf16>
    %cst_79 = arith.constant dense<0.000000e+00> : vector<16x32xf32>
    %262 = tpu.matmul %260, %261, %cst_79 {dimension_numbers = #tpu.dot_dimension_numbers<[1], [0], [0], [1], [0, 0, 1, 1], [], []>} : vector<16x8xbf16>, vector<8x32xbf16>, vector<16x32xf32> -> vector<16x32xf32>
    %263 = arith.addf %240, %262 : vector<16x32xf32>
    %264 = tpu.concatenate %167, %263 in 0 : vector<16x32xf32>, vector<16x32xf32> -> vector<32x32xf32>
    %265 = vector.broadcast %66 : vector<1x32xf32> to vector<32x32xf32>
    %266 = arith.addf %264, %265 : vector<32x32xf32>
    %267 = arith.addf %0, %266 : vector<32x32xf32>
    %c0_80 = arith.constant 0 : index
    %c0_81 = arith.constant 0 : index
    %268 = vector.load %arg6[%c0_80, %c0_81] : memref<1x32xf32, #tpu.memory_space<vmem>>, vector<1x32xf32>
    %c0_82 = arith.constant 0 : index
    %c0_83 = arith.constant 0 : index
    %269 = vector.load %arg7[%c0_82, %c0_83] : memref<1x32xf32, #tpu.memory_space<vmem>>, vector<1x32xf32>
    %cst_84 = arith.constant dense<0.000000e+00> : vector<32xf32>
    %270 = vector.multi_reduction <add>, %267, %cst_84 [1] : vector<32x32xf32> to vector<32xf32>
    %271 = vector.shape_cast %270 : vector<32xf32> to vector<32x1xf32>
    %cst_85 = arith.constant 3.200000e+01 : f32
    %272 = vector.broadcast %cst_85 : f32 to vector<32x1xf32>
    %273 = arith.divf %271, %272 : vector<32x1xf32>
    %274 = vector.broadcast %273 : vector<32x1xf32> to vector<32x32xf32>
    %275 = arith.subf %267, %274 : vector<32x32xf32>
    %276 = arith.mulf %275, %275 : vector<32x32xf32>
    %cst_86 = arith.constant dense<0.000000e+00> : vector<32xf32>
    %277 = vector.multi_reduction <add>, %276, %cst_86 [1] : vector<32x32xf32> to vector<32xf32>
    %278 = vector.shape_cast %277 : vector<32xf32> to vector<32x1xf32>
    %cst_87 = arith.constant 3.200000e+01 : f32
    %279 = vector.broadcast %cst_87 : f32 to vector<32x1xf32>
    %280 = arith.divf %278, %279 : vector<32x1xf32>
    %281 = vector.broadcast %273 : vector<32x1xf32> to vector<32x32xf32>
    %282 = arith.subf %267, %281 : vector<32x32xf32>
    %cst_88 = arith.constant 9.99999974E-6 : f32
    %283 = vector.broadcast %cst_88 : f32 to vector<32x1xf32>
    %284 = arith.addf %280, %283 : vector<32x1xf32>
    %285 = math.rsqrt %284 : vector<32x1xf32>
    %286 = vector.broadcast %285 : vector<32x1xf32> to vector<32x32xf32>
    %287 = arith.mulf %282, %286 : vector<32x32xf32>
    %288 = vector.broadcast %268 : vector<1x32xf32> to vector<32x32xf32>
    %289 = arith.mulf %287, %288 : vector<32x32xf32>
    %290 = vector.broadcast %269 : vector<1x32xf32> to vector<32x32xf32>
    %291 = arith.addf %289, %290 : vector<32x32xf32>
    %292 = arith.truncf %291 : vector<32x32xf32> to vector<32x32xbf16>
    %c0_89 = arith.constant 0 : index
    %c0_90 = arith.constant 0 : index
    %293 = vector.load %arg22[%c0_89, %c0_90] : memref<32x64xbf16, #tpu.memory_space<vmem>>, vector<32x64xbf16>
    %cst_91 = arith.constant dense<0.000000e+00> : vector<32x64xf32>
    %294 = tpu.matmul %292, %293, %cst_91 {dimension_numbers = #tpu.dot_dimension_numbers<[1], [0], [0], [1], [0, 0, 1, 1], [], []>} : vector<32x32xbf16>, vector<32x64xbf16>, vector<32x64xf32> -> vector<32x64xf32>
    %c0_92 = arith.constant 0 : index
    %c0_93 = arith.constant 0 : index
    %295 = vector.load %arg23[%c0_92, %c0_93] : memref<1x64xf32, #tpu.memory_space<vmem>>, vector<1x64xf32>
    %296 = vector.broadcast %295 : vector<1x64xf32> to vector<32x64xf32>
    %297 = arith.addf %294, %296 : vector<32x64xf32>
    %cst_94 = arith.constant 0.000000e+00 : f32
    %298 = vector.broadcast %cst_94 : f32 to vector<32x64xf32>
    %299 = arith.maximumf %297, %298 : vector<32x64xf32>
    %300 = arith.truncf %299 : vector<32x64xf32> to vector<32x64xbf16>
    %c0_95 = arith.constant 0 : index
    %c0_96 = arith.constant 0 : index
    %301 = vector.load %arg24[%c0_95, %c0_96] : memref<64x32xbf16, #tpu.memory_space<vmem>>, vector<64x32xbf16>
    %cst_97 = arith.constant dense<0.000000e+00> : vector<32x32xf32>
    %302 = tpu.matmul %300, %301, %cst_97 {dimension_numbers = #tpu.dot_dimension_numbers<[1], [0], [0], [1], [0, 0, 1, 1], [], []>} : vector<32x64xbf16>, vector<64x32xbf16>, vector<32x32xf32> -> vector<32x32xf32>
    %303 = arith.addf %267, %302 : vector<32x32xf32>
    %c0_98 = arith.constant 0 : index
    %c0_99 = arith.constant 0 : index
    %304 = vector.load %arg25[%c0_98, %c0_99] : memref<1x32xf32, #tpu.memory_space<vmem>>, vector<1x32xf32>
    %305 = vector.broadcast %304 : vector<1x32xf32> to vector<32x32xf32>
    %306 = arith.addf %303, %305 : vector<32x32xf32>
    %c0_100 = arith.constant 0 : index
    %c0_101 = arith.constant 0 : index
    %307 = vector.load %arg8[%c0_100, %c0_101] : memref<1x32xf32, #tpu.memory_space<vmem>>, vector<1x32xf32>
    %c0_102 = arith.constant 0 : index
    %c0_103 = arith.constant 0 : index
    %308 = vector.load %arg9[%c0_102, %c0_103] : memref<1x32xf32, #tpu.memory_space<vmem>>, vector<1x32xf32>
    %cst_104 = arith.constant dense<0.000000e+00> : vector<32xf32>
    %309 = vector.multi_reduction <add>, %306, %cst_104 [1] : vector<32x32xf32> to vector<32xf32>
    %310 = vector.shape_cast %309 : vector<32xf32> to vector<32x1xf32>
    %cst_105 = arith.constant 3.200000e+01 : f32
    %311 = vector.broadcast %cst_105 : f32 to vector<32x1xf32>
    %312 = arith.divf %310, %311 : vector<32x1xf32>
    %313 = vector.broadcast %312 : vector<32x1xf32> to vector<32x32xf32>
    %314 = arith.subf %306, %313 : vector<32x32xf32>
    %315 = arith.mulf %314, %314 : vector<32x32xf32>
    %cst_106 = arith.constant dense<0.000000e+00> : vector<32xf32>
    %316 = vector.multi_reduction <add>, %315, %cst_106 [1] : vector<32x32xf32> to vector<32xf32>
    %317 = vector.shape_cast %316 : vector<32xf32> to vector<32x1xf32>
    %cst_107 = arith.constant 3.200000e+01 : f32
    %318 = vector.broadcast %cst_107 : f32 to vector<32x1xf32>
    %319 = arith.divf %317, %318 : vector<32x1xf32>
    %320 = vector.broadcast %312 : vector<32x1xf32> to vector<32x32xf32>
    %321 = arith.subf %306, %320 : vector<32x32xf32>
    %cst_108 = arith.constant 9.99999974E-6 : f32
    %322 = vector.broadcast %cst_108 : f32 to vector<32x1xf32>
    %323 = arith.addf %319, %322 : vector<32x1xf32>
    %324 = math.rsqrt %323 : vector<32x1xf32>
    %325 = vector.broadcast %324 : vector<32x1xf32> to vector<32x32xf32>
    %326 = arith.mulf %321, %325 : vector<32x32xf32>
    %327 = vector.broadcast %307 : vector<1x32xf32> to vector<32x32xf32>
    %328 = arith.mulf %326, %327 : vector<32x32xf32>
    %329 = vector.broadcast %308 : vector<1x32xf32> to vector<32x32xf32>
    %330 = arith.addf %328, %329 : vector<32x32xf32>
    %331 = arith.truncf %330 : vector<32x32xf32> to vector<32x32xbf16>
    %c0_109 = arith.constant 0 : index
    %c0_110 = arith.constant 0 : index
    %332 = vector.load %arg17[%c0_109, %c0_110] : memref<32x96xbf16, #tpu.memory_space<vmem>>, vector<32x96xbf16>
    %cst_111 = arith.constant dense<0.000000e+00> : vector<32x96xf32>
    %333 = tpu.matmul %331, %332, %cst_111 {dimension_numbers = #tpu.dot_dimension_numbers<[1], [0], [0], [1], [0, 0, 1, 1], [], []>} : vector<32x32xbf16>, vector<32x96xbf16>, vector<32x96xf32> -> vector<32x96xf32>
    %c0_112 = arith.constant 0 : index
    %c0_113 = arith.constant 0 : index
    %334 = vector.load %arg18[%c0_112, %c0_113] : memref<1x96xf32, #tpu.memory_space<vmem>>, vector<1x96xf32>
    %335 = vector.broadcast %334 : vector<1x96xf32> to vector<32x96xf32>
    %336 = arith.addf %333, %335 : vector<32x96xf32>
    %337 = vector.extract_strided_slice %336 {offsets = [0, 0], sizes = [32, 32], strides = [1, 1]} : vector<32x96xf32> to vector<32x32xf32>
    %338 = vector.extract_strided_slice %336 {offsets = [0, 32], sizes = [32, 32], strides = [1, 1]} : vector<32x96xf32> to vector<32x32xf32>
    %339 = vector.extract_strided_slice %336 {offsets = [0, 64], sizes = [32, 32], strides = [1, 1]} : vector<32x96xf32> to vector<32x32xf32>
    %c0_114 = arith.constant 0 : index
    %c0_115 = arith.constant 0 : index
    %c0_116 = arith.constant 0 : index
    %340 = vector.load %arg21[%c0_114, %c0_115, %c0_116] : memref<4x16x16xf32, #tpu.memory_space<vmem>>, vector<4x16x16xf32>
    %c0_117 = arith.constant 0 : index
    %c0_118 = arith.constant 0 : index
    %341 = vector.load %arg19[%c0_117, %c0_118] : memref<32x32xbf16, #tpu.memory_space<vmem>>, vector<32x32xbf16>
    %c0_119 = arith.constant 0 : index
    %c0_120 = arith.constant 0 : index
    %342 = vector.load %arg20[%c0_119, %c0_120] : memref<1x32xf32, #tpu.memory_space<vmem>>, vector<1x32xf32>
    %cst_121 = arith.constant 0.353553385 : f32
    %343 = vector.broadcast %cst_121 : f32 to vector<32x32xf32>
    %344 = arith.mulf %337, %343 : vector<32x32xf32>
    %345 = arith.truncf %344 : vector<32x32xf32> to vector<32x32xbf16>
    %346 = arith.truncf %338 : vector<32x32xf32> to vector<32x32xbf16>
    %347 = arith.truncf %339 : vector<32x32xf32> to vector<32x32xbf16>
    %348 = vector.extract_strided_slice %345 {offsets = [0, 0], sizes = [16, 32], strides = [1, 1]} : vector<32x32xbf16> to vector<16x32xbf16>
    %349 = vector.extract_strided_slice %346 {offsets = [0, 0], sizes = [16, 32], strides = [1, 1]} : vector<32x32xbf16> to vector<16x32xbf16>
    %350 = vector.extract_strided_slice %347 {offsets = [0, 0], sizes = [16, 32], strides = [1, 1]} : vector<32x32xbf16> to vector<16x32xbf16>
    %cst_122 = arith.constant 0.000000e+00 : f32
    %351 = vector.broadcast %cst_122 : f32 to vector<16x32xf32>
    %352 = vector.extract_strided_slice %348 {offsets = [0, 0], sizes = [16, 8], strides = [1, 1]} : vector<16x32xbf16> to vector<16x8xbf16>
    %353 = vector.extract_strided_slice %349 {offsets = [0, 0], sizes = [16, 8], strides = [1, 1]} : vector<16x32xbf16> to vector<16x8xbf16>
    %cst_123 = arith.constant dense<0.000000e+00> : vector<16x16xf32>
    %354 = tpu.matmul %352, %353, %cst_123 {dimension_numbers = #tpu.dot_dimension_numbers<[1], [1], [0], [0], [0, 0, 1, 0], [], []>} : vector<16x8xbf16>, vector<16x8xbf16>, vector<16x16xf32> -> vector<16x16xf32>
    %355 = vector.extract_strided_slice %340 {offsets = [0, 0, 0], sizes = [1, 16, 16], strides = [1, 1, 1]} : vector<4x16x16xf32> to vector<1x16x16xf32>
    %356 = vector.shape_cast %355 : vector<1x16x16xf32> to vector<16x16xf32>
    %357 = arith.addf %354, %356 : vector<16x16xf32>
    %cst_124 = arith.constant dense<0xFF800000> : vector<16xf32>
    %358 = vector.multi_reduction <maximumf>, %357, %cst_124 [1] : vector<16x16xf32> to vector<16xf32>
    %359 = vector.shape_cast %358 : vector<16xf32> to vector<16x1xf32>
    %360 = vector.broadcast %359 : vector<16x1xf32> to vector<16x16xf32>
    %361 = arith.subf %357, %360 : vector<16x16xf32>
    %362 = math.exp %361 : vector<16x16xf32>
    %cst_125 = arith.constant dense<0.000000e+00> : vector<16xf32>
    %363 = vector.multi_reduction <add>, %362, %cst_125 [1] : vector<16x16xf32> to vector<16xf32>
    %364 = vector.shape_cast %363 : vector<16xf32> to vector<16x1xf32>
    %365 = tpu.reciprocal %364 {approx = true} : vector<16x1xf32> -> vector<16x1xf32>
    %366 = vector.broadcast %365 : vector<16x1xf32> to vector<16x16xf32>
    %367 = arith.mulf %362, %366 : vector<16x16xf32>
    %368 = arith.truncf %367 : vector<16x16xf32> to vector<16x16xbf16>
    %369 = vector.extract_strided_slice %350 {offsets = [0, 0], sizes = [16, 8], strides = [1, 1]} : vector<16x32xbf16> to vector<16x8xbf16>
    %cst_126 = arith.constant dense<0.000000e+00> : vector<16x8xf32>
    %370 = tpu.matmul %368, %369, %cst_126 {dimension_numbers = #tpu.dot_dimension_numbers<[1], [0], [0], [1], [0, 0, 1, 1], [], []>} : vector<16x16xbf16>, vector<16x8xbf16>, vector<16x8xf32> -> vector<16x8xf32>
    %371 = arith.truncf %370 : vector<16x8xf32> to vector<16x8xbf16>
    %372 = vector.extract_strided_slice %341 {offsets = [0, 0], sizes = [8, 32], strides = [1, 1]} : vector<32x32xbf16> to vector<8x32xbf16>
    %cst_127 = arith.constant dense<0.000000e+00> : vector<16x32xf32>
    %373 = tpu.matmul %371, %372, %cst_127 {dimension_numbers = #tpu.dot_dimension_numbers<[1], [0], [0], [1], [0, 0, 1, 1], [], []>} : vector<16x8xbf16>, vector<8x32xbf16>, vector<16x32xf32> -> vector<16x32xf32>
    %374 = arith.addf %351, %373 : vector<16x32xf32>
    %375 = vector.extract_strided_slice %348 {offsets = [0, 8], sizes = [16, 8], strides = [1, 1]} : vector<16x32xbf16> to vector<16x8xbf16>
    %376 = vector.extract_strided_slice %349 {offsets = [0, 8], sizes = [16, 8], strides = [1, 1]} : vector<16x32xbf16> to vector<16x8xbf16>
    %cst_128 = arith.constant dense<0.000000e+00> : vector<16x16xf32>
    %377 = tpu.matmul %375, %376, %cst_128 {dimension_numbers = #tpu.dot_dimension_numbers<[1], [1], [0], [0], [0, 0, 1, 0], [], []>} : vector<16x8xbf16>, vector<16x8xbf16>, vector<16x16xf32> -> vector<16x16xf32>
    %378 = vector.extract_strided_slice %340 {offsets = [1, 0, 0], sizes = [1, 16, 16], strides = [1, 1, 1]} : vector<4x16x16xf32> to vector<1x16x16xf32>
    %379 = vector.shape_cast %378 : vector<1x16x16xf32> to vector<16x16xf32>
    %380 = arith.addf %377, %379 : vector<16x16xf32>
    %cst_129 = arith.constant dense<0xFF800000> : vector<16xf32>
    %381 = vector.multi_reduction <maximumf>, %380, %cst_129 [1] : vector<16x16xf32> to vector<16xf32>
    %382 = vector.shape_cast %381 : vector<16xf32> to vector<16x1xf32>
    %383 = vector.broadcast %382 : vector<16x1xf32> to vector<16x16xf32>
    %384 = arith.subf %380, %383 : vector<16x16xf32>
    %385 = math.exp %384 : vector<16x16xf32>
    %cst_130 = arith.constant dense<0.000000e+00> : vector<16xf32>
    %386 = vector.multi_reduction <add>, %385, %cst_130 [1] : vector<16x16xf32> to vector<16xf32>
    %387 = vector.shape_cast %386 : vector<16xf32> to vector<16x1xf32>
    %388 = tpu.reciprocal %387 {approx = true} : vector<16x1xf32> -> vector<16x1xf32>
    %389 = vector.broadcast %388 : vector<16x1xf32> to vector<16x16xf32>
    %390 = arith.mulf %385, %389 : vector<16x16xf32>
    %391 = arith.truncf %390 : vector<16x16xf32> to vector<16x16xbf16>
    %392 = vector.extract_strided_slice %350 {offsets = [0, 8], sizes = [16, 8], strides = [1, 1]} : vector<16x32xbf16> to vector<16x8xbf16>
    %cst_131 = arith.constant dense<0.000000e+00> : vector<16x8xf32>
    %393 = tpu.matmul %391, %392, %cst_131 {dimension_numbers = #tpu.dot_dimension_numbers<[1], [0], [0], [1], [0, 0, 1, 1], [], []>} : vector<16x16xbf16>, vector<16x8xbf16>, vector<16x8xf32> -> vector<16x8xf32>
    %394 = arith.truncf %393 : vector<16x8xf32> to vector<16x8xbf16>
    %395 = vector.extract_strided_slice %341 {offsets = [8, 0], sizes = [8, 32], strides = [1, 1]} : vector<32x32xbf16> to vector<8x32xbf16>
    %cst_132 = arith.constant dense<0.000000e+00> : vector<16x32xf32>
    %396 = tpu.matmul %394, %395, %cst_132 {dimension_numbers = #tpu.dot_dimension_numbers<[1], [0], [0], [1], [0, 0, 1, 1], [], []>} : vector<16x8xbf16>, vector<8x32xbf16>, vector<16x32xf32> -> vector<16x32xf32>
    %397 = arith.addf %374, %396 : vector<16x32xf32>
    %398 = vector.extract_strided_slice %348 {offsets = [0, 16], sizes = [16, 8], strides = [1, 1]} : vector<16x32xbf16> to vector<16x8xbf16>
    %399 = vector.extract_strided_slice %349 {offsets = [0, 16], sizes = [16, 8], strides = [1, 1]} : vector<16x32xbf16> to vector<16x8xbf16>
    %cst_133 = arith.constant dense<0.000000e+00> : vector<16x16xf32>
    %400 = tpu.matmul %398, %399, %cst_133 {dimension_numbers = #tpu.dot_dimension_numbers<[1], [1], [0], [0], [0, 0, 1, 0], [], []>} : vector<16x8xbf16>, vector<16x8xbf16>, vector<16x16xf32> -> vector<16x16xf32>
    %401 = vector.extract_strided_slice %340 {offsets = [2, 0, 0], sizes = [1, 16, 16], strides = [1, 1, 1]} : vector<4x16x16xf32> to vector<1x16x16xf32>
    %402 = vector.shape_cast %401 : vector<1x16x16xf32> to vector<16x16xf32>
    %403 = arith.addf %400, %402 : vector<16x16xf32>
    %cst_134 = arith.constant dense<0xFF800000> : vector<16xf32>
    %404 = vector.multi_reduction <maximumf>, %403, %cst_134 [1] : vector<16x16xf32> to vector<16xf32>
    %405 = vector.shape_cast %404 : vector<16xf32> to vector<16x1xf32>
    %406 = vector.broadcast %405 : vector<16x1xf32> to vector<16x16xf32>
    %407 = arith.subf %403, %406 : vector<16x16xf32>
    %408 = math.exp %407 : vector<16x16xf32>
    %cst_135 = arith.constant dense<0.000000e+00> : vector<16xf32>
    %409 = vector.multi_reduction <add>, %408, %cst_135 [1] : vector<16x16xf32> to vector<16xf32>
    %410 = vector.shape_cast %409 : vector<16xf32> to vector<16x1xf32>
    %411 = tpu.reciprocal %410 {approx = true} : vector<16x1xf32> -> vector<16x1xf32>
    %412 = vector.broadcast %411 : vector<16x1xf32> to vector<16x16xf32>
    %413 = arith.mulf %408, %412 : vector<16x16xf32>
    %414 = arith.truncf %413 : vector<16x16xf32> to vector<16x16xbf16>
    %415 = vector.extract_strided_slice %350 {offsets = [0, 16], sizes = [16, 8], strides = [1, 1]} : vector<16x32xbf16> to vector<16x8xbf16>
    %cst_136 = arith.constant dense<0.000000e+00> : vector<16x8xf32>
    %416 = tpu.matmul %414, %415, %cst_136 {dimension_numbers = #tpu.dot_dimension_numbers<[1], [0], [0], [1], [0, 0, 1, 1], [], []>} : vector<16x16xbf16>, vector<16x8xbf16>, vector<16x8xf32> -> vector<16x8xf32>
    %417 = arith.truncf %416 : vector<16x8xf32> to vector<16x8xbf16>
    %418 = vector.extract_strided_slice %341 {offsets = [16, 0], sizes = [8, 32], strides = [1, 1]} : vector<32x32xbf16> to vector<8x32xbf16>
    %cst_137 = arith.constant dense<0.000000e+00> : vector<16x32xf32>
    %419 = tpu.matmul %417, %418, %cst_137 {dimension_numbers = #tpu.dot_dimension_numbers<[1], [0], [0], [1], [0, 0, 1, 1], [], []>} : vector<16x8xbf16>, vector<8x32xbf16>, vector<16x32xf32> -> vector<16x32xf32>
    %420 = arith.addf %397, %419 : vector<16x32xf32>
    %421 = vector.extract_strided_slice %348 {offsets = [0, 24], sizes = [16, 8], strides = [1, 1]} : vector<16x32xbf16> to vector<16x8xbf16>
    %422 = vector.extract_strided_slice %349 {offsets = [0, 24], sizes = [16, 8], strides = [1, 1]} : vector<16x32xbf16> to vector<16x8xbf16>
    %cst_138 = arith.constant dense<0.000000e+00> : vector<16x16xf32>
    %423 = tpu.matmul %421, %422, %cst_138 {dimension_numbers = #tpu.dot_dimension_numbers<[1], [1], [0], [0], [0, 0, 1, 0], [], []>} : vector<16x8xbf16>, vector<16x8xbf16>, vector<16x16xf32> -> vector<16x16xf32>
    %424 = vector.extract_strided_slice %340 {offsets = [3, 0, 0], sizes = [1, 16, 16], strides = [1, 1, 1]} : vector<4x16x16xf32> to vector<1x16x16xf32>
    %425 = vector.shape_cast %424 : vector<1x16x16xf32> to vector<16x16xf32>
    %426 = arith.addf %423, %425 : vector<16x16xf32>
    %cst_139 = arith.constant dense<0xFF800000> : vector<16xf32>
    %427 = vector.multi_reduction <maximumf>, %426, %cst_139 [1] : vector<16x16xf32> to vector<16xf32>
    %428 = vector.shape_cast %427 : vector<16xf32> to vector<16x1xf32>
    %429 = vector.broadcast %428 : vector<16x1xf32> to vector<16x16xf32>
    %430 = arith.subf %426, %429 : vector<16x16xf32>
    %431 = math.exp %430 : vector<16x16xf32>
    %cst_140 = arith.constant dense<0.000000e+00> : vector<16xf32>
    %432 = vector.multi_reduction <add>, %431, %cst_140 [1] : vector<16x16xf32> to vector<16xf32>
    %433 = vector.shape_cast %432 : vector<16xf32> to vector<16x1xf32>
    %434 = tpu.reciprocal %433 {approx = true} : vector<16x1xf32> -> vector<16x1xf32>
    %435 = vector.broadcast %434 : vector<16x1xf32> to vector<16x16xf32>
    %436 = arith.mulf %431, %435 : vector<16x16xf32>
    %437 = arith.truncf %436 : vector<16x16xf32> to vector<16x16xbf16>
    %438 = vector.extract_strided_slice %350 {offsets = [0, 24], sizes = [16, 8], strides = [1, 1]} : vector<16x32xbf16> to vector<16x8xbf16>
    %cst_141 = arith.constant dense<0.000000e+00> : vector<16x8xf32>
    %439 = tpu.matmul %437, %438, %cst_141 {dimension_numbers = #tpu.dot_dimension_numbers<[1], [0], [0], [1], [0, 0, 1, 1], [], []>} : vector<16x16xbf16>, vector<16x8xbf16>, vector<16x8xf32> -> vector<16x8xf32>
    %440 = arith.truncf %439 : vector<16x8xf32> to vector<16x8xbf16>
    %441 = vector.extract_strided_slice %341 {offsets = [24, 0], sizes = [8, 32], strides = [1, 1]} : vector<32x32xbf16> to vector<8x32xbf16>
    %cst_142 = arith.constant dense<0.000000e+00> : vector<16x32xf32>
    %442 = tpu.matmul %440, %441, %cst_142 {dimension_numbers = #tpu.dot_dimension_numbers<[1], [0], [0], [1], [0, 0, 1, 1], [], []>} : vector<16x8xbf16>, vector<8x32xbf16>, vector<16x32xf32> -> vector<16x32xf32>
    %443 = arith.addf %420, %442 : vector<16x32xf32>
    %444 = vector.extract_strided_slice %345 {offsets = [16, 0], sizes = [16, 32], strides = [1, 1]} : vector<32x32xbf16> to vector<16x32xbf16>
    %445 = vector.extract_strided_slice %346 {offsets = [16, 0], sizes = [16, 32], strides = [1, 1]} : vector<32x32xbf16> to vector<16x32xbf16>
    %446 = vector.extract_strided_slice %347 {offsets = [16, 0], sizes = [16, 32], strides = [1, 1]} : vector<32x32xbf16> to vector<16x32xbf16>
    %cst_143 = arith.constant 0.000000e+00 : f32
    %447 = vector.broadcast %cst_143 : f32 to vector<16x32xf32>
    %448 = vector.extract_strided_slice %444 {offsets = [0, 0], sizes = [16, 8], strides = [1, 1]} : vector<16x32xbf16> to vector<16x8xbf16>
    %449 = vector.extract_strided_slice %445 {offsets = [0, 0], sizes = [16, 8], strides = [1, 1]} : vector<16x32xbf16> to vector<16x8xbf16>
    %cst_144 = arith.constant dense<0.000000e+00> : vector<16x16xf32>
    %450 = tpu.matmul %448, %449, %cst_144 {dimension_numbers = #tpu.dot_dimension_numbers<[1], [1], [0], [0], [0, 0, 1, 0], [], []>} : vector<16x8xbf16>, vector<16x8xbf16>, vector<16x16xf32> -> vector<16x16xf32>
    %451 = vector.extract_strided_slice %340 {offsets = [0, 0, 0], sizes = [1, 16, 16], strides = [1, 1, 1]} : vector<4x16x16xf32> to vector<1x16x16xf32>
    %452 = vector.shape_cast %451 : vector<1x16x16xf32> to vector<16x16xf32>
    %453 = arith.addf %450, %452 : vector<16x16xf32>
    %cst_145 = arith.constant dense<0xFF800000> : vector<16xf32>
    %454 = vector.multi_reduction <maximumf>, %453, %cst_145 [1] : vector<16x16xf32> to vector<16xf32>
    %455 = vector.shape_cast %454 : vector<16xf32> to vector<16x1xf32>
    %456 = vector.broadcast %455 : vector<16x1xf32> to vector<16x16xf32>
    %457 = arith.subf %453, %456 : vector<16x16xf32>
    %458 = math.exp %457 : vector<16x16xf32>
    %cst_146 = arith.constant dense<0.000000e+00> : vector<16xf32>
    %459 = vector.multi_reduction <add>, %458, %cst_146 [1] : vector<16x16xf32> to vector<16xf32>
    %460 = vector.shape_cast %459 : vector<16xf32> to vector<16x1xf32>
    %461 = tpu.reciprocal %460 {approx = true} : vector<16x1xf32> -> vector<16x1xf32>
    %462 = vector.broadcast %461 : vector<16x1xf32> to vector<16x16xf32>
    %463 = arith.mulf %458, %462 : vector<16x16xf32>
    %464 = arith.truncf %463 : vector<16x16xf32> to vector<16x16xbf16>
    %465 = vector.extract_strided_slice %446 {offsets = [0, 0], sizes = [16, 8], strides = [1, 1]} : vector<16x32xbf16> to vector<16x8xbf16>
    %cst_147 = arith.constant dense<0.000000e+00> : vector<16x8xf32>
    %466 = tpu.matmul %464, %465, %cst_147 {dimension_numbers = #tpu.dot_dimension_numbers<[1], [0], [0], [1], [0, 0, 1, 1], [], []>} : vector<16x16xbf16>, vector<16x8xbf16>, vector<16x8xf32> -> vector<16x8xf32>
    %467 = arith.truncf %466 : vector<16x8xf32> to vector<16x8xbf16>
    %468 = vector.extract_strided_slice %341 {offsets = [0, 0], sizes = [8, 32], strides = [1, 1]} : vector<32x32xbf16> to vector<8x32xbf16>
    %cst_148 = arith.constant dense<0.000000e+00> : vector<16x32xf32>
    %469 = tpu.matmul %467, %468, %cst_148 {dimension_numbers = #tpu.dot_dimension_numbers<[1], [0], [0], [1], [0, 0, 1, 1], [], []>} : vector<16x8xbf16>, vector<8x32xbf16>, vector<16x32xf32> -> vector<16x32xf32>
    %470 = arith.addf %447, %469 : vector<16x32xf32>
    %471 = vector.extract_strided_slice %444 {offsets = [0, 8], sizes = [16, 8], strides = [1, 1]} : vector<16x32xbf16> to vector<16x8xbf16>
    %472 = vector.extract_strided_slice %445 {offsets = [0, 8], sizes = [16, 8], strides = [1, 1]} : vector<16x32xbf16> to vector<16x8xbf16>
    %cst_149 = arith.constant dense<0.000000e+00> : vector<16x16xf32>
    %473 = tpu.matmul %471, %472, %cst_149 {dimension_numbers = #tpu.dot_dimension_numbers<[1], [1], [0], [0], [0, 0, 1, 0], [], []>} : vector<16x8xbf16>, vector<16x8xbf16>, vector<16x16xf32> -> vector<16x16xf32>
    %474 = vector.extract_strided_slice %340 {offsets = [1, 0, 0], sizes = [1, 16, 16], strides = [1, 1, 1]} : vector<4x16x16xf32> to vector<1x16x16xf32>
    %475 = vector.shape_cast %474 : vector<1x16x16xf32> to vector<16x16xf32>
    %476 = arith.addf %473, %475 : vector<16x16xf32>
    %cst_150 = arith.constant dense<0xFF800000> : vector<16xf32>
    %477 = vector.multi_reduction <maximumf>, %476, %cst_150 [1] : vector<16x16xf32> to vector<16xf32>
    %478 = vector.shape_cast %477 : vector<16xf32> to vector<16x1xf32>
    %479 = vector.broadcast %478 : vector<16x1xf32> to vector<16x16xf32>
    %480 = arith.subf %476, %479 : vector<16x16xf32>
    %481 = math.exp %480 : vector<16x16xf32>
    %cst_151 = arith.constant dense<0.000000e+00> : vector<16xf32>
    %482 = vector.multi_reduction <add>, %481, %cst_151 [1] : vector<16x16xf32> to vector<16xf32>
    %483 = vector.shape_cast %482 : vector<16xf32> to vector<16x1xf32>
    %484 = tpu.reciprocal %483 {approx = true} : vector<16x1xf32> -> vector<16x1xf32>
    %485 = vector.broadcast %484 : vector<16x1xf32> to vector<16x16xf32>
    %486 = arith.mulf %481, %485 : vector<16x16xf32>
    %487 = arith.truncf %486 : vector<16x16xf32> to vector<16x16xbf16>
    %488 = vector.extract_strided_slice %446 {offsets = [0, 8], sizes = [16, 8], strides = [1, 1]} : vector<16x32xbf16> to vector<16x8xbf16>
    %cst_152 = arith.constant dense<0.000000e+00> : vector<16x8xf32>
    %489 = tpu.matmul %487, %488, %cst_152 {dimension_numbers = #tpu.dot_dimension_numbers<[1], [0], [0], [1], [0, 0, 1, 1], [], []>} : vector<16x16xbf16>, vector<16x8xbf16>, vector<16x8xf32> -> vector<16x8xf32>
    %490 = arith.truncf %489 : vector<16x8xf32> to vector<16x8xbf16>
    %491 = vector.extract_strided_slice %341 {offsets = [8, 0], sizes = [8, 32], strides = [1, 1]} : vector<32x32xbf16> to vector<8x32xbf16>
    %cst_153 = arith.constant dense<0.000000e+00> : vector<16x32xf32>
    %492 = tpu.matmul %490, %491, %cst_153 {dimension_numbers = #tpu.dot_dimension_numbers<[1], [0], [0], [1], [0, 0, 1, 1], [], []>} : vector<16x8xbf16>, vector<8x32xbf16>, vector<16x32xf32> -> vector<16x32xf32>
    %493 = arith.addf %470, %492 : vector<16x32xf32>
    %494 = vector.extract_strided_slice %444 {offsets = [0, 16], sizes = [16, 8], strides = [1, 1]} : vector<16x32xbf16> to vector<16x8xbf16>
    %495 = vector.extract_strided_slice %445 {offsets = [0, 16], sizes = [16, 8], strides = [1, 1]} : vector<16x32xbf16> to vector<16x8xbf16>
    %cst_154 = arith.constant dense<0.000000e+00> : vector<16x16xf32>
    %496 = tpu.matmul %494, %495, %cst_154 {dimension_numbers = #tpu.dot_dimension_numbers<[1], [1], [0], [0], [0, 0, 1, 0], [], []>} : vector<16x8xbf16>, vector<16x8xbf16>, vector<16x16xf32> -> vector<16x16xf32>
    %497 = vector.extract_strided_slice %340 {offsets = [2, 0, 0], sizes = [1, 16, 16], strides = [1, 1, 1]} : vector<4x16x16xf32> to vector<1x16x16xf32>
    %498 = vector.shape_cast %497 : vector<1x16x16xf32> to vector<16x16xf32>
    %499 = arith.addf %496, %498 : vector<16x16xf32>
    %cst_155 = arith.constant dense<0xFF800000> : vector<16xf32>
    %500 = vector.multi_reduction <maximumf>, %499, %cst_155 [1] : vector<16x16xf32> to vector<16xf32>
    %501 = vector.shape_cast %500 : vector<16xf32> to vector<16x1xf32>
    %502 = vector.broadcast %501 : vector<16x1xf32> to vector<16x16xf32>
    %503 = arith.subf %499, %502 : vector<16x16xf32>
    %504 = math.exp %503 : vector<16x16xf32>
    %cst_156 = arith.constant dense<0.000000e+00> : vector<16xf32>
    %505 = vector.multi_reduction <add>, %504, %cst_156 [1] : vector<16x16xf32> to vector<16xf32>
    %506 = vector.shape_cast %505 : vector<16xf32> to vector<16x1xf32>
    %507 = tpu.reciprocal %506 {approx = true} : vector<16x1xf32> -> vector<16x1xf32>
    %508 = vector.broadcast %507 : vector<16x1xf32> to vector<16x16xf32>
    %509 = arith.mulf %504, %508 : vector<16x16xf32>
    %510 = arith.truncf %509 : vector<16x16xf32> to vector<16x16xbf16>
    %511 = vector.extract_strided_slice %446 {offsets = [0, 16], sizes = [16, 8], strides = [1, 1]} : vector<16x32xbf16> to vector<16x8xbf16>
    %cst_157 = arith.constant dense<0.000000e+00> : vector<16x8xf32>
    %512 = tpu.matmul %510, %511, %cst_157 {dimension_numbers = #tpu.dot_dimension_numbers<[1], [0], [0], [1], [0, 0, 1, 1], [], []>} : vector<16x16xbf16>, vector<16x8xbf16>, vector<16x8xf32> -> vector<16x8xf32>
    %513 = arith.truncf %512 : vector<16x8xf32> to vector<16x8xbf16>
    %514 = vector.extract_strided_slice %341 {offsets = [16, 0], sizes = [8, 32], strides = [1, 1]} : vector<32x32xbf16> to vector<8x32xbf16>
    %cst_158 = arith.constant dense<0.000000e+00> : vector<16x32xf32>
    %515 = tpu.matmul %513, %514, %cst_158 {dimension_numbers = #tpu.dot_dimension_numbers<[1], [0], [0], [1], [0, 0, 1, 1], [], []>} : vector<16x8xbf16>, vector<8x32xbf16>, vector<16x32xf32> -> vector<16x32xf32>
    %516 = arith.addf %493, %515 : vector<16x32xf32>
    %517 = vector.extract_strided_slice %444 {offsets = [0, 24], sizes = [16, 8], strides = [1, 1]} : vector<16x32xbf16> to vector<16x8xbf16>
    %518 = vector.extract_strided_slice %445 {offsets = [0, 24], sizes = [16, 8], strides = [1, 1]} : vector<16x32xbf16> to vector<16x8xbf16>
    %cst_159 = arith.constant dense<0.000000e+00> : vector<16x16xf32>
    %519 = tpu.matmul %517, %518, %cst_159 {dimension_numbers = #tpu.dot_dimension_numbers<[1], [1], [0], [0], [0, 0, 1, 0], [], []>} : vector<16x8xbf16>, vector<16x8xbf16>, vector<16x16xf32> -> vector<16x16xf32>
    %520 = vector.extract_strided_slice %340 {offsets = [3, 0, 0], sizes = [1, 16, 16], strides = [1, 1, 1]} : vector<4x16x16xf32> to vector<1x16x16xf32>
    %521 = vector.shape_cast %520 : vector<1x16x16xf32> to vector<16x16xf32>
    %522 = arith.addf %519, %521 : vector<16x16xf32>
    %cst_160 = arith.constant dense<0xFF800000> : vector<16xf32>
    %523 = vector.multi_reduction <maximumf>, %522, %cst_160 [1] : vector<16x16xf32> to vector<16xf32>
    %524 = vector.shape_cast %523 : vector<16xf32> to vector<16x1xf32>
    %525 = vector.broadcast %524 : vector<16x1xf32> to vector<16x16xf32>
    %526 = arith.subf %522, %525 : vector<16x16xf32>
    %527 = math.exp %526 : vector<16x16xf32>
    %cst_161 = arith.constant dense<0.000000e+00> : vector<16xf32>
    %528 = vector.multi_reduction <add>, %527, %cst_161 [1] : vector<16x16xf32> to vector<16xf32>
    %529 = vector.shape_cast %528 : vector<16xf32> to vector<16x1xf32>
    %530 = tpu.reciprocal %529 {approx = true} : vector<16x1xf32> -> vector<16x1xf32>
    %531 = vector.broadcast %530 : vector<16x1xf32> to vector<16x16xf32>
    %532 = arith.mulf %527, %531 : vector<16x16xf32>
    %533 = arith.truncf %532 : vector<16x16xf32> to vector<16x16xbf16>
    %534 = vector.extract_strided_slice %446 {offsets = [0, 24], sizes = [16, 8], strides = [1, 1]} : vector<16x32xbf16> to vector<16x8xbf16>
    %cst_162 = arith.constant dense<0.000000e+00> : vector<16x8xf32>
    %535 = tpu.matmul %533, %534, %cst_162 {dimension_numbers = #tpu.dot_dimension_numbers<[1], [0], [0], [1], [0, 0, 1, 1], [], []>} : vector<16x16xbf16>, vector<16x8xbf16>, vector<16x8xf32> -> vector<16x8xf32>
    %536 = arith.truncf %535 : vector<16x8xf32> to vector<16x8xbf16>
    %537 = vector.extract_strided_slice %341 {offsets = [24, 0], sizes = [8, 32], strides = [1, 1]} : vector<32x32xbf16> to vector<8x32xbf16>
    %cst_163 = arith.constant dense<0.000000e+00> : vector<16x32xf32>
    %538 = tpu.matmul %536, %537, %cst_163 {dimension_numbers = #tpu.dot_dimension_numbers<[1], [0], [0], [1], [0, 0, 1, 1], [], []>} : vector<16x8xbf16>, vector<8x32xbf16>, vector<16x32xf32> -> vector<16x32xf32>
    %539 = arith.addf %516, %538 : vector<16x32xf32>
    %540 = tpu.concatenate %443, %539 in 0 : vector<16x32xf32>, vector<16x32xf32> -> vector<32x32xf32>
    %541 = vector.broadcast %342 : vector<1x32xf32> to vector<32x32xf32>
    %542 = arith.addf %540, %541 : vector<32x32xf32>
    %543 = arith.addf %306, %542 : vector<32x32xf32>
    %c0_164 = arith.constant 0 : index
    %c0_165 = arith.constant 0 : index
    %544 = vector.load %arg6[%c0_164, %c0_165] : memref<1x32xf32, #tpu.memory_space<vmem>>, vector<1x32xf32>
    %c0_166 = arith.constant 0 : index
    %c0_167 = arith.constant 0 : index
    %545 = vector.load %arg7[%c0_166, %c0_167] : memref<1x32xf32, #tpu.memory_space<vmem>>, vector<1x32xf32>
    %cst_168 = arith.constant dense<0.000000e+00> : vector<32xf32>
    %546 = vector.multi_reduction <add>, %543, %cst_168 [1] : vector<32x32xf32> to vector<32xf32>
    %547 = vector.shape_cast %546 : vector<32xf32> to vector<32x1xf32>
    %cst_169 = arith.constant 3.200000e+01 : f32
    %548 = vector.broadcast %cst_169 : f32 to vector<32x1xf32>
    %549 = arith.divf %547, %548 : vector<32x1xf32>
    %550 = vector.broadcast %549 : vector<32x1xf32> to vector<32x32xf32>
    %551 = arith.subf %543, %550 : vector<32x32xf32>
    %552 = arith.mulf %551, %551 : vector<32x32xf32>
    %cst_170 = arith.constant dense<0.000000e+00> : vector<32xf32>
    %553 = vector.multi_reduction <add>, %552, %cst_170 [1] : vector<32x32xf32> to vector<32xf32>
    %554 = vector.shape_cast %553 : vector<32xf32> to vector<32x1xf32>
    %cst_171 = arith.constant 3.200000e+01 : f32
    %555 = vector.broadcast %cst_171 : f32 to vector<32x1xf32>
    %556 = arith.divf %554, %555 : vector<32x1xf32>
    %557 = vector.broadcast %549 : vector<32x1xf32> to vector<32x32xf32>
    %558 = arith.subf %543, %557 : vector<32x32xf32>
    %cst_172 = arith.constant 9.99999974E-6 : f32
    %559 = vector.broadcast %cst_172 : f32 to vector<32x1xf32>
    %560 = arith.addf %556, %559 : vector<32x1xf32>
    %561 = math.rsqrt %560 : vector<32x1xf32>
    %562 = vector.broadcast %561 : vector<32x1xf32> to vector<32x32xf32>
    %563 = arith.mulf %558, %562 : vector<32x32xf32>
    %564 = vector.broadcast %544 : vector<1x32xf32> to vector<32x32xf32>
    %565 = arith.mulf %563, %564 : vector<32x32xf32>
    %566 = vector.broadcast %545 : vector<1x32xf32> to vector<32x32xf32>
    %567 = arith.addf %565, %566 : vector<32x32xf32>
    %568 = arith.truncf %567 : vector<32x32xf32> to vector<32x32xbf16>
    %c0_173 = arith.constant 0 : index
    %c0_174 = arith.constant 0 : index
    %569 = vector.load %arg26[%c0_173, %c0_174] : memref<32x64xbf16, #tpu.memory_space<vmem>>, vector<32x64xbf16>
    %cst_175 = arith.constant dense<0.000000e+00> : vector<32x64xf32>
    %570 = tpu.matmul %568, %569, %cst_175 {dimension_numbers = #tpu.dot_dimension_numbers<[1], [0], [0], [1], [0, 0, 1, 1], [], []>} : vector<32x32xbf16>, vector<32x64xbf16>, vector<32x64xf32> -> vector<32x64xf32>
    %c0_176 = arith.constant 0 : index
    %c0_177 = arith.constant 0 : index
    %571 = vector.load %arg27[%c0_176, %c0_177] : memref<1x64xf32, #tpu.memory_space<vmem>>, vector<1x64xf32>
    %572 = vector.broadcast %571 : vector<1x64xf32> to vector<32x64xf32>
    %573 = arith.addf %570, %572 : vector<32x64xf32>
    %cst_178 = arith.constant 0.000000e+00 : f32
    %574 = vector.broadcast %cst_178 : f32 to vector<32x64xf32>
    %575 = arith.maximumf %573, %574 : vector<32x64xf32>
    %576 = arith.truncf %575 : vector<32x64xf32> to vector<32x64xbf16>
    %c0_179 = arith.constant 0 : index
    %c0_180 = arith.constant 0 : index
    %577 = vector.load %arg28[%c0_179, %c0_180] : memref<64x32xbf16, #tpu.memory_space<vmem>>, vector<64x32xbf16>
    %cst_181 = arith.constant dense<0.000000e+00> : vector<32x32xf32>
    %578 = tpu.matmul %576, %577, %cst_181 {dimension_numbers = #tpu.dot_dimension_numbers<[1], [0], [0], [1], [0, 0, 1, 1], [], []>} : vector<32x64xbf16>, vector<64x32xbf16>, vector<32x32xf32> -> vector<32x32xf32>
    %579 = arith.addf %543, %578 : vector<32x32xf32>
    %c0_182 = arith.constant 0 : index
    %c0_183 = arith.constant 0 : index
    %580 = vector.load %arg29[%c0_182, %c0_183] : memref<1x32xf32, #tpu.memory_space<vmem>>, vector<1x32xf32>
    %581 = vector.broadcast %580 : vector<1x32xf32> to vector<32x32xf32>
    %582 = arith.addf %579, %581 : vector<32x32xf32>
    %c0_184 = arith.constant 0 : index
    %c0_185 = arith.constant 0 : index
    %583 = vector.load %arg30[%c0_184, %c0_185] : memref<32x32xf32, #tpu.memory_space<vmem>>, vector<32x32xf32>
    tpu.vector_store %arg30[%c0_184, %c0_185], %582 {strides = array<i32>} : memref<32x32xf32, #tpu.memory_space<vmem>>, vector<32x32xf32>,
    return
  }
}

</mosaic_0001>

<bundles_post_ra>
// kernel: encoder_layer.1
= control target key start
LH: loop header
LB: loop body
LE: loop exit
PB: predicated region body
PF: predicated region fallthrough
CT: control target
= control target key end

     0   :  { %s4818_s6 = smov 1   ;;  %s4819_s10 = smov 2   ;;  %s5790_s0 = inlined_call_operand.smem [shape: u32[31], index: -1, kind: input, shape index: {}] }
   0x1   :  { %s4873_s5 = sld [smem:[%s5790_s0]]   ;;  %s4820_s14 = smov 3  }
   0x2   :  { %s4878_s9 = sld [smem:[%s5790_s0 + %s4818_s6]]   ;;  %s4821_s18 = smov 4  }
   0x3   :  { %s4883_s13 = sld [smem:[%s5790_s0 + %s4819_s10]]   ;;  %s4822_s22 = smov 5  }
   0x4   :  { %s4888_s17 = sld [smem:[%s5790_s0 + %s4820_s14]]   ;;  %s4823_s26 = smov 6  }
   0x5   :  { %s4893_s21 = sld [smem:[%s5790_s0 + %s4821_s18]]   ;;  %s4824_s30 = smov 7  }
   0x6   :  { %s4898_s25 = sld [smem:[%s5790_s0 + %s4822_s22]]   ;;  %s4825_s4 = smov 8  }
   0x7   :  { %s4903_s29 = sld [smem:[%s5790_s0 + %s4823_s26]]   ;;  %s4826_s10 = smov 9  }
   0x8   :  { %s4908_s3 = sld [smem:[%s5790_s0 + %s4824_s30]]   ;;  %s4827_s15 = smov 10  }
   0x9   :  { %s4913_s8 = sld [smem:[%s5790_s0 + %s4825_s4]]   ;;  %s4828_s20 = smov 11  }
   0xa   :  { %s4918_s14 = sld [smem:[%s5790_s0 + %s4826_s10]]   ;;  %s4829_s26 = smov 12  }
   0xb   :  { %s4923_s19 = sld [smem:[%s5790_s0 + %s4827_s15]]   ;;  %s4830_s1 = smov 13  }
   0xc   :  { %s4928_s24 = sld [smem:[%s5790_s0 + %s4828_s20]]   ;;  %s4831_s7 = smov 14  }
   0xd   :  { %5799 = sst [smem:[#allocation12_spill]] %s4903_s29  ;;  %s4832_s15 = smov 15  }
   0xe   :  { %5800 = sst [smem:[#allocation13_spill]] %s4908_s3  ;;  %s4833_s22 = smov 16  }
   0xf   :  { %5801 = sst [smem:[#allocation14_spill]] %s4913_s8  ;;  %s4834_s28 = smov 17  }
  0x10   :  { %5802 = sst [smem:[#allocation15_spill]] %s4918_s14 }
  0x11   :  { %s4933_s30 = sld [smem:[%s5790_s0 + %s4829_s26]]  }
  0x12   :  { %s4938_s6 = sld [smem:[%s5790_s0 + %s4830_s1]]  }
  0x13   :  { %s4943_s12 = sld [smem:[%s5790_s0 + %s4831_s7]]   ;;  %s4835_s7 = smov 18  }
  0x14   :  { %s4948_s20 = sld [smem:[%s5790_s0 + %s4832_s15]]   ;;  %s4836_s15 = smov 19  }
  0x15   :  { %s4953_s27 = sld [smem:[%s5790_s0 + %s4833_s22]]   ;;  %s4837_s22 = smov 20  }
  0x16   :  { %s4958_s4 = sld [smem:[%s5790_s0 + %s4834_s28]]   ;;  %s4838_s28 = smov 21  }
  0x17   :  { %s4963_s14 = sld [smem:[%s5790_s0 + %s4835_s7]]   ;;  %s4839_s7 = smov 22  }
  0x18   :  { %s4968_s8 = sld [smem:[%s5790_s0 + %s4836_s15]]   ;;  %s4840_s15 = smov 23  }
  0x19   :  { %s4973_s3 = sld [smem:[%s5790_s0 + %s4837_s22]]   ;;  %s4841_s22 = smov 24  }
  0x1a   :  { %5803 = sst [smem:[#allocation16_spill]] %s4948_s20 }
  0x1b   :  { %s4983_s29 = sld [smem:[%s5790_s0 + %s4839_s7]]   ;;  %s4843_s7 = smov 26  }
  0x1c   :  { %5804 = sst [smem:[#allocation17_spill]] %s4958_s4 }
  0x1d   :  { %s4978_s4 = sld [smem:[%s5790_s0 + %s4838_s28]]   ;;  %s4842_s28 = smov 25  }
  0x1e   :  { %5805 = sst [smem:[#allocation18_spill]] %s4968_s8 }
  0x1f   :  { %s4988_s8 = sld [smem:[%s5790_s0 + %s4840_s15]]   ;;  %s4844_s15 = smov 27  }
  0x20   :  { %s4993_s20 = sld [smem:[%s5790_s0 + %s4841_s22]]   ;;  %s4845_s22 = smov 28  }
  0x21   :  { %5807 = sst [smem:[#allocation20_spill]] %s4983_s29 }
  0x22   :  { %s5003_s29 = sld [smem:[%s5790_s0 + %s4843_s7]]   ;;  %s4847_s7 = smov 30  }
  0x23   :  { %5806 = sst [smem:[#allocation19_spill]] %s4978_s4 }
  0x24   :  { %s4998_s4 = sld [smem:[%s5790_s0 + %s4842_s28]]   ;;  %s4846_s28 = smov 29  }
  0x25   :  { %5808 = sst [smem:[#allocation21_spill]] %s4988_s8 }
  0x26   :  { %5809 = sst [smem:[#allocation22_spill]] %s4993_s20 }
  0x27   :  { %s5008_s8 = sld [smem:[%s5790_s0 + %s4844_s15]]  }
  0x28   :  { %5811 = sst [smem:[#allocation24_spill]] %s5003_s29 }
  0x29   :  { %s5013_s20 = sld [smem:[%s5790_s0 + %s4845_s22]]  }
  0x2a   :  { %5810 = sst [smem:[#allocation23_spill]] %s4998_s4 }
  0x2b   :  { %s5018_s4 = sld [smem:[%s5790_s0 + %s4846_s28]]  }
  0x2c   :  { %s5023_s29 = sld [smem:[%s5790_s0 + %s4847_s7]]  }
  0x2d   :  { %66 = vsyncpa [#allocation3], 0 }
  0x2e   :  { %67 = vsyncpa [#allocation5], 0 }
  0x2f   :  { %68 = vsyncpa [#allocation8], 0  ;;  %s4848_s15 = smov [#allocation4]   ;;  %s4849_s18 = smov [#allocation2]  }
  0x30   :  { %s123_s16 = sshll.u32 %s4848_s15, 4  ;;  %s111_s22 = sshll.u32 %s4849_s18, 4  ;;  %s124_s16 = int_to_ptr.vmem [resolvable:$true] %s123_s16  ;;  %s112_s22 = int_to_ptr.vmem [resolvable:$true] %s111_s22 }
  0x31   :  { %s4740_s23 = scalar_lea.vmem %s124_s16, 16  ;;  %s4744_s26 = scalar_lea.vmem %s124_s16, 32 }
  0x32   :  { %p4741_p0 = scmp.ne.s32.totalorder %s124_s16, %s4740_s23  ;;  %p4745_p1 = scmp.lt.s32.totalorder %s124_s16, %s124_s16 }
  0x33   :  { %p4746_p2 = scmp.lt.s32.totalorder %s4744_s26, %s4740_s23 }
  0x35   :  { %p4747_p3 = por %p4746_p2, %p4745_p1 }
  0x37   :  { %p4748_p4 = pnand %p4747_p3, %p4741_p0 }
  0x39   :  { %4751 = shalt.err (!%p4748_p4)
}
  0x3a   :  { %126 = dma.hbm_to_vmem [thread:$0]  %s4973_s3, 16, %s124_s16, [#allocation5]  }
  0x3b   :  { %s4760_s0 = scalar_lea.vmem %s112_s22, 16  ;;  %s4764_s28 = scalar_lea.vmem %s112_s22, 32 }
  0x3c   :  { %p4761_p5 = scmp.ne.s32.totalorder %s112_s22, %s4760_s0  ;;  %p4765_p6 = scmp.lt.s32.totalorder %s112_s22, %s112_s22 }
  0x3d   :  { %p4766_p7 = scmp.lt.s32.totalorder %s4764_s28, %s4760_s0 }
  0x3f   :  { %p4767_p8 = por %p4766_p7, %p4765_p6 }
  0x41   :  { %p4768_p9 = pnand %p4767_p8, %p4761_p5 }
  0x43   :  { %4771 = shalt.err (!%p4768_p9)
}
  0x44   :  { %114 = dma.hbm_to_vmem [thread:$0]  %s4963_s14, 16, %s112_s22, [#allocation3]  }
  0x45   :  { %s4850_s1 = smov [#allocation6]   ;;  %s4851_s7 = smov [#allocation7]  }
  0x46   :  { %s145_s2 = sshll.u32 %s4850_s1, 4  ;;  %s157_s10 = sshll.u32 %s4851_s7, 4  ;;  %s146_s2 = int_to_ptr.vmem [resolvable:$true] %s145_s2  ;;  %s158_s10 = int_to_ptr.vmem [resolvable:$true] %s157_s10 }
  0x47   :  { %s4780_s11 = scalar_lea.vmem %s146_s2, 16  ;;  %s4784_s15 = scalar_lea.vmem %s146_s2, 32 }
  0x48   :  { %p4781_p10 = scmp.ne.s32.totalorder %s146_s2, %s4780_s11  ;;  %p4785_p11 = scmp.lt.s32.totalorder %s146_s2, %s146_s2 }
  0x49   :  { %p4786_p12 = scmp.lt.s32.totalorder %s4784_s15, %s4780_s11 }
  0x4b   :  { %p4787_p13 = por %p4786_p12, %p4785_p11 }
  0x4d   :  { %p4788_p0 = pnand %p4787_p13, %p4781_p10 }
  0x4f   :  { %4791 = shalt.err (!%p4788_p0)
}
  0x50   :  { %148 = dma.hbm_to_vmem [thread:$0]  %s5008_s8, 16, %s146_s2, [#allocation5]  }
  0x51   :  { %s4800_s3 = scalar_lea.vmem %s158_s10, 16  ;;  %s4804_s16 = scalar_lea.vmem %s158_s10, 32 }
  0x52   :  { %p4801_p1 = scmp.ne.s32.totalorder %s158_s10, %s4800_s3  ;;  %p4805_p2 = scmp.lt.s32.totalorder %s158_s10, %s158_s10 }
  0x53   :  { %p4806_p3 = scmp.lt.s32.totalorder %s4804_s16, %s4800_s3 }
  0x55   :  { %p4807_p4 = por %p4806_p3, %p4805_p2 }
  0x57   :  { %p4808_p5 = pnand %p4807_p4, %p4801_p1 }
  0x59   :  { %4811 = shalt.err (!%p4808_p5)
}
  0x5a   :  { %160 = dma.hbm_to_vmem [thread:$0]  %s5018_s4, 16, %s158_s10, [#allocation8]  }
  0x5b   :  { %4812 = dma.done.wait [#allocation3], 16  }
  0x5c   :  { %4813 = vsyncadd [#allocation3], 4294967280 }
  0x5d   :  { %4814 = dma.done.wait [#allocation5], 32  }
  0x5e   :  { %4815 = vsyncadd [#allocation5], 4294967264 }
  0x5f   :  { %4816 = dma.done.wait [#allocation8], 16  }
  0x60   :  { %4817 = vsyncadd [#allocation8], 4294967280  ;;  %vm260_vm0 = vcmask 130048   ;;  %vm182_vm1 = vcmask 261120   ;;  %v178_v0 = vld [vmem:[%s4878_s9] sm:$0xff]  ;;  %v179_v1 = vld [vmem:[%s4878_s9 + $0x8] sm:$0xff] }
  0x61   :  { %v174_v2 = vld [vmem:[%s4873_s5] sm:$0xff]  ;;  %v261_v3 = vsel %vm260_vm0, %v178_v0, 0.0  ;;  %v176_v5 = vld [vmem:[%s4873_s5 + $0x10] sm:$0xff]  ;;  %v175_v6 = vld [vmem:[%s4873_s5 + $0x8] sm:$0xff]  ;;  %v264_v8 = vsel %vm260_vm0, %v179_v1, 0.0  ;;  %v4852_v44 = vmov 0.0  }
  0x62   :  { %v183_v4 = vsel %vm182_vm1, %v174_v2, 0.0  ;;  %v177_v7 = vld [vmem:[%s4873_s5 + $0x18] sm:$0xff]  ;;  %262 = vadd.xlane.f32.xlu0 %v261_v3  ;;  %v189_v9 = vsel %vm182_vm1, %v176_v5, 0.0  ;;  %v186_v10 = vsel %vm182_vm1, %v175_v6, 0.0  ;;  %v4545_v42 = vld [vmem:[%s4933_s30] sm:$0xff]   ;;  %v4546_v43 = vld [vmem:[%s4923_s19 + $0x8] sm:$0xff]   ;;  %4156 = vmatprep.subr.bf16.mxu1 %v4852_v44 }
  0x63   :  { %184 = vadd.xlane.f32.xlu1 %v183_v4  ;;  %v192_v11 = vsel %vm182_vm1, %v177_v7, 0.0  ;;  %vm4853_vm2 = vmmov 0   ;;  %4157 = vmatpush3.bf16.msra.mxu1 %v4545_v42  ;;  %v4547_v45 = vld [vmem:[%s4923_s19] sm:$0xff]   ;;  %vm462_vm3 = vcmask 64512   ;;  %s4854_s9 = smov 120   ;;  %vm539_vm4 = vcmask 1043456  }
  0x64   :  { %4158 = vmatprep.mubr.msk.bf16.mxu1 %vm4853_vm2, %v4852_v44  ;;  %4148 = vmatprep.subr.bf16.mxu0 %v4546_v43  ;;  %s4859_s8 = smov 80   ;;  %s4860_s14 = smov 72   ;;  %vm2030_vm5 = vcmask 523264  }
  0x65   :  { %4149 = vmatpush3.bf16.msra.mxu0 %v4546_v43  ;;  %4162 = vmatprep.subr.bf16.mxu1 %v4852_v44  ;;  %s5812_s19 = sld [smem:[#allocation16_spill]]  ;;  %s4861_s26 = smov 56  }
  0x66   :  { %265 = vadd.xlane.f32.xlu0 %v264_v8  ;;  %4150 = vmatprep.subr.bf16.mxu0 %v4547_v45  ;;  %v3930_v8 = vld [vmem:[%s4898_s25] ss:$0 sm:$0xff]  ;;  %s4858_s25 = smov 104   ;;  %s5815_s30 = sld [smem:[#allocation20_spill]] }
  0x67   :  { %187 = vadd.xlane.f32.xlu1 %v186_v10  ;;  %s5819_s4 = sld [smem:[#allocation17_spill]]  ;;  %s4862_s0 = smov 64  }
  0x68   :  { %s5820_s18 = sld [smem:[#allocation14_spill]]  ;;  %s4863_s1 = smov 48  }
  0x69   :  { %4151 = vmatpush3.bf16.msra.mxu0 %v4547_v45  ;;  %s5821_s22 = sld [smem:[#allocation15_spill]]  ;;  %s4864_s2 = smov 40  }
  0x6a   :  { %190 = vadd.xlane.f32.xlu0 %v189_v9  ;;  %4180 = vmatprep.subr.bf16.mxu0 %v4852_v44  ;;  %v3927_v9 = vld [vmem:[%s4883_s13] ss:$0 sm:$0xff]  ;;  %s4855_s13 = smov 96   ;;  %s5822_s23 = sld [smem:[#allocation19_spill]] }
  0x6b   :  { %193 = vadd.xlane.f32.xlu1 %v192_v11  ;;  %s5823_s28 = sld [smem:[#allocation18_spill]] }
  0x6c   :  { %s5824_s7 = sld [smem:[#allocation24_spill]] }
  0xeb   :  { %v263_v12 = vpop.xlane.xlu0 %262 }
  0xec   :  { %v185_v13 = vpop.xlane.xlu1 %184  ;;  %v268_v14 = vmul.f32 0.0625, %v263_v12 }
  0xed   :  { %v196_v15 = vmul.f32 0.03125, %v185_v13 }
  0xee   :  { %v5041_v16 = vsub.f32 %v178_v0, %v268_v14 }
  0xef   :  { %v5043_v17 = vsub.f32 %v174_v2, %v196_v15  ;;  %v266_v18 = vpop.xlane.xlu0 %265  ;;  %v3929_v2 = vld [vmem:[%s4893_s21] ss:$0 sm:$0xff]  ;;  %s4857_s21 = smov 112  }
  0xf0   :  { %v188_v19 = vpop.xlane.xlu1 %187  ;;  %v269_v20 = vmul.f32 0.0625, %v266_v18  ;;  %v272_v21 = vmul.f32 %v5041_v16, %v5041_v16 }
  0xf1   :  { %v197_v22 = vmul.f32 0.03125, %v188_v19  ;;  %v204_v23 = vmul.f32 %v5043_v17, %v5043_v17  ;;  %v3928_v19 = vld [vmem:[%s4888_s17] ss:$0 sm:$0xff]  ;;  %s4856_s17 = smov 88  }
  0xf2   :  { %v5049_v24 = vsub.f32 %v179_v1, %v269_v20  ;;  %v274_v25 = vsel %vm260_vm0, %v272_v21, 0.0 }
  0xf3   :  { %v5052_v26 = vsub.f32 %v175_v6, %v197_v22  ;;  %275 = vadd.xlane.f32.xlu0 %v274_v25  ;;  %v191_v27 = vpop.xlane.xlu0 %190  ;;  %v208_v28 = vsel %vm182_vm1, %v204_v23, 0.0 }
  0xf4   :  { %v194_v29 = vpop.xlane.xlu1 %193  ;;  %v198_v30 = vmul.f32 0.03125, %v191_v27  ;;  %v273_v31 = vmul.f32 %v5049_v24, %v5049_v24 }
  0xf5   :  { %v199_v32 = vmul.f32 0.03125, %v194_v29  ;;  %v205_v33 = vmul.f32 %v5052_v26, %v5052_v26 }
  0xf6   :  { %v5059_v34 = vsub.f32 %v176_v5, %v198_v30  ;;  %v277_v35 = vsel %vm260_vm0, %v273_v31, 0.0 }
  0xf7   :  { %v5062_v36 = vsub.f32 %v177_v7, %v199_v32  ;;  %278 = vadd.xlane.f32.xlu1 %v277_v35  ;;  %209 = vadd.xlane.f32.xlu0 %v208_v28  ;;  %v211_v38 = vsel %vm182_vm1, %v205_v33, 0.0  ;;  %v3936_v32 = vld [vmem:[%s4938_s6] ss:$0 sm:$0xff]  ;;  %s5816_s6 = sld [smem:[#allocation22_spill]] }
  0xf8   :  { %v206_v37 = vmul.f32 %v5059_v34, %v5059_v34 }
  0xf9   :  { %v207_v39 = vmul.f32 %v5062_v36, %v5062_v36 }
  0xfa   :  { %v214_v40 = vsel %vm182_vm1, %v206_v37, 0.0  ;;  %v3931_v37 = vld [vmem:[%s4928_s24] ss:$0 sm:$0xff]  ;;  %s5813_s24 = sld [smem:[#allocation12_spill]] }
  0xfb   :  { %215 = vadd.xlane.f32.xlu0 %v214_v40  ;;  %212 = vadd.xlane.f32.xlu1 %v211_v38  ;;  %v217_v41 = vsel %vm182_vm1, %v207_v39, 0.0 }
  0xff   :  { %218 = vadd.xlane.f32.xlu1 %v217_v41 }
 0x17c   :  { %v276_v46 = vpop.xlane.xlu0 %275 }
 0x17d   :  { %v280_v47 = vmul.f32 0.0625, %v276_v46 }
 0x17f   :  { %v282_v48 = vadd.f32 1e-05, %v280_v47 }
 0x180   :  { %v210_v49 = vpop.xlane.xlu0 %209  ;;  %v279_v50 = vpop.xlane.xlu1 %278 }
 0x181   :  { %4562 = vrsqrt.f32 %v282_v48  ;;  %v220_v51 = vmul.f32 0.03125, %v210_v49  ;;  %v281_v52 = vmul.f32 0.0625, %v279_v50 }
 0x183   :  { %v224_v53 = vadd.f32 1e-05, %v220_v51  ;;  %v283_v54 = vadd.f32 1e-05, %v281_v52 }
 0x184   :  { %v216_v55 = vpop.xlane.xlu0 %215  ;;  %v213_v56 = vpop.xlane.xlu1 %212 }
 0x185   :  { %4564 = vrsqrt.f32 %v224_v53  ;;  %v222_v57 = vmul.f32 0.03125, %v216_v55  ;;  %v221_v58 = vmul.f32 0.03125, %v213_v56  ;;  %v5112_v56 = vld [vmem:[%s4953_s27] sm:$0xff] }
 0x186   :  { %4566 = vrsqrt.f32 %v283_v54 }
 0x187   :  { %v226_v59 = vadd.f32 1e-05, %v222_v57  ;;  %v225_v60 = vadd.f32 1e-05, %v221_v58 }
 0x188   :  { %v219_v61 = vpop.xlane.xlu1 %218 }
 0x189   :  { %4568 = vrsqrt.f32 %v226_v59  ;;  %v223_v62 = vmul.f32 0.03125, %v219_v61 }
 0x18a   :  { %4570 = vrsqrt.f32 %v225_v60  ;;  %v5116_v60 = vld [vmem:[%s4953_s27 + $0x8] sm:$0xff] }
 0x18b   :  { %v227_v63 = vadd.f32 1e-05, %v223_v62 }
 0x18d   :  { %4572 = vrsqrt.f32 %v227_v63 }
 0x18e   :  { %v4563_v0 = vpop.eup %4562 }
 0x18f   :  { %v286_v1 = vmul.f32 %v4563_v0, %v5041_v16 }
 0x191   :  { %v294_v6 = vmul.f32 %v3929_v2, %v286_v1 }
 0x192   :  { %v4565_v3 = vpop.eup %4564 }
 0x193   :  { %v4567_v4 = vpop.eup %4566  ;;  %v232_v7 = vmul.f32 %v4565_v3, %v5043_v17  ;;  %v302_v14 = vadd.f32 %v3930_v8, %v294_v6 }
 0x194   :  { %v287_v5 = vmul.f32 %v4567_v4, %v5049_v24 }
 0x195   :  { %v242_v18 = vmul.f32 %v3927_v9, %v232_v7 }
 0x196   :  { %v4569_v10 = vpop.eup %4568  ;;  %v295_v11 = vmul.f32 %v3929_v2, %v287_v5 }
 0x197   :  { %v4571_v12 = vpop.eup %4570  ;;  %v234_v13 = vmul.f32 %v4569_v10, %v5059_v34  ;;  %v252_v24 = vadd.f32 %v3928_v19, %v242_v18 }
 0x198   :  { %v303_v15 = vadd.f32 %v3930_v8, %v295_v11  ;;  %v233_v16 = vmul.f32 %v4571_v12, %v5052_v26 }
 0x199   :  { %v244_v17 = vmul.f32 %v3927_v9, %v234_v13 }
 0x19a   :  { %v4573_v20 = vpop.eup %4572  ;;  %v304_v21 = vpack.c.bf16 %v303_v15, %v302_v14  ;;  %v243_v22 = vmul.f32 %v3927_v9, %v233_v16 }
 0x19b   :  { %v235_v23 = vmul.f32 %v4573_v20, %v5062_v36  ;;  %v254_v26 = vadd.f32 %v3928_v19, %v244_v17 }
 0x19c   :  { %4159 = vmatmul.mubr.msk.bf16.vlgmr.msra.gmra.mxu1 %vm260_vm0, %v304_v21  ;;  %v253_v25 = vadd.f32 %v3928_v19, %v243_v22 }
 0x19d   :  { %v245_v27 = vmul.f32 %v3927_v9, %v235_v23  ;;  %4164 = vmatprep.mubr.msk.bf16.mxu1 %vm4853_vm2, %v4852_v44 }
 0x19e   :  { %v256_v28 = vpack.c.bf16 %v253_v25, %v252_v24 }
 0x19f   :  { %v255_v29 = vadd.f32 %v3928_v19, %v245_v27 }
 0x1a0   :  { %4152 = vmatprep.mubr.msk.bf16.mxu0 %vm182_vm1, %v256_v28 }
 0x1a1   :  { %v257_v30 = vpack.c.bf16 %v255_v29, %v254_v26  ;;  %v5140_v29 = vld [vmem:[%s4953_s27 + $0x10] sm:$0xff] }
 0x1a3   :  { %4153 = vmatmul.mubr.msk.bf16.vlgmr.msra.gmra.mxu0 %vm182_vm1, %v257_v30 }
 0x1a4   :  { %4182 = vmatprep.mubr.msk.bf16.mxu0 %vm4853_vm2, %v4852_v44 }
 0x25c   :  { %v435_v31 = vpop.f32.mrf.mxu1 }
 0x25d   :  { %v436_v35 = vadd.f32 %v3936_v32, %v435_v31 }
 0x25e   :  { %v4160_v33 = vpop.f32.mrf.mxu1 }
 0x25f   :  { %v5144_v33 = vld [vmem:[%s4953_s27 + $0x18] sm:$0xff] }
 0x260   :  { %v438_v34 = vpop.f32.mrf.mxu1 }
 0x261   :  { %v439_v36 = vadd.f32 %v3936_v32, %v438_v34 }
 0x262   :  { %v4161_v38 = vpop.f32.mrf.mxu1 }
 0x263   :  { %v5098_v39 = vpack.c.bf16 %v439_v36, %v436_v35  ;;  %v4154_v40 = vpop.f32.mrf.mxu0 }
 0x264   :  { %v377_v41 = vadd.f32 %v4154_v40, %v3931_v37 }
 0x265   :  { %v368_v42 = vpop.f32.mrf.mxu0  ;;  %v467_v43 = vsel %vm462_vm3, %v5098_v39, 0 }
 0x266   :  { %4163 = vmatpush3.bf16.xpose.msra.mxu1 %v467_v43  ;;  %v369_v46 = vadd.f32 %v3931_v37, %v368_v42  ;;  %v457_v49 = vmul.f32 0.35355338, %v377_v41 }
 0x267   :  { %v4155_v45 = vpop.f32.mrf.mxu0  ;;  %4168 = vmatprep.subr.bf16.mxu1 %v4852_v44 }
 0x268   :  { %v380_v47 = vadd.f32 %v4155_v45, %v3931_v37  ;;  %v455_v52 = vmul.f32 0.35355338, %v369_v46 }
 0x269   :  { %v371_v48 = vpop.f32.mrf.mxu0 }
 0x26a   :  { %v458_v50 = vmul.f32 0.35355338, %v380_v47  ;;  %v372_v51 = vadd.f32 %v3931_v37, %v371_v48 }
 0x26c   :  { %v5103_v53 = vpack.c.bf16 %v458_v50, %v457_v49  ;;  %v456_v54 = vmul.f32 0.35355338, %v372_v51 }
 0x26e   :  { %v5105_v55 = vpack.c.bf16 %v456_v54, %v455_v52 }
 0x270   :  { %4165 = vmatmul.mubr.msk.bf16.vlgmr.msra.gmra.mxu1 %vm462_vm3, %v5105_v55 }
 0x271   :  { %4170 = vmatprep.mubr.msk.bf16.mxu1 %vm4853_vm2, %v4852_v44 }
 0x330   :  { %v503_v57 = vpop.f32.mrf.mxu1 }
 0x331   :  { %v504_v58 = vadd.f32 %v503_v57, %v5112_v56 }
 0x332   :  { %v4166_v59 = vpop.f32.mrf.mxu1 }
 0x333   :  { %v510_v61 = vsel %vm462_vm3, %v504_v58, -inf }
 0x334   :  { %511 = vmax.xlane.f32.xlu0 %v510_v61  ;;  %v506_v62 = vpop.f32.mrf.mxu1  ;;  %v450_v61 = vld [vmem:[%s4943_s12] sm:$0xf] }
 0x335   :  { %v507_v63 = vadd.f32 %v506_v62, %v5116_v60 }
 0x336   :  { %v4167_v0 = vpop.f32.mrf.mxu1 }
 0x337   :  { %v513_v1 = vsel %vm462_vm3, %v507_v63, -inf }
 0x338   :  { %514 = vmax.xlane.f32.xlu1 %v513_v1  ;;  %v5161_v1 = vsel %vm539_vm4, %v450_v61, 0 }
 0x3bd   :  { %v512_v2 = vpop.xlane.xlu0 %511 }
 0x3be   :  { %v516_v3 = vsub.f32 %v504_v58, %v512_v2  ;;  %v451_v2 = vld [vmem:[%s4943_s12 + $0x4] sm:$0xf] }
 0x3c0   :  { %v518_v4 = vmul.f32 1.442695, %v516_v3  ;;  %v5173_v3 = vsel %vm539_vm4, %v451_v2, 0 }
 0x3c1   :  { %v515_v5 = vpop.xlane.xlu1 %514 }
 0x3c2   :  { %4574 = vpow2.f32 %v518_v4  ;;  %v517_v6 = vsub.f32 %v507_v63, %v515_v5 }
 0x3c4   :  { %v520_v7 = vmul.f32 1.442695, %v517_v6 }
 0x3c6   :  { %4576 = vpow2.f32 %v520_v7 }
 0x3cf   :  { %v4575_v8 = vpop.eup %4574 }
 0x3d0   :  { %v522_v9 = vsel %vm462_vm3, %v4575_v8, 0.0 }
 0x3d1   :  { %523 = vadd.xlane.f32.xlu0 %v522_v9 }
 0x3d3   :  { %v4577_v10 = vpop.eup %4576 }
 0x3d4   :  { %v525_v11 = vsel %vm462_vm3, %v4577_v10, 0.0 }
 0x3d5   :  { %526 = vadd.xlane.f32.xlu1 %v525_v11 }
 0x3e6   :  { %588 = vrot.lane.b32.xlu1 %v5098_v39, %s4854_s9 }
 0x3e7   :  { %534 = vrot.lane.b32.xlu0 %v5098_v39, %s4855_s13 }
 0x3ea   :  { %586 = vrot.lane.b32.xlu1 %v5105_v55, %s4854_s9 }
 0x45a   :  { %v524_v12 = vpop.xlane.xlu0 %523 }
 0x45b   :  { %4578 = vrcp.f32 %v524_v12 }
 0x45e   :  { %v535_v13 = vpop.permute.xlu0 %534  ;;  %v527_v14 = vpop.xlane.xlu1 %526 }
 0x45f   :  { %v541_v15 = vsel %vm539_vm4, %v535_v13, 0  ;;  %4580 = vrcp.f32 %v527_v14 }
 0x460   :  { %4169 = vmatpush3.bf16.msra.mxu1 %v541_v15 }
 0x461   :  { %4174 = vmatprep.subr.bf16.mxu1 %v4852_v44 }
 0x462   :  { %v589_v21 = vpop.permute.xlu1 %588 }
 0x463   :  { %v594_v23 = vsel %vm462_vm3, %v589_v21, 0  ;;  %v5194_v21 = vld [vmem:[%s4953_s27 + $0x20] sm:$0xff] }
 0x466   :  { %v587_v17 = vpop.permute.xlu1 %586 }
 0x468   :  { %v4579_v16 = vpop.eup %4578 }
 0x469   :  { %v530_v19 = vmul.f32 %v4579_v16, %v4575_v8 }
 0x46c   :  { %v4581_v18 = vpop.eup %4580 }
 0x46d   :  { %v531_v20 = vmul.f32 %v4581_v18, %v4577_v10 }
 0x46f   :  { %v532_v22 = vpack.c.bf16 %v531_v20, %v530_v19 }
 0x471   :  { %4171 = vmatmul.mubr.msk.bf16.vlgmr.msra.gmra.mxu1 %vm462_vm3, %v532_v22 }
 0x472   :  { %4175 = vmatpush3.bf16.xpose.msra.mxu1 %v594_v23  ;;  %4176 = vmatprep.mubr.msk.bf16.mxu1 %vm4853_vm2, %v4852_v44 }
 0x473   :  { %4186 = vmatprep.subr.bf16.mxu1 %v4852_v44 }
 0x479   :  { %4177 = vmatmul.mubr.msk.bf16.vlgmr.msra.gmra.mxu1 %vm462_vm3, %v587_v17 }
 0x47a   :  { %4188 = vmatprep.mubr.msk.bf16.mxu1 %vm4853_vm2, %v4852_v44  ;;  %4187 = vmatpush3.bf16.msra.mxu1 %v5173_v3 }
 0x47b   :  { %4198 = vmatprep.subr.bf16.mxu1 %v4852_v44 }
 0x531   :  { %v577_v24 = vpop.f32.mrf.mxu1 }
 0x533   :  { %v4172_v25 = vpop.f32.mrf.mxu1 }
 0x535   :  { %v580_v27 = vpop.f32.mrf.mxu1 }
 0x536   :  { %v584_v28 = vpack.c.bf16 %v580_v27, %v577_v24  ;;  %v5198_v24 = vld [vmem:[%s4953_s27 + $0x28] sm:$0xff] }
 0x537   :  { %v4173_v26 = vpop.f32.mrf.mxu1 }
 0x539   :  { %v630_v30 = vpop.f32.mrf.mxu1 }
 0x53a   :  { %v631_v31 = vadd.f32 %v630_v30, %v5140_v29 }
 0x53b   :  { %v4178_v32 = vpop.f32.mrf.mxu1 }
 0x53c   :  { %v637_v34 = vsel %vm462_vm3, %v631_v31, -inf }
 0x53d   :  { %638 = vmax.xlane.f32.xlu1 %v637_v34  ;;  %v633_v35 = vpop.f32.mrf.mxu1 }
 0x53e   :  { %v634_v36 = vadd.f32 %v633_v35, %v5144_v33 }
 0x53f   :  { %v4179_v37 = vpop.f32.mrf.mxu1 }
 0x540   :  { %v640_v38 = vsel %vm462_vm3, %v634_v36, -inf }
 0x541   :  { %641 = vmax.xlane.f32.xlu0 %v640_v38 }
 0x54e   :  { %660 = vrot.lane.b32.xlu1 %v5098_v39, %s4856_s17 }
 0x552   :  { %804 = vrot.lane.b32.xlu1 %v5105_v55, %s4857_s21 }
 0x5c6   :  { %v639_v40 = vpop.xlane.xlu1 %638 }
 0x5c7   :  { %v643_v41 = vsub.f32 %v631_v31, %v639_v40 }
 0x5c9   :  { %v645_v42 = vmul.f32 1.442695, %v643_v41 }
 0x5ca   :  { %v661_v43 = vpop.permute.xlu1 %660  ;;  %v642_v45 = vpop.xlane.xlu0 %641 }
 0x5cb   :  { %4582 = vpow2.f32 %v645_v42  ;;  %v666_v46 = vsel %vm539_vm4, %v661_v43, 0  ;;  %v644_v47 = vsub.f32 %v634_v36, %v642_v45 }
 0x5cc   :  { %4181 = vmatpush3.bf16.msra.mxu0 %v666_v46 }
 0x5cd   :  { %v647_v48 = vmul.f32 1.442695, %v644_v47  ;;  %4192 = vmatprep.subr.bf16.mxu0 %v4852_v44 }
 0x5ce   :  { %v805_v14 = vpop.permute.xlu1 %804 }
 0x5cf   :  { %4584 = vpow2.f32 %v647_v48 }
 0x5d8   :  { %v4583_v49 = vpop.eup %4582 }
 0x5d9   :  { %v649_v50 = vsel %vm462_vm3, %v4583_v49, 0.0 }
 0x5da   :  { %650 = vadd.xlane.f32.xlu0 %v649_v50 }
 0x5dc   :  { %v4585_v51 = vpop.eup %4584 }
 0x5dd   :  { %v652_v52 = vsel %vm462_vm3, %v4585_v51, 0.0 }
 0x5de   :  { %653 = vadd.xlane.f32.xlu0 %v652_v52 }
 0x5f4   :  { %806 = vrot.lane.b32.xlu0 %v5098_v39, %s4857_s21 }
 0x663   :  { %v651_v54 = vpop.xlane.xlu0 %650 }
 0x664   :  { %4586 = vrcp.f32 %v651_v54 }
 0x667   :  { %v654_v57 = vpop.xlane.xlu0 %653 }
 0x668   :  { %4588 = vrcp.f32 %v654_v57 }
 0x66b   :  { %v807_v6 = vpop.permute.xlu0 %806 }
 0x66c   :  { %v812_v10 = vsel %vm462_vm3, %v807_v6, 0 }
 0x671   :  { %v4587_v58 = vpop.eup %4586 }
 0x672   :  { %v657_v62 = vmul.f32 %v4587_v58, %v4583_v49  ;;  %v452_v58 = vld [vmem:[%s4943_s12 + $0x8] sm:$0xf] }
 0x675   :  { %v4589_v59 = vpop.eup %4588 }
 0x676   :  { %v658_v63 = vmul.f32 %v4589_v59, %v4585_v51  ;;  %v5223_v59 = vsel %vm539_vm4, %v452_v58, 0 }
 0x678   :  { %v659_v0 = vpack.c.bf16 %v658_v63, %v657_v62 }
 0x67a   :  { %4183 = vmatmul.mubr.msk.bf16.vlgmr.msra.gmra.mxu0 %vm462_vm3, %v659_v0 }
 0x67b   :  { %4193 = vmatpush3.bf16.msra.mxu0 %v5161_v1  ;;  %4194 = vmatprep.mubr.msk.bf16.mxu0 %vm4853_vm2, %v4852_v44 }
 0x67c   :  { %4204 = vmatprep.subr.bf16.mxu0 %v4852_v44 }
 0x682   :  { %4195 = vmatmul.mubr.msk.bf16.vlgmr.msra.gmra.mxu0 %vm462_vm3, %v584_v28 }
 0x683   :  { %4206 = vmatprep.mubr.msk.bf16.mxu0 %vm4853_vm2, %v4852_v44 }
 0x73a   :  { %v702_v4 = vpop.f32.mrf.mxu0 }
 0x73c   :  { %v4184_v5 = vpop.f32.mrf.mxu0 }
 0x73e   :  { %v705_v7 = vpop.f32.mrf.mxu0 }
 0x73f   :  { %v709_v8 = vpack.c.bf16 %v705_v7, %v702_v4  ;;  %v5228_v4 = vld [vmem:[%s4953_s27 + $0x30] sm:$0xff] }
 0x740   :  { %v4185_v9 = vpop.f32.mrf.mxu0 }
 0x741   :  { %4189 = vmatmul.mubr.msk.bf16.vlgmr.msra.gmra.mxu1 %vm462_vm3, %v709_v8  ;;  %v5235_v8 = vld [vmem:[%s4953_s27 + $0x38] sm:$0xff]  ;;  %s5818_s27 = sld [smem:[#allocation23_spill]] }
 0x742   :  { %4199 = vmatpush3.bf16.xpose.msra.mxu1 %v812_v10  ;;  %v5179_v11 = vpop.f32.mrf.mxu0  ;;  %4200 = vmatprep.mubr.msk.bf16.mxu1 %vm4853_vm2, %v4852_v44 }
 0x743   :  { %4210 = vmatprep.subr.bf16.mxu1 %v4852_v44 }
 0x744   :  { %v4196_v12 = vpop.f32.mrf.mxu0 }
 0x746   :  { %v5184_v13 = vpop.f32.mrf.mxu0 }
 0x748   :  { %v4197_v15 = vpop.f32.mrf.mxu0 }
 0x749   :  { %4201 = vmatmul.mubr.msk.bf16.vlgmr.msra.gmra.mxu1 %vm462_vm3, %v805_v14 }
 0x74a   :  { %4212 = vmatprep.mubr.msk.bf16.mxu1 %vm4853_vm2, %v4852_v44  ;;  %4211 = vmatpush3.bf16.msra.mxu1 %v5223_v59 }
 0x74b   :  { %4222 = vmatprep.subr.bf16.mxu1 %v4852_v44 }
 0x801   :  { %v5189_v16 = vpop.f32.mrf.mxu1 }
 0x803   :  { %v4190_v18 = vpop.f32.mrf.mxu1 }
 0x805   :  { %v5191_v19 = vpop.f32.mrf.mxu1 }
 0x807   :  { %v4191_v20 = vpop.f32.mrf.mxu1 }
 0x809   :  { %v848_v22 = vpop.f32.mrf.mxu1 }
 0x80a   :  { %v849_v23 = vadd.f32 %v848_v22, %v5194_v21 }
 0x80b   :  { %v4202_v17 = vpop.f32.mrf.mxu1 }
 0x80c   :  { %v855_v25 = vsel %vm462_vm3, %v849_v23, -inf }
 0x80d   :  { %856 = vmax.xlane.f32.xlu1 %v855_v25  ;;  %v851_v27 = vpop.f32.mrf.mxu1 }
 0x80e   :  { %v852_v28 = vadd.f32 %v851_v27, %v5198_v24 }
 0x80f   :  { %v4203_v26 = vpop.f32.mrf.mxu1 }
 0x810   :  { %v858_v30 = vsel %vm462_vm3, %v852_v28, -inf }
 0x811   :  { %859 = vmax.xlane.f32.xlu0 %v858_v30 }
 0x896   :  { %v857_v31 = vpop.xlane.xlu1 %856 }
 0x897   :  { %v861_v32 = vsub.f32 %v849_v23, %v857_v31 }
 0x899   :  { %v863_v34 = vmul.f32 1.442695, %v861_v32 }
 0x89a   :  { %v860_v35 = vpop.xlane.xlu0 %859 }
 0x89b   :  { %4590 = vpow2.f32 %v863_v34  ;;  %v862_v36 = vsub.f32 %v852_v28, %v860_v35  ;;  %v5249_v34 = vrot.slane %v5098_v39, 4  ;;  %v798_v35 = vadd.f32 %v5179_v11, %v5189_v16 }
 0x89d   :  { %v865_v37 = vmul.f32 1.442695, %v862_v36  ;;  %v1155_v16 = vsel %vm462_vm3, %v5249_v34, 0 }
 0x89f   :  { %4592 = vpow2.f32 %v865_v37 }
 0x8a8   :  { %v4591_v38 = vpop.eup %4590 }
 0x8a9   :  { %v867_v40 = vsel %vm462_vm3, %v4591_v38, 0.0 }
 0x8aa   :  { %868 = vadd.xlane.f32.xlu0 %v867_v40  ;;  %v801_v40 = vadd.f32 %v5184_v13, %v5191_v19 }
 0x8ac   :  { %v4593_v41 = vpop.eup %4592 }
 0x8ad   :  { %v870_v42 = vsel %vm462_vm3, %v4593_v41, 0.0 }
 0x8ae   :  { %871 = vadd.xlane.f32.xlu1 %v870_v42 }
 0x8bf   :  { %979 = vrot.lane.b32.xlu1 %v5098_v39, %s4858_s25 }
 0x8c0   :  { %878 = vrot.lane.b32.xlu0 %v5098_v39, %s4859_s8 }
 0x8c3   :  { %977 = vrot.lane.b32.xlu1 %v5105_v55, %s4858_s25 }
 0x933   :  { %v869_v43 = vpop.xlane.xlu0 %868 }
 0x934   :  { %4594 = vrcp.f32 %v869_v43 }
 0x937   :  { %v872_v45 = vpop.xlane.xlu1 %871  ;;  %v879_v46 = vpop.permute.xlu0 %878 }
 0x938   :  { %4596 = vrcp.f32 %v872_v45  ;;  %v884_v47 = vsel %vm539_vm4, %v879_v46, 0 }
 0x939   :  { %4205 = vmatpush3.bf16.msra.mxu0 %v884_v47 }
 0x93a   :  { %4216 = vmatprep.subr.bf16.mxu0 %v4852_v44 }
 0x93b   :  { %v980_v52 = vpop.permute.xlu1 %979 }
 0x93c   :  { %v985_v57 = vsel %vm462_vm3, %v980_v52, 0 }
 0x93f   :  { %v978_v55 = vpop.permute.xlu1 %977 }
 0x941   :  { %v4595_v48 = vpop.eup %4594 }
 0x942   :  { %v875_v50 = vmul.f32 %v4595_v48, %v4591_v38 }
 0x945   :  { %v4597_v49 = vpop.eup %4596 }
 0x946   :  { %v876_v51 = vmul.f32 %v4597_v49, %v4593_v41 }
 0x948   :  { %v877_v54 = vpack.c.bf16 %v876_v51, %v875_v50  ;;  %v453_v51 = vld [vmem:[%s4943_s12 + $0xc] sm:$0xf]  ;;  %s5817_s12 = sld [smem:[#allocation21_spill]] }
 0x949   :  { %v5280_v52 = vsel %vm539_vm4, %v453_v51, 0 }
 0x94a   :  { %4207 = vmatmul.mubr.msk.bf16.vlgmr.msra.gmra.mxu0 %vm462_vm3, %v877_v54 }
 0x94b   :  { %4217 = vmatpush3.bf16.xpose.msra.mxu0 %v985_v57  ;;  %4218 = vmatprep.mubr.msk.bf16.mxu0 %vm4853_vm2, %v4852_v44 }
 0x94c   :  { %4228 = vmatprep.subr.bf16.mxu0 %v4852_v44 }
 0x952   :  { %4219 = vmatmul.mubr.msk.bf16.vlgmr.msra.gmra.mxu0 %vm462_vm3, %v978_v55 }
 0x953   :  { %4230 = vmatprep.mubr.msk.bf16.mxu0 %vm4853_vm2, %v4852_v44  ;;  %4229 = vmatpush3.bf16.msra.mxu0 %v5280_v52 }
 0x954   :  { %4240 = vmatprep.subr.bf16.mxu0 %v4852_v44 }
 0xa0a   :  { %v920_v61 = vpop.f32.mrf.mxu0 }
 0xa0c   :  { %v4208_v62 = vpop.f32.mrf.mxu0 }
 0xa0e   :  { %v923_v63 = vpop.f32.mrf.mxu0 }
 0xa0f   :  { %v927_v0 = vpack.c.bf16 %v923_v63, %v920_v61 }
 0xa10   :  { %v4209_v2 = vpop.f32.mrf.mxu0 }
 0xa11   :  { %4213 = vmatmul.mubr.msk.bf16.vlgmr.msra.gmra.mxu1 %vm462_vm3, %v927_v0 }
 0xa12   :  { %v1021_v5 = vpop.f32.mrf.mxu0  ;;  %4224 = vmatprep.mubr.msk.bf16.mxu1 %vm4853_vm2, %v4852_v44 }
 0xa13   :  { %v1022_v6 = vadd.f32 %v1021_v5, %v5228_v4 }
 0xa14   :  { %v4220_v7 = vpop.f32.mrf.mxu0 }
 0xa15   :  { %v1028_v9 = vsel %vm462_vm3, %v1022_v6, -inf }
 0xa16   :  { %1029 = vmax.xlane.f32.xlu1 %v1028_v9  ;;  %v1024_v10 = vpop.f32.mrf.mxu0 }
 0xa17   :  { %v1025_v12 = vadd.f32 %v1024_v10, %v5235_v8 }
 0xa18   :  { %v4221_v14 = vpop.f32.mrf.mxu0 }
 0xa19   :  { %v1031_v15 = vsel %vm462_vm3, %v1025_v12, -inf }
 0xa1a   :  { %1032 = vmax.xlane.f32.xlu0 %v1031_v15 }
 0xa27   :  { %1051 = vrot.lane.b32.xlu1 %v5098_v39, %s4860_s14 }
 0xa2b   :  { %1272 = vrot.lane.b32.xlu1 %v5103_v53, %s4854_s9 }
 0xa9f   :  { %v1030_v18 = vpop.xlane.xlu1 %1029 }
 0xaa0   :  { %v1034_v20 = vsub.f32 %v1022_v6, %v1030_v18 }
 0xaa2   :  { %v1036_v22 = vmul.f32 1.442695, %v1034_v20 }
 0xaa3   :  { %v1052_v23 = vpop.permute.xlu1 %1051  ;;  %v1033_v17 = vpop.xlane.xlu0 %1032 }
 0xaa4   :  { %4598 = vpow2.f32 %v1036_v22  ;;  %v1057_v25 = vsel %vm539_vm4, %v1052_v23, 0  ;;  %v1035_v27 = vsub.f32 %v1025_v12, %v1033_v17 }
 0xaa5   :  { %4223 = vmatpush3.bf16.msra.mxu1 %v1057_v25 }
 0xaa6   :  { %v1038_v28 = vmul.f32 1.442695, %v1035_v27  ;;  %4234 = vmatprep.subr.bf16.mxu1 %v4852_v44 }
 0xaa7   :  { %v1273_v50 = vpop.permute.xlu1 %1272 }
 0xaa8   :  { %4600 = vpow2.f32 %v1038_v28 }
 0xab1   :  { %v4599_v26 = vpop.eup %4598 }
 0xab2   :  { %v1040_v30 = vsel %vm462_vm3, %v4599_v26, 0.0 }
 0xab3   :  { %1041 = vadd.xlane.f32.xlu0 %v1040_v30 }
 0xab5   :  { %v4601_v31 = vpop.eup %4600 }
 0xab6   :  { %v1043_v32 = vsel %vm462_vm3, %v4601_v31, 0.0 }
 0xab7   :  { %1044 = vadd.xlane.f32.xlu0 %v1043_v32 }
 0xacd   :  { %1274 = vrot.lane.b32.xlu0 %v5249_v34, %s4854_s9 }
 0xad1   :  { %v968_v36 = vpop.f32.mrf.mxu1 }
 0xad2   :  { %v5255_v37 = vadd.f32 %v968_v36, %v798_v35 }
 0xad3   :  { %v4214_v38 = vpop.f32.mrf.mxu1 }
 0xad5   :  { %v971_v41 = vpop.f32.mrf.mxu1 }
 0xad6   :  { %v5259_v42 = vadd.f32 %v971_v41, %v801_v40 }
 0xad7   :  { %v4215_v43 = vpop.f32.mrf.mxu1 }
 0xb3c   :  { %v1042_v45 = vpop.xlane.xlu0 %1041 }
 0xb3d   :  { %4602 = vrcp.f32 %v1042_v45 }
 0xb40   :  { %v1045_v39 = vpop.xlane.xlu0 %1044 }
 0xb41   :  { %4604 = vrcp.f32 %v1045_v39 }
 0xb44   :  { %v1275_v13 = vpop.permute.xlu0 %1274 }
 0xb45   :  { %v1280_v19 = vsel %vm462_vm3, %v1275_v13, 0 }
 0xb4a   :  { %v4603_v46 = vpop.eup %4602 }
 0xb4b   :  { %v1048_v48 = vmul.f32 %v4603_v46, %v4599_v26 }
 0xb4e   :  { %v4605_v47 = vpop.eup %4604 }
 0xb4f   :  { %v1049_v49 = vmul.f32 %v4605_v47, %v4601_v31 }
 0xb51   :  { %v1050_v11 = vpack.c.bf16 %v1049_v49, %v1048_v48 }
 0xb53   :  { %4225 = vmatmul.mubr.msk.bf16.vlgmr.msra.gmra.mxu1 %vm462_vm3, %v1050_v11 }
 0xb54   :  { %4235 = vmatpush3.bf16.xpose.msra.mxu1 %v1155_v16  ;;  %4236 = vmatprep.mubr.msk.bf16.mxu1 %vm4853_vm2, %v4852_v44 }
 0xb55   :  { %4246 = vmatprep.subr.bf16.mxu1 %v4852_v44 }
 0xb5b   :  { %4237 = vmatmul.mubr.msk.bf16.vlgmr.msra.gmra.mxu1 %vm462_vm3, %v5103_v53 }
 0xb5c   :  { %4247 = vmatpush3.bf16.xpose.msra.mxu1 %v1280_v19  ;;  %4248 = vmatprep.mubr.msk.bf16.mxu1 %vm4853_vm2, %v4852_v44 }
 0xb5d   :  { %4258 = vmatprep.subr.bf16.mxu1 %v4852_v44 }
 0xb63   :  { %4249 = vmatmul.mubr.msk.bf16.vlgmr.msra.gmra.mxu1 %vm462_vm3, %v1273_v50 }
 0xb64   :  { %4259 = vmatpush3.bf16.msra.mxu1 %v5173_v3  ;;  %4260 = vmatprep.mubr.msk.bf16.mxu1 %vm4853_vm2, %v4852_v44 }
 0xb65   :  { %4270 = vmatprep.subr.bf16.mxu1 %v4852_v44 }
 0xc13   :  { %v1093_v54 = vpop.f32.mrf.mxu1 }
 0xc15   :  { %v4226_v57 = vpop.f32.mrf.mxu1 }
 0xc17   :  { %v1096_v55 = vpop.f32.mrf.mxu1 }
 0xc18   :  { %v1100_v58 = vpack.c.bf16 %v1096_v55, %v1093_v54 }
 0xc19   :  { %v4227_v61 = vpop.f32.mrf.mxu1 }
 0xc1a   :  { %4231 = vmatmul.mubr.msk.bf16.vlgmr.msra.gmra.mxu0 %vm462_vm3, %v1100_v58 }
 0xc1b   :  { %v1191_v3 = vpop.f32.mrf.mxu1  ;;  %4242 = vmatprep.mubr.msk.bf16.mxu0 %vm4853_vm2, %v4852_v44 }
 0xc1c   :  { %v1192_v62 = vadd.f32 %v1191_v3, %v5112_v56 }
 0xc1d   :  { %v4238_v63 = vpop.f32.mrf.mxu1 }
 0xc1e   :  { %v1198_v0 = vsel %vm462_vm3, %v1192_v62, -inf }
 0xc1f   :  { %1199 = vmax.xlane.f32.xlu1 %v1198_v0  ;;  %v1194_v2 = vpop.f32.mrf.mxu1 }
 0xc20   :  { %v1195_v5 = vadd.f32 %v1194_v2, %v5116_v60 }
 0xc21   :  { %v4239_v6 = vpop.f32.mrf.mxu1 }
 0xc22   :  { %v1201_v7 = vsel %vm462_vm3, %v1195_v5, -inf }
 0xc23   :  { %1202 = vmax.xlane.f32.xlu0 %v1201_v7  ;;  %v1316_v9 = vpop.f32.mrf.mxu1 }
 0xc24   :  { %v1317_v10 = vadd.f32 %v1316_v9, %v5140_v29 }
 0xc25   :  { %v4250_v12 = vpop.f32.mrf.mxu1 }
 0xc26   :  { %v1323_v14 = vsel %vm462_vm3, %v1317_v10, -inf }
 0xc27   :  { %1324 = vmax.xlane.f32.xlu0 %v1323_v14  ;;  %v1319_v15 = vpop.f32.mrf.mxu1 }
 0xc28   :  { %v1320_v56 = vadd.f32 %v1319_v15, %v5144_v33 }
 0xc29   :  { %v4251_v18 = vpop.f32.mrf.mxu1 }
 0xc2a   :  { %v1326_v20 = vsel %vm462_vm3, %v1320_v56, -inf }
 0xc2b   :  { %1327 = vmax.xlane.f32.xlu1 %v1326_v20 }
 0xca8   :  { %v1200_v22 = vpop.xlane.xlu1 %1199 }
 0xca9   :  { %v1204_v60 = vsub.f32 %v1192_v62, %v1200_v22 }
 0xcab   :  { %v1206_v23 = vmul.f32 1.442695, %v1204_v60 }
 0xcac   :  { %v1203_v17 = vpop.xlane.xlu0 %1202 }
 0xcad   :  { %4606 = vpow2.f32 %v1206_v23  ;;  %v1205_v25 = vsub.f32 %v1195_v5, %v1203_v17 }
 0xcaf   :  { %v1208_v27 = vmul.f32 1.442695, %v1205_v25 }
 0xcb0   :  { %v1325_v28 = vpop.xlane.xlu0 %1324 }
 0xcb1   :  { %4608 = vpow2.f32 %v1208_v27  ;;  %v1329_v29 = vsub.f32 %v1317_v10, %v1325_v28 }
 0xcb3   :  { %v1331_v26 = vmul.f32 1.442695, %v1329_v29 }
 0xcb4   :  { %v1328_v30 = vpop.xlane.xlu1 %1327 }
 0xcb5   :  { %4610 = vpow2.f32 %v1331_v26  ;;  %v1330_v31 = vsub.f32 %v1320_v56, %v1328_v30 }
 0xcb7   :  { %v1333_v32 = vmul.f32 1.442695, %v1330_v31 }
 0xcb9   :  { %4612 = vpow2.f32 %v1333_v32 }
 0xcba   :  { %v4607_v33 = vpop.eup %4606 }
 0xcbb   :  { %v1210_v35 = vsel %vm462_vm3, %v4607_v33, 0.0 }
 0xcbc   :  { %1211 = vadd.xlane.f32.xlu0 %v1210_v35 }
 0xcbe   :  { %v4609_v36 = vpop.eup %4608 }
 0xcbf   :  { %v1213_v38 = vsel %vm462_vm3, %v4609_v36, 0.0 }
 0xcc0   :  { %1214 = vadd.xlane.f32.xlu1 %v1213_v38 }
 0xcc2   :  { %v4611_v40 = vpop.eup %4610 }
 0xcc3   :  { %v1335_v41 = vsel %vm462_vm3, %v4611_v40, 0.0 }
 0xcc4   :  { %1336 = vadd.xlane.f32.xlu0 %v1335_v41 }
 0xcc6   :  { %v4613_v43 = vpop.eup %4612 }
 0xcc7   :  { %v1338_v45 = vsel %vm462_vm3, %v4613_v43, 0.0 }
 0xcc8   :  { %1339 = vadd.xlane.f32.xlu1 %v1338_v45 }
 0xcd9   :  { %1346 = vrot.lane.b32.xlu1 %v5249_v34, %s4856_s17 }
 0xcda   :  { %v1141_v39 = vpop.f32.mrf.mxu0  ;;  %1221 = vrot.lane.b32.xlu0 %v5249_v34, %s4855_s13 }
 0xcdb   :  { %v5304_v46 = vadd.f32 %v1141_v39, %v5255_v37 }
 0xcdc   :  { %v4232_v47 = vpop.f32.mrf.mxu0 }
 0xcdd   :  { %1486 = vrot.lane.b32.xlu1 %v5249_v34, %s4857_s21 }
 0xcde   :  { %v1144_v48 = vpop.f32.mrf.mxu0 }
 0xcdf   :  { %v5309_v49 = vadd.f32 %v1144_v48, %v5259_v42 }
 0xce0   :  { %v4233_v11 = vpop.f32.mrf.mxu0 }
 0xce1   :  { %1484 = vrot.lane.b32.xlu1 %v5103_v53, %s4857_s21 }
 0xd45   :  { %v1212_v16 = vpop.xlane.xlu0 %1211 }
 0xd46   :  { %4614 = vrcp.f32 %v1212_v16 }
 0xd49   :  { %v1215_v13 = vpop.xlane.xlu1 %1214 }
 0xd4a   :  { %4616 = vrcp.f32 %v1215_v13 }
 0xd4d   :  { %v1337_v19 = vpop.xlane.xlu0 %1336 }
 0xd4e   :  { %4618 = vrcp.f32 %v1337_v19 }
 0xd51   :  { %v1222_v37 = vpop.permute.xlu0 %1221  ;;  %v1340_v50 = vpop.xlane.xlu1 %1339 }
 0xd52   :  { %v1227_v51 = vsel %vm539_vm4, %v1222_v37, 0  ;;  %4620 = vrcp.f32 %v1340_v50 }
 0xd53   :  { %4241 = vmatpush3.bf16.msra.mxu0 %v1227_v51  ;;  %v4615_v42 = vpop.eup %4614 }
 0xd54   :  { %4252 = vmatprep.subr.bf16.mxu0 %v4852_v44  ;;  %v1218_v57 = vmul.f32 %v4615_v42, %v4607_v33 }
 0xd55   :  { %v1347_v58 = vpop.permute.xlu1 %1346 }
 0xd56   :  { %v1352_v3 = vsel %vm539_vm4, %v1347_v58, 0 }
 0xd57   :  { %v4617_v54 = vpop.eup %4616 }
 0xd58   :  { %v1219_v55 = vmul.f32 %v4617_v54, %v4609_v36 }
 0xd59   :  { %v1487_v56 = vpop.permute.xlu1 %1486 }
 0xd5a   :  { %v1220_v61 = vpack.c.bf16 %v1219_v55, %v1218_v57  ;;  %v1492_v22 = vsel %vm462_vm3, %v1487_v56, 0 }
 0xd5b   :  { %v4619_v62 = vpop.eup %4618 }
 0xd5c   :  { %4243 = vmatmul.mubr.msk.bf16.vlgmr.msra.gmra.mxu0 %vm462_vm3, %v1220_v61  ;;  %v1343_v0 = vmul.f32 %v4619_v62, %v4611_v40 }
 0xd5d   :  { %4253 = vmatpush3.bf16.msra.mxu0 %v1352_v3  ;;  %4254 = vmatprep.mubr.msk.bf16.mxu0 %vm4853_vm2, %v4852_v44  ;;  %v1485_v60 = vpop.permute.xlu1 %1484 }
 0xd5e   :  { %4264 = vmatprep.subr.bf16.mxu0 %v4852_v44 }
 0xd5f   :  { %v4621_v63 = vpop.eup %4620 }
 0xd60   :  { %v1344_v2 = vmul.f32 %v4621_v63, %v4613_v43 }
 0xd62   :  { %v1345_v5 = vpack.c.bf16 %v1344_v2, %v1343_v0 }
 0xd64   :  { %4255 = vmatmul.mubr.msk.bf16.vlgmr.msra.gmra.mxu0 %vm462_vm3, %v1345_v5 }
 0xd65   :  { %4265 = vmatpush3.bf16.msra.mxu0 %v5161_v1  ;;  %4266 = vmatprep.mubr.msk.bf16.mxu0 %vm4853_vm2, %v4852_v44 }
 0xd66   :  { %4276 = vmatprep.subr.bf16.mxu0 %v4852_v44 }
 0xe1c   :  { %v1263_v6 = vpop.f32.mrf.mxu0 }
 0xe1e   :  { %v4244_v7 = vpop.f32.mrf.mxu0 }
 0xe20   :  { %v1266_v9 = vpop.f32.mrf.mxu0 }
 0xe21   :  { %v1270_v10 = vpack.c.bf16 %v1266_v9, %v1263_v6 }
 0xe22   :  { %v4245_v12 = vpop.f32.mrf.mxu0 }
 0xe23   :  { %4267 = vmatmul.mubr.msk.bf16.vlgmr.msra.gmra.mxu0 %vm462_vm3, %v1270_v10 }
 0xe24   :  { %v1388_v14 = vpop.f32.mrf.mxu0  ;;  %4278 = vmatprep.mubr.msk.bf16.mxu0 %vm4853_vm2, %v4852_v44 }
 0xe26   :  { %v4256_v15 = vpop.f32.mrf.mxu0 }
 0xe28   :  { %v1391_v18 = vpop.f32.mrf.mxu0 }
 0xe29   :  { %v1395_v1 = vpack.c.bf16 %v1391_v18, %v1388_v14 }
 0xe2a   :  { %v4257_v20 = vpop.f32.mrf.mxu0 }
 0xe2b   :  { %4261 = vmatmul.mubr.msk.bf16.vlgmr.msra.gmra.mxu1 %vm462_vm3, %v1395_v1 }
 0xe2c   :  { %4271 = vmatpush3.bf16.xpose.msra.mxu1 %v1492_v22  ;;  %4272 = vmatprep.mubr.msk.bf16.mxu1 %vm4853_vm2, %v4852_v44 }
 0xe2d   :  { %4282 = vmatprep.subr.bf16.mxu1 %v4852_v44 }
 0xe33   :  { %4273 = vmatmul.mubr.msk.bf16.vlgmr.msra.gmra.mxu1 %vm462_vm3, %v1485_v60 }
 0xe34   :  { %4283 = vmatpush3.bf16.msra.mxu1 %v5223_v59  ;;  %4284 = vmatprep.mubr.msk.bf16.mxu1 %vm4853_vm2, %v4852_v44 }
 0xe35   :  { %4294 = vmatprep.subr.bf16.mxu1 %v4852_v44 }
 0xee3   :  { %v1477_v23 = vpop.f32.mrf.mxu0 }
 0xee5   :  { %v4268_v17 = vpop.f32.mrf.mxu0 }
 0xee6   :  { %v3963_v17 = vld [vmem:[%s5812_s19] ss:$0 sm:$0xff] }
 0xee7   :  { %v1480_v25 = vpop.f32.mrf.mxu0 }
 0xee9   :  { %v4269_v27 = vpop.f32.mrf.mxu0 }
 0xeea   :  { %v1830_v27 = vadd.f32 %v3963_v17, %v5304_v46 }
 0xeeb   :  { %v1433_v28 = vpop.f32.mrf.mxu1 }
 0xeec   :  { %v5338_v29 = vadd.f32 %v1477_v23, %v1433_v28 }
 0xeed   :  { %v4262_v26 = vpop.f32.mrf.mxu1 }
 0xeee   :  { %v4726_v26 = vld [vmem:[%s4873_s5] sm:$0xff] }
 0xeef   :  { %v1436_v30 = vpop.f32.mrf.mxu1 }
 0xef0   :  { %v5340_v31 = vadd.f32 %v1480_v25, %v1436_v30  ;;  %v5379_v30 = vadd.f32 %v4726_v26, %v1830_v27 }
 0xef1   :  { %v4263_v32 = vpop.f32.mrf.mxu1 }
 0xef2   :  { %v1831_v32 = vadd.f32 %v3963_v17, %v5309_v49 }
 0xef3   :  { %v1528_v33 = vpop.f32.mrf.mxu1 }
 0xef4   :  { %v1529_v59 = vadd.f32 %v1528_v33, %v5194_v21 }
 0xef5   :  { %v4274_v35 = vpop.f32.mrf.mxu1 }
 0xef6   :  { %v1535_v36 = vsel %vm462_vm3, %v1529_v59, -inf }
 0xef7   :  { %1536 = vmax.xlane.f32.xlu0 %v1535_v36  ;;  %v1531_v38 = vpop.f32.mrf.mxu1  ;;  %v1840_v36 = vsel %vm182_vm1, %v5379_v30, 0.0 }
 0xef8   :  { %v1532_v40 = vadd.f32 %v1531_v38, %v5198_v24 }
 0xef9   :  { %v4275_v41 = vpop.f32.mrf.mxu1 }
 0xefa   :  { %v1538_v43 = vsel %vm462_vm3, %v1532_v40, -inf }
 0xefb   :  { %1539 = vmax.xlane.f32.xlu1 %v1538_v43 }
 0xf0c   :  { %1656 = vrot.lane.b32.xlu1 %v5249_v34, %s4858_s25 }
 0xf10   :  { %1654 = vrot.lane.b32.xlu1 %v5103_v53, %s4858_s25 }
 0xf80   :  { %v1537_v45 = vpop.xlane.xlu0 %1536 }
 0xf81   :  { %v1541_v39 = vsub.f32 %v1529_v59, %v1537_v45  ;;  %v4727_v59 = vld [vmem:[%s4873_s5 + $0x8] sm:$0xff] }
 0xf82   :  { %v5384_v35 = vadd.f32 %v4727_v59, %v1831_v32 }
 0xf83   :  { %v1543_v21 = vmul.f32 1.442695, %v1541_v39 }
 0xf84   :  { %v1540_v47 = vpop.xlane.xlu1 %1539  ;;  %v1843_v46 = vsel %vm182_vm1, %v5384_v35, 0.0 }
 0xf85   :  { %4622 = vpow2.f32 %v1543_v21  ;;  %v1542_v48 = vsub.f32 %v1532_v40, %v1540_v47 }
 0xf87   :  { %v1545_v11 = vmul.f32 1.442695, %v1542_v48 }
 0xf88   :  { %v1657_v58 = vpop.permute.xlu1 %1656 }
 0xf89   :  { %4624 = vpow2.f32 %v1545_v11  ;;  %v1662_v3 = vsel %vm462_vm3, %v1657_v58, 0 }
 0xf8c   :  { %v1655_v62 = vpop.permute.xlu1 %1654 }
 0xf92   :  { %v4623_v16 = vpop.eup %4622 }
 0xf93   :  { %v1547_v24 = vsel %vm462_vm3, %v4623_v16, 0.0 }
 0xf94   :  { %1548 = vadd.xlane.f32.xlu0 %v1547_v24 }
 0xf96   :  { %v4625_v13 = vpop.eup %4624 }
 0xf97   :  { %v1550_v19 = vsel %vm462_vm3, %v4625_v13, 0.0 }
 0xf98   :  { %1551 = vadd.xlane.f32.xlu0 %v1550_v19 }
 0xfae   :  { %1558 = vrot.lane.b32.xlu0 %v5249_v34, %s4859_s8 }
0x101d   :  { %v1549_v53 = vpop.xlane.xlu0 %1548 }
0x101e   :  { %4626 = vrcp.f32 %v1549_v53 }
0x1021   :  { %v1552_v37 = vpop.xlane.xlu0 %1551 }
0x1022   :  { %4628 = vrcp.f32 %v1552_v37 }
0x1025   :  { %v1559_v50 = vpop.permute.xlu0 %1558 }
0x1026   :  { %v1564_v51 = vsel %vm539_vm4, %v1559_v50, 0 }
0x1027   :  { %4277 = vmatpush3.bf16.msra.mxu0 %v1564_v51 }
0x1028   :  { %4288 = vmatprep.subr.bf16.mxu0 %v4852_v44 }
0x102b   :  { %v4627_v42 = vpop.eup %4626 }
0x102c   :  { %v1555_v57 = vmul.f32 %v4627_v42, %v4623_v16 }
0x102f   :  { %v4629_v54 = vpop.eup %4628 }
0x1030   :  { %v1556_v55 = vmul.f32 %v4629_v54, %v4625_v13 }
0x1032   :  { %v1557_v61 = vpack.c.bf16 %v1556_v55, %v1555_v57 }
0x1034   :  { %4279 = vmatmul.mubr.msk.bf16.vlgmr.msra.gmra.mxu0 %vm462_vm3, %v1557_v61 }
0x1035   :  { %4289 = vmatpush3.bf16.xpose.msra.mxu0 %v1662_v3  ;;  %4290 = vmatprep.mubr.msk.bf16.mxu0 %vm4853_vm2, %v4852_v44 }
0x1036   :  { %4300 = vmatprep.subr.bf16.mxu0 %v4852_v44 }
0x103c   :  { %4291 = vmatmul.mubr.msk.bf16.vlgmr.msra.gmra.mxu0 %vm462_vm3, %v1655_v62 }
0x103d   :  { %4301 = vmatpush3.bf16.msra.mxu0 %v5280_v52  ;;  %4302 = vmatprep.mubr.msk.bf16.mxu0 %vm4853_vm2, %v4852_v44 }
0x10f4   :  { %v1600_v63 = vpop.f32.mrf.mxu0 }
0x10f6   :  { %v4280_v0 = vpop.f32.mrf.mxu0 }
0x10f7   :  { %v4728_v0 = vld [vmem:[%s4873_s5 + $0x10] sm:$0xff] }
0x10f8   :  { %v1603_v2 = vpop.f32.mrf.mxu0 }
0x10f9   :  { %v1607_v5 = vpack.c.bf16 %v1603_v2, %v1600_v63 }
0x10fa   :  { %v4281_v6 = vpop.f32.mrf.mxu0 }
0x10fb   :  { %4285 = vmatmul.mubr.msk.bf16.vlgmr.msra.gmra.mxu1 %vm462_vm3, %v1607_v5 }
0x10fc   :  { %v1698_v7 = vpop.f32.mrf.mxu0  ;;  %4296 = vmatprep.mubr.msk.bf16.mxu1 %vm4853_vm2, %v4852_v44 }
0x10fd   :  { %v1699_v9 = vadd.f32 %v1698_v7, %v5228_v4 }
0x10fe   :  { %v4292_v10 = vpop.f32.mrf.mxu0 }
0x10ff   :  { %v1705_v12 = vsel %vm462_vm3, %v1699_v9, -inf }
0x1100   :  { %1706 = vmax.xlane.f32.xlu1 %v1705_v12  ;;  %v1701_v52 = vpop.f32.mrf.mxu0  ;;  %v4729_v12 = vld [vmem:[%s4873_s5 + $0x18] sm:$0xff]  ;;  %s5814_s5 = sld [smem:[#allocation13_spill]] }
0x1101   :  { %v1702_v14 = vadd.f32 %v1701_v52, %v5235_v8 }
0x1102   :  { %v4293_v15 = vpop.f32.mrf.mxu0 }
0x1103   :  { %v1708_v56 = vsel %vm462_vm3, %v1702_v14, -inf }
0x1104   :  { %1709 = vmax.xlane.f32.xlu0 %v1708_v56 }
0x1111   :  { %1728 = vrot.lane.b32.xlu1 %v5249_v34, %s4860_s14 }
0x1189   :  { %v1707_v18 = vpop.xlane.xlu1 %1706 }
0x118a   :  { %v1711_v1 = vsub.f32 %v1699_v9, %v1707_v18 }
0x118c   :  { %v1713_v20 = vmul.f32 1.442695, %v1711_v1 }
0x118d   :  { %v1729_v4 = vpop.permute.xlu1 %1728  ;;  %v1710_v22 = vpop.xlane.xlu0 %1709 }
0x118e   :  { %4630 = vpow2.f32 %v1713_v20  ;;  %v1734_v60 = vsel %vm539_vm4, %v1729_v4, 0  ;;  %v1712_v23 = vsub.f32 %v1702_v14, %v1710_v22 }
0x118f   :  { %4295 = vmatpush3.bf16.msra.mxu1 %v1734_v60 }
0x1190   :  { %v1715_v8 = vmul.f32 1.442695, %v1712_v23 }
0x1192   :  { %4632 = vpow2.f32 %v1715_v8 }
0x119b   :  { %v4631_v25 = vpop.eup %4630 }
0x119c   :  { %v1717_v34 = vsel %vm462_vm3, %v4631_v25, 0.0 }
0x119d   :  { %1718 = vadd.xlane.f32.xlu0 %v1717_v34 }
0x119f   :  { %v4633_v28 = vpop.eup %4632 }
0x11a0   :  { %v1720_v33 = vsel %vm462_vm3, %v4633_v28, 0.0 }
0x11a1   :  { %1721 = vadd.xlane.f32.xlu0 %v1720_v33 }
0x11a5   :  { %1841 = vadd.xlane.f32.xlu0 %v1840_v36 }
0x11a9   :  { %1844 = vadd.xlane.f32.xlu0 %v1843_v46  ;;  %v3964_v46 = vld [vmem:[%s5813_s24] ss:$0 sm:$0xff] }
0x11bb   :  { %v1645_v38 = vpop.f32.mrf.mxu1 }
0x11bc   :  { %v1652_v40 = vadd.f32 %v1645_v38, %v5338_v29 }
0x11bd   :  { %v4286_v41 = vpop.f32.mrf.mxu1 }
0x11bf   :  { %v1648_v43 = vpop.f32.mrf.mxu1 }
0x11c0   :  { %v1653_v49 = vadd.f32 %v1648_v43, %v5340_v31  ;;  %v3965_v43 = vld [vmem:[%s5814_s5] ss:$0 sm:$0xff] }
0x11c1   :  { %v4287_v45 = vpop.f32.mrf.mxu1 }
0x1226   :  { %v1719_v39 = vpop.xlane.xlu0 %1718 }
0x1227   :  { %4634 = vrcp.f32 %v1719_v39 }
0x122a   :  { %v1722_v21 = vpop.xlane.xlu0 %1721 }
0x122b   :  { %4636 = vrcp.f32 %v1722_v21 }
0x122e   :  { %v1842_v47 = vpop.xlane.xlu0 %1841 }
0x122f   :  { %v1852_v48 = vmul.f32 0.03125, %v1842_v47  ;;  %v4548_v47 = vld [vmem:[%s5815_s30 + $0x8] sm:$0xff]  }
0x1230   :  { %4306 = vmatprep.subr.bf16.mxu1 %v4548_v47 }
0x1231   :  { %v1856_v11 = vsub.f32 %v5379_v30, %v1852_v48  ;;  %v4549_v48 = vld [vmem:[%s5815_s30] sm:$0xff]  }
0x1232   :  { %v1845_v57 = vpop.xlane.xlu0 %1844 }
0x1233   :  { %v1860_v16 = vmul.f32 %v1856_v11, %v1856_v11  ;;  %v1853_v3 = vmul.f32 0.03125, %v1845_v57 }
0x1234   :  { %v4635_v13 = vpop.eup %4634 }
0x1235   :  { %v1864_v24 = vsel %vm182_vm1, %v1860_v16, 0.0  ;;  %v1725_v29 = vmul.f32 %v4635_v13, %v4631_v25  ;;  %v1857_v7 = vsub.f32 %v5384_v35, %v1853_v3  ;;  %v4550_v16 = vld [vmem:[%s5816_s6 + $0x18] sm:$0xff]   ;;  %v4552_v3 = vld [vmem:[%s5816_s6 + $0x8] sm:$0xff]  }
0x1236   :  { %1865 = vadd.xlane.f32.xlu1 %v1864_v24  ;;  %4314 = vmatprep.subr.bf16.mxu0 %v4550_v16 }
0x1237   :  { %v1861_v15 = vmul.f32 %v1857_v7, %v1857_v7 }
0x1238   :  { %v4637_v19 = vpop.eup %4636 }
0x1239   :  { %v1726_v53 = vmul.f32 %v4637_v19, %v4633_v28  ;;  %v1867_v56 = vsel %vm182_vm1, %v1861_v15, 0.0 }
0x123b   :  { %v1727_v37 = vpack.c.bf16 %v1726_v53, %v1725_v29 }
0x123d   :  { %4297 = vmatmul.mubr.msk.bf16.vlgmr.msra.gmra.mxu1 %vm462_vm3, %v1727_v37 }
0x123e   :  { %4307 = vmatpush3.bf16.msra.mxu1 %v4548_v47 }
0x123f   :  { %4308 = vmatprep.subr.bf16.mxu1 %v4549_v48 }
0x1242   :  { %4309 = vmatpush3.bf16.msra.mxu1 %v4549_v48 }
0x12bf   :  { %v1866_v18 = vpop.xlane.xlu1 %1865 }
0x12c0   :  { %v1876_v1 = vmul.f32 0.03125, %v1866_v18 }
0x12c2   :  { %v1880_v22 = vadd.f32 1e-05, %v1876_v1 }
0x12c4   :  { %4638 = vrsqrt.f32 %v1880_v22 }
0x12d1   :  { %v4639_v59 = vpop.eup %4638 }
0x12d2   :  { %v1888_v36 = vmul.f32 %v4639_v59, %v1856_v11 }
0x12d4   :  { %v1898_v41 = vmul.f32 %v3964_v46, %v1888_v36 }
0x12d6   :  { %v1908_v45 = vadd.f32 %v3965_v43, %v1898_v41 }
0x12fd   :  { %v1770_v31 = vpop.f32.mrf.mxu1 }
0x12ff   :  { %v4298_v50 = vpop.f32.mrf.mxu1 }
0x1301   :  { %v1773_v51 = vpop.f32.mrf.mxu1 }
0x1302   :  { %v1777_v42 = vpack.c.bf16 %v1773_v51, %v1770_v31 }
0x1303   :  { %v4299_v54 = vpop.f32.mrf.mxu1 }
0x1304   :  { %4303 = vmatmul.mubr.msk.bf16.vlgmr.msra.gmra.mxu0 %vm462_vm3, %v1777_v42 }
0x1305   :  { %4315 = vmatpush3.bf16.msra.mxu0 %v4550_v16 }
0x13c4   :  { %v1815_v55 = vpop.f32.mrf.mxu0 }
0x13c5   :  { %v1822_v58 = vadd.f32 %v1815_v55, %v1652_v40 }
0x13c6   :  { %v4304_v61 = vpop.f32.mrf.mxu0 }
0x13c7   :  { %v1832_v62 = vadd.f32 %v3963_v17, %v1822_v58  ;;  %v4551_v61 = vld [vmem:[%s5816_s6 + $0x10] sm:$0xff]  }
0x13c8   :  { %v1818_v63 = vpop.f32.mrf.mxu0  ;;  %4316 = vmatprep.subr.bf16.mxu0 %v4551_v61 }
0x13c9   :  { %v5397_v2 = vadd.f32 %v4728_v0, %v1832_v62  ;;  %v1823_v5 = vadd.f32 %v1818_v63, %v1653_v49  ;;  %4317 = vmatpush3.bf16.msra.mxu0 %v4551_v61  ;;  %v4553_v62 = vld [vmem:[%s5816_s6] sm:$0xff]  }
0x13ca   :  { %v4305_v6 = vpop.f32.mrf.mxu0  ;;  %4318 = vmatprep.subr.bf16.mxu0 %v4552_v3 }
0x13cb   :  { %v1833_v9 = vadd.f32 %v3963_v17, %v1823_v5  ;;  %v1846_v10 = vsel %vm182_vm1, %v5397_v2, 0.0  ;;  %v3966_v5 = vld [vmem:[%s5817_s12] ss:$0 sm:$0xff] }
0x13cc   :  { %1847 = vadd.xlane.f32.xlu0 %v1846_v10 }
0x13cd   :  { %v5403_v52 = vadd.f32 %v4729_v12, %v1833_v9  ;;  %4319 = vmatpush3.bf16.msra.mxu0 %v4552_v3 }
0x13ce   :  { %4320 = vmatprep.subr.bf16.mxu0 %v4553_v62 }
0x13cf   :  { %v1849_v14 = vsel %vm182_vm1, %v5403_v52, 0.0 }
0x13d0   :  { %1850 = vadd.xlane.f32.xlu0 %v1849_v14 }
0x13d1   :  { %4321 = vmatpush3.bf16.msra.mxu0 %v4553_v62 }
0x13d2   :  { %4340 = vmatprep.subr.bf16.mxu0 %v4852_v44 }
0x13d4   :  { %1868 = vadd.xlane.f32.xlu0 %v1867_v56 }
0x1455   :  { %v1848_v20 = vpop.xlane.xlu0 %1847 }
0x1456   :  { %v1854_v4 = vmul.f32 0.03125, %v1848_v20 }
0x1458   :  { %v1858_v60 = vsub.f32 %v5397_v2, %v1854_v4 }
0x1459   :  { %v1851_v23 = vpop.xlane.xlu0 %1850 }
0x145a   :  { %v1855_v8 = vmul.f32 0.03125, %v1851_v23  ;;  %v1862_v17 = vmul.f32 %v1858_v60, %v1858_v60 }
0x145c   :  { %v1859_v25 = vsub.f32 %v5403_v52, %v1855_v8  ;;  %v1870_v27 = vsel %vm182_vm1, %v1862_v17, 0.0 }
0x145d   :  { %1871 = vadd.xlane.f32.xlu0 %v1870_v27  ;;  %v1869_v34 = vpop.xlane.xlu0 %1868 }
0x145e   :  { %v1877_v28 = vmul.f32 0.03125, %v1869_v34  ;;  %v1863_v26 = vmul.f32 %v1859_v25, %v1859_v25 }
0x1460   :  { %v1881_v32 = vadd.f32 1e-05, %v1877_v28  ;;  %v1873_v33 = vsel %vm182_vm1, %v1863_v26, 0.0 }
0x1461   :  { %1874 = vadd.xlane.f32.xlu0 %v1873_v33 }
0x1462   :  { %4640 = vrsqrt.f32 %v1881_v32 }
0x146f   :  { %v4641_v38 = vpop.eup %4640 }
0x1470   :  { %v1889_v40 = vmul.f32 %v4641_v38, %v1857_v7 }
0x1472   :  { %v1899_v49 = vmul.f32 %v3964_v46, %v1889_v40 }
0x1474   :  { %v1909_v39 = vadd.f32 %v3965_v43, %v1899_v49 }
0x1476   :  { %v1912_v21 = vpack.c.bf16 %v1909_v39, %v1908_v45 }
0x1478   :  { %4310 = vmatprep.mubr.msk.bf16.mxu1 %vm182_vm1, %v1912_v21 }
0x14e6   :  { %v1872_v11 = vpop.xlane.xlu0 %1871 }
0x14e7   :  { %v1878_v24 = vmul.f32 0.03125, %v1872_v11 }
0x14e9   :  { %v1882_v13 = vadd.f32 1e-05, %v1878_v24 }
0x14ea   :  { %v1875_v19 = vpop.xlane.xlu0 %1874 }
0x14eb   :  { %4642 = vrsqrt.f32 %v1882_v13  ;;  %v1879_v29 = vmul.f32 0.03125, %v1875_v19 }
0x14ed   :  { %v1883_v53 = vadd.f32 1e-05, %v1879_v29 }
0x14ef   :  { %4644 = vrsqrt.f32 %v1883_v53 }
0x14f8   :  { %v4643_v37 = vpop.eup %4642 }
0x14f9   :  { %v1890_v31 = vmul.f32 %v4643_v37, %v1858_v60  ;;  %v3977_v60 = vld [vmem:[%s5818_s27] ss:$0 sm:$0xff] }
0x14fb   :  { %v1900_v42 = vmul.f32 %v3964_v46, %v1890_v31  ;;  %v4554_v31 = vld [vmem:[%s5819_s4 + $0x8] sm:$0xff]  }
0x14fc   :  { %v4645_v50 = vpop.eup %4644  ;;  %4326 = vmatprep.subr.bf16.mxu1 %v4554_v31 }
0x14fd   :  { %v1891_v51 = vmul.f32 %v4645_v50, %v1859_v25  ;;  %v1910_v57 = vadd.f32 %v3965_v43, %v1900_v42  ;;  %v4555_v50 = vld [vmem:[%s5819_s4] sm:$0xff]  }
0x14ff   :  { %v1901_v54 = vmul.f32 %v3964_v46, %v1891_v51 }
0x1501   :  { %v1911_v55 = vadd.f32 %v3965_v43, %v1901_v54 }
0x1503   :  { %v1913_v58 = vpack.c.bf16 %v1911_v55, %v1910_v57 }
0x1505   :  { %4311 = vmatmul.mubr.msk.bf16.vlgmr.msra.gmra.mxu1 %vm182_vm1, %v1913_v58 }
0x1506   :  { %4327 = vmatpush3.bf16.msra.mxu1 %v4554_v31 }
0x1507   :  { %4328 = vmatprep.subr.bf16.mxu1 %v4555_v50 }
0x150a   :  { %4329 = vmatpush3.bf16.msra.mxu1 %v4555_v50  ;;  %v5496_v50 = vld [vmem:[%s5822_s23 + $0x8] sm:$0xff] }
0x150b   :  { %4334 = vmatprep.subr.bf16.mxu1 %v4852_v44 }
0x15c5   :  { %v4312_v63 = vpop.f32.mrf.mxu1 }
0x15c6   :  { %v1986_v10 = vadd.f32 %v4312_v63, %v3966_v5 }
0x15c7   :  { %v1977_v0 = vpop.f32.mrf.mxu1 }
0x15c8   :  { %v1978_v7 = vadd.f32 %v3966_v5, %v1977_v0  ;;  %v1994_v1 = vmax.f32 %v1986_v10, 0.0 }
0x15c9   :  { %v4313_v6 = vpop.f32.mrf.mxu1 }
0x15ca   :  { %v1989_v9 = vadd.f32 %v4313_v6, %v3966_v5  ;;  %v1992_v56 = vmax.f32 %v1978_v7, 0.0 }
0x15cb   :  { %v1980_v12 = vpop.f32.mrf.mxu1 }
0x15cc   :  { %v1981_v14 = vadd.f32 %v3966_v5, %v1980_v12  ;;  %v1995_v15 = vmax.f32 %v1989_v9, 0.0  ;;  %v3978_v12 = vld [vmem:[%s5820_s18] ss:$0 sm:$0xff] }
0x15ce   :  { %v1993_v18 = vmax.f32 %v1981_v14, 0.0  ;;  %v1997_v4 = vpack.c.bf16 %v1995_v15, %v1994_v1 }
0x15d0   :  { %v1996_v20 = vpack.c.bf16 %v1993_v18, %v1992_v56 }
0x15d2   :  { %4322 = vmatprep.mubr.msk.bf16.mxu0 %vm2030_vm5, %v1996_v20  ;;  %v3979_v20 = vld [vmem:[%s5821_s22] ss:$0 sm:$0xff] }
0x15d3   :  { %4323 = vmatmul.mubr.msk.bf16.vlgmr.msra.gmra.mxu0 %vm2030_vm5, %v1997_v4 }
0x15d4   :  { %4342 = vmatprep.mubr.msk.bf16.mxu0 %vm4853_vm2, %v4852_v44 }
0x1693   :  { %v4324_v22 = vpop.f32.mrf.mxu0 }
0x1694   :  { %v2088_v23 = vadd.f32 %v4324_v22, %v5397_v2 }
0x1695   :  { %v2071_v8 = vpop.f32.mrf.mxu0 }
0x1696   :  { %v5430_v17 = vadd.f32 %v3977_v60, %v2088_v23  ;;  %v2086_v25 = vadd.f32 %v2071_v8, %v5379_v30 }
0x1697   :  { %v4325_v27 = vpop.f32.mrf.mxu0 }
0x1698   :  { %v5433_v34 = vadd.f32 %v3977_v60, %v2086_v25  ;;  %v2109_v28 = vsel %vm182_vm1, %v5430_v17, 0.0  ;;  %v2089_v33 = vadd.f32 %v4325_v27, %v5403_v52 }
0x1699   :  { %2110 = vadd.xlane.f32.xlu0 %v2109_v28  ;;  %v2074_v26 = vpop.f32.mrf.mxu0 }
0x169a   :  { %v2087_v32 = vadd.f32 %v2074_v26, %v5384_v35  ;;  %v2103_v2 = vsel %vm182_vm1, %v5433_v34, 0.0  ;;  %v5443_v36 = vadd.f32 %v3977_v60, %v2089_v33 }
0x169c   :  { %v5439_v59 = vadd.f32 %v3977_v60, %v2087_v32  ;;  %v2112_v46 = vsel %vm182_vm1, %v5443_v36, 0.0  ;;  %v3980_v32 = vld [vmem:[#allocation2] ss:$0 sm:$0xff] }
0x169d   :  { %2104 = vadd.xlane.f32.xlu0 %v2103_v2 }
0x169e   :  { %v2106_v30 = vsel %vm182_vm1, %v5439_v59, 0.0 }
0x16a1   :  { %2107 = vadd.xlane.f32.xlu0 %v2106_v30 }
0x16a5   :  { %2113 = vadd.xlane.f32.xlu0 %v2112_v46 }
0x1722   :  { %v2111_v38 = vpop.xlane.xlu0 %2110 }
0x1723   :  { %v2117_v35 = vmul.f32 0.03125, %v2111_v38 }
0x1725   :  { %v2121_v52 = vsub.f32 %v5430_v17, %v2117_v35 }
0x1726   :  { %v2105_v40 = vpop.xlane.xlu0 %2104 }
0x1727   :  { %v2115_v41 = vmul.f32 0.03125, %v2105_v40  ;;  %v2125_v43 = vmul.f32 %v2121_v52, %v2121_v52 }
0x1729   :  { %v2119_v49 = vsub.f32 %v5433_v34, %v2115_v41  ;;  %v2133_v45 = vsel %vm182_vm1, %v2125_v43, 0.0 }
0x172a   :  { %2134 = vadd.xlane.f32.xlu1 %v2133_v45  ;;  %v2108_v39 = vpop.xlane.xlu0 %2107 }
0x172b   :  { %v2116_v21 = vmul.f32 0.03125, %v2108_v39  ;;  %v2123_v47 = vmul.f32 %v2119_v49, %v2119_v49 }
0x172d   :  { %v2120_v48 = vsub.f32 %v5439_v59, %v2116_v21  ;;  %v2127_v16 = vsel %vm182_vm1, %v2123_v47, 0.0 }
0x172e   :  { %2128 = vadd.xlane.f32.xlu0 %v2127_v16  ;;  %v2114_v11 = vpop.xlane.xlu0 %2113 }
0x172f   :  { %v2118_v24 = vmul.f32 0.03125, %v2114_v11  ;;  %v2124_v13 = vmul.f32 %v2120_v48, %v2120_v48 }
0x1731   :  { %v2122_v19 = vsub.f32 %v5443_v36, %v2118_v24  ;;  %v2130_v29 = vsel %vm182_vm1, %v2124_v13, 0.0 }
0x1732   :  { %2131 = vadd.xlane.f32.xlu0 %v2130_v29  ;;  %v5492_v29 = vld [vmem:[%s5822_s23] sm:$0xff] }
0x1733   :  { %v2126_v53 = vmul.f32 %v2122_v19, %v2122_v19 }
0x1735   :  { %v2136_v37 = vsel %vm182_vm1, %v2126_v53, 0.0 }
0x1736   :  { %2137 = vadd.xlane.f32.xlu0 %v2136_v37 }
0x17b3   :  { %v2135_v51 = vpop.xlane.xlu1 %2134 }
0x17b4   :  { %v2141_v42 = vmul.f32 0.03125, %v2135_v51 }
0x17b6   :  { %v2145_v55 = vadd.f32 1e-05, %v2141_v42 }
0x17b7   :  { %v2129_v54 = vpop.xlane.xlu0 %2128 }
0x17b8   :  { %v2139_v57 = vmul.f32 0.03125, %v2129_v54 }
0x17ba   :  { %v2143_v58 = vadd.f32 1e-05, %v2139_v57 }
0x17bb   :  { %v2132_v61 = vpop.xlane.xlu0 %2131 }
0x17bc   :  { %4646 = vrsqrt.f32 %v2143_v58  ;;  %v2140_v3 = vmul.f32 0.03125, %v2132_v61 }
0x17bd   :  { %4648 = vrsqrt.f32 %v2145_v55  ;;  %v5501_v55 = vld [vmem:[%s5822_s23 + $0x10] sm:$0xff] }
0x17be   :  { %v2144_v62 = vadd.f32 1e-05, %v2140_v3 }
0x17bf   :  { %v2138_v63 = vpop.xlane.xlu0 %2137 }
0x17c0   :  { %4650 = vrsqrt.f32 %v2144_v62  ;;  %v2142_v0 = vmul.f32 0.03125, %v2138_v63  ;;  %v5506_v63 = vld [vmem:[%s5822_s23 + $0x18] sm:$0xff] }
0x17c2   :  { %v2146_v5 = vadd.f32 1e-05, %v2142_v0 }
0x17c4   :  { %4652 = vrsqrt.f32 %v2146_v5 }
0x17c9   :  { %v4647_v6 = vpop.eup %4646 }
0x17ca   :  { %v2151_v7 = vmul.f32 %v4647_v6, %v2119_v49  ;;  %v4649_v9 = vpop.eup %4648 }
0x17cb   :  { %v2153_v14 = vmul.f32 %v4649_v9, %v2121_v52 }
0x17cc   :  { %v2161_v56 = vmul.f32 %v3978_v12, %v2151_v7 }
0x17cd   :  { %v4651_v10 = vpop.eup %4650  ;;  %v2163_v23 = vmul.f32 %v3978_v12, %v2153_v14 }
0x17ce   :  { %v2152_v15 = vmul.f32 %v4651_v10, %v2120_v48  ;;  %v2171_v22 = vadd.f32 %v3979_v20, %v2161_v56 }
0x17cf   :  { %v2173_v27 = vadd.f32 %v3979_v20, %v2163_v23 }
0x17d0   :  { %v2162_v18 = vmul.f32 %v3978_v12, %v2152_v15 }
0x17d1   :  { %v4653_v1 = vpop.eup %4652 }
0x17d2   :  { %v2154_v4 = vmul.f32 %v4653_v1, %v2122_v19  ;;  %v2172_v60 = vadd.f32 %v3979_v20, %v2162_v18 }
0x17d4   :  { %v2175_v8 = vpack.c.bf16 %v2172_v60, %v2171_v22  ;;  %v2164_v25 = vmul.f32 %v3978_v12, %v2154_v4 }
0x17d6   :  { %4330 = vmatprep.mubr.msk.bf16.mxu1 %vm182_vm1, %v2175_v8  ;;  %v2174_v28 = vadd.f32 %v3979_v20, %v2164_v25 }
0x17d8   :  { %v2176_v26 = vpack.c.bf16 %v2174_v28, %v2173_v27 }
0x17da   :  { %4331 = vmatmul.mubr.msk.bf16.vlgmr.msra.gmra.mxu1 %vm182_vm1, %v2176_v26 }
0x17db   :  { %4336 = vmatprep.mubr.msk.bf16.mxu1 %vm4853_vm2, %v4852_v44 }
0x189a   :  { %v4332_v33 = vpop.f32.mrf.mxu1 }
0x189b   :  { %v2249_v2 = vadd.f32 %v4332_v33, %v3980_v32 }
0x189c   :  { %v2240_v30 = vpop.f32.mrf.mxu1 }
0x189d   :  { %v2270_v35 = vmul.f32 0.35355338, %v2249_v2  ;;  %v2241_v40 = vadd.f32 %v3980_v32, %v2240_v30 }
0x189e   :  { %v4333_v46 = vpop.f32.mrf.mxu1 }
0x189f   :  { %v2252_v38 = vadd.f32 %v4333_v46, %v3980_v32  ;;  %v2268_v47 = vmul.f32 0.35355338, %v2241_v40 }
0x18a0   :  { %v2243_v52 = vpop.f32.mrf.mxu1 }
0x18a1   :  { %v2271_v41 = vmul.f32 0.35355338, %v2252_v38  ;;  %v5466_v43 = vpack.c.bf16 %v2252_v38, %v2249_v2  ;;  %v2244_v49 = vadd.f32 %v3980_v32, %v2243_v52 }
0x18a3   :  { %v5468_v45 = vpack.c.bf16 %v2271_v41, %v2270_v35  ;;  %v2269_v39 = vmul.f32 0.35355338, %v2244_v49  ;;  %v5470_v21 = vpack.c.bf16 %v2244_v49, %v2241_v40 }
0x18a5   :  { %2400 = vrot.lane.b32.xlu0 %v5470_v21, %s4856_s17  ;;  %2277 = vrot.lane.b32.xlu1 %v5470_v21, %s4855_s13  ;;  %v5476_v48 = vpack.c.bf16 %v2269_v39, %v2268_v47 }
0x18a9   :  { %2398 = vrot.lane.b32.xlu1 %v5476_v48, %s4854_s9 }
0x1917   :  { %v2278_v16 = vpop.permute.xlu1 %2277  ;;  %v2401_v24 = vpop.permute.xlu0 %2400 }
0x1918   :  { %v2283_v11 = vsel %vm462_vm3, %v2278_v16, 0  ;;  %v2406_v13 = vsel %vm462_vm3, %v2401_v24, 0 }
0x1919   :  { %4335 = vmatpush3.bf16.xpose.msra.mxu1 %v2283_v11 }
0x191a   :  { %4346 = vmatprep.subr.bf16.mxu1 %v4852_v44 }
0x191b   :  { %v2399_v19 = vpop.permute.xlu1 %2398 }
0x1920   :  { %4337 = vmatmul.mubr.msk.bf16.vlgmr.msra.gmra.mxu1 %vm462_vm3, %v5476_v48 }
0x1921   :  { %4347 = vmatpush3.bf16.xpose.msra.mxu1 %v2406_v13  ;;  %4348 = vmatprep.mubr.msk.bf16.mxu1 %vm4853_vm2, %v4852_v44 }
0x1922   :  { %4358 = vmatprep.subr.bf16.mxu1 %v4852_v44 }
0x1928   :  { %4349 = vmatmul.mubr.msk.bf16.vlgmr.msra.gmra.mxu1 %vm462_vm3, %v2399_v19 }
0x1929   :  { %4360 = vmatprep.mubr.msk.bf16.mxu1 %vm4853_vm2, %v4852_v44 }
0x19e0   :  { %v2319_v53 = vpop.f32.mrf.mxu1 }
0x19e1   :  { %v2320_v37 = vadd.f32 %v2319_v53, %v5492_v29 }
0x19e2   :  { %v4338_v31 = vpop.f32.mrf.mxu1 }
0x19e3   :  { %v2326_v51 = vsel %vm260_vm0, %v2320_v37, -inf }
0x19e4   :  { %2327 = vmax.xlane.f32.xlu1 %v2326_v51  ;;  %v2322_v42 = vpop.f32.mrf.mxu1  ;;  %v2264_v51 = vld [vmem:[%s5823_s28 + $0x4] sm:$0xf] }
0x19e5   :  { %v2323_v54 = vadd.f32 %v2322_v42, %v5496_v50  ;;  %v5539_v42 = vsel %vm539_vm4, %v2264_v51, 0 }
0x19e6   :  { %v4339_v57 = vpop.f32.mrf.mxu1  ;;  %4359 = vmatpush3.bf16.msra.mxu1 %v5539_v42 }
0x19e7   :  { %v2329_v58 = vsel %vm260_vm0, %v2323_v54, -inf  ;;  %4370 = vmatprep.subr.bf16.mxu1 %v4852_v44 }
0x19e8   :  { %2330 = vmax.xlane.f32.xlu0 %v2329_v58  ;;  %v2442_v61 = vpop.f32.mrf.mxu1 }
0x19e9   :  { %v2443_v3 = vadd.f32 %v2442_v61, %v5501_v55 }
0x19ea   :  { %v4350_v62 = vpop.f32.mrf.mxu1 }
0x19eb   :  { %v2449_v0 = vsel %vm260_vm0, %v2443_v3, -inf }
0x19ec   :  { %2450 = vmax.xlane.f32.xlu0 %v2449_v0  ;;  %v2445_v5 = vpop.f32.mrf.mxu1 }
0x19ed   :  { %v2446_v6 = vadd.f32 %v2445_v5, %v5506_v63 }
0x19ee   :  { %v4351_v7 = vpop.f32.mrf.mxu1 }
0x19ef   :  { %v2452_v9 = vsel %vm260_vm0, %v2446_v6, -inf }
0x19f0   :  { %2453 = vmax.xlane.f32.xlu1 %v2452_v9 }
0x1a6d   :  { %v2328_v10 = vpop.xlane.xlu1 %2327 }
0x1a6e   :  { %v2332_v12 = vsub.f32 %v2320_v37, %v2328_v10  ;;  %v2263_v37 = vld [vmem:[%s5823_s28] sm:$0xf] }
0x1a6f   :  { %v5533_v31 = vsel %vm539_vm4, %v2263_v37, 0 }
0x1a70   :  { %v2334_v14 = vmul.f32 1.442695, %v2332_v12 }
0x1a71   :  { %v2331_v15 = vpop.xlane.xlu0 %2330 }
0x1a72   :  { %4654 = vpow2.f32 %v2334_v14  ;;  %v2333_v56 = vsub.f32 %v2323_v54, %v2331_v15 }
0x1a74   :  { %v2336_v18 = vmul.f32 1.442695, %v2333_v56 }
0x1a75   :  { %v2451_v1 = vpop.xlane.xlu0 %2450 }
0x1a76   :  { %4656 = vpow2.f32 %v2336_v18  ;;  %v2455_v20 = vsub.f32 %v2443_v3, %v2451_v1 }
0x1a78   :  { %v2457_v4 = vmul.f32 1.442695, %v2455_v20 }
0x1a79   :  { %v2454_v22 = vpop.xlane.xlu1 %2453 }
0x1a7a   :  { %4658 = vpow2.f32 %v2457_v4  ;;  %v2456_v60 = vsub.f32 %v2446_v6, %v2454_v22 }
0x1a7c   :  { %v2459_v23 = vmul.f32 1.442695, %v2456_v60 }
0x1a7e   :  { %4660 = vpow2.f32 %v2459_v23 }
0x1a7f   :  { %v4655_v8 = vpop.eup %4654 }
0x1a80   :  { %v2338_v25 = vsel %vm260_vm0, %v4655_v8, 0.0 }
0x1a81   :  { %2339 = vadd.xlane.f32.xlu0 %v2338_v25 }
0x1a83   :  { %v4657_v27 = vpop.eup %4656 }
0x1a84   :  { %v2341_v28 = vsel %vm260_vm0, %v4657_v27, 0.0 }
0x1a85   :  { %2342 = vadd.xlane.f32.xlu1 %v2341_v28 }
0x1a87   :  { %v4659_v26 = vpop.eup %4658 }
0x1a88   :  { %v2461_v32 = vsel %vm260_vm0, %v4659_v26, 0.0 }
0x1a89   :  { %2462 = vadd.xlane.f32.xlu0 %v2461_v32 }
0x1a8b   :  { %v4661_v33 = vpop.eup %4660 }
0x1a8c   :  { %v2464_v2 = vsel %vm260_vm0, %v4661_v33, 0.0 }
0x1a8d   :  { %2465 = vadd.xlane.f32.xlu1 %v2464_v2 }
0x1a9e   :  { %2472 = vrot.lane.b32.xlu1 %v5470_v21, %s4861_s26 }
0x1a9f   :  { %2349 = vrot.lane.b32.xlu0 %v5470_v21, %s4862_s0 }
0x1aa2   :  { %2616 = vrot.lane.b32.xlu1 %v5470_v21, %s4859_s8 }
0x1aa3   :  { %2614 = vrot.lane.b32.xlu0 %v5476_v48, %s4857_s21 }
0x1b0a   :  { %v2340_v30 = vpop.xlane.xlu0 %2339 }
0x1b0b   :  { %4662 = vrcp.f32 %v2340_v30 }
0x1b0e   :  { %v2343_v46 = vpop.xlane.xlu1 %2342 }
0x1b0f   :  { %4664 = vrcp.f32 %v2343_v46 }
0x1b12   :  { %v2463_v38 = vpop.xlane.xlu0 %2462 }
0x1b13   :  { %4666 = vrcp.f32 %v2463_v38 }
0x1b16   :  { %v2350_v35 = vpop.permute.xlu0 %2349  ;;  %v2466_v52 = vpop.xlane.xlu1 %2465 }
0x1b17   :  { %4668 = vrcp.f32 %v2466_v52  ;;  %4341 = vmatpush3.bf16.msra.mxu0 %v2350_v35 }
0x1b18   :  { %4352 = vmatprep.subr.bf16.mxu0 %v4852_v44  ;;  %v4663_v40 = vpop.eup %4662 }
0x1b19   :  { %v2346_v49 = vmul.f32 %v4663_v40, %v4655_v8  ;;  %v5559_v8 = vld [vmem:[%s5822_s23 + $0x20] sm:$0xff] }
0x1b1a   :  { %v2473_v16 = vpop.permute.xlu1 %2472  ;;  %v2615_v12 = vpop.permute.xlu0 %2614 }
0x1b1c   :  { %v4665_v41 = vpop.eup %4664 }
0x1b1d   :  { %v2347_v39 = vmul.f32 %v4665_v41, %v4657_v27 }
0x1b1e   :  { %v2617_v5 = vpop.permute.xlu1 %2616 }
0x1b1f   :  { %v2348_v47 = vpack.c.bf16 %v2347_v39, %v2346_v49  ;;  %v2622_v10 = vsel %vm462_vm3, %v2617_v5, 0 }
0x1b20   :  { %v4667_v11 = vpop.eup %4666 }
0x1b21   :  { %4343 = vmatmul.mubr.msk.bf16.vlgmr.msra.gmra.mxu0 %vm260_vm0, %v2348_v47  ;;  %v2469_v13 = vmul.f32 %v4667_v11, %v4659_v26  ;;  %v5563_v26 = vld [vmem:[%s5822_s23 + $0x28] sm:$0xff] }
0x1b22   :  { %4353 = vmatpush3.bf16.msra.mxu0 %v2473_v16  ;;  %4354 = vmatprep.mubr.msk.bf16.mxu0 %vm4853_vm2, %v4852_v44 }
0x1b23   :  { %4364 = vmatprep.subr.bf16.mxu0 %v4852_v44 }
0x1b24   :  { %v4669_v24 = vpop.eup %4668 }
0x1b25   :  { %v2470_v19 = vmul.f32 %v4669_v24, %v4661_v33 }
0x1b27   :  { %v2471_v53 = vpack.c.bf16 %v2470_v19, %v2469_v13 }
0x1b29   :  { %4355 = vmatmul.mubr.msk.bf16.vlgmr.msra.gmra.mxu0 %vm260_vm0, %v2471_v53 }
0x1b2a   :  { %4366 = vmatprep.mubr.msk.bf16.mxu0 %vm4853_vm2, %v4852_v44  ;;  %4365 = vmatpush3.bf16.msra.mxu0 %v5533_v31 }
0x1b2b   :  { %4376 = vmatprep.subr.bf16.mxu0 %v4852_v44 }
0x1be1   :  { %v2389_v54 = vpop.f32.mrf.mxu0 }
0x1be3   :  { %v4344_v57 = vpop.f32.mrf.mxu0 }
0x1be5   :  { %v2392_v58 = vpop.f32.mrf.mxu0 }
0x1be6   :  { %v2396_v61 = vpack.c.bf16 %v2392_v58, %v2389_v54 }
0x1be7   :  { %v4345_v3 = vpop.f32.mrf.mxu0 }
0x1be8   :  { %4367 = vmatmul.mubr.msk.bf16.vlgmr.msra.gmra.mxu0 %vm462_vm3, %v2396_v61  ;;  %v2265_v3 = vld [vmem:[%s5823_s28 + $0x8] sm:$0xf] }
0x1be9   :  { %v2512_v62 = vpop.f32.mrf.mxu0  ;;  %4378 = vmatprep.mubr.msk.bf16.mxu0 %vm4853_vm2, %v4852_v44 }
0x1beb   :  { %v4356_v0 = vpop.f32.mrf.mxu0 }
0x1bed   :  { %v2515_v6 = vpop.f32.mrf.mxu0 }
0x1bee   :  { %v2519_v7 = vpack.c.bf16 %v2515_v6, %v2512_v62  ;;  %v5587_v62 = vsel %vm539_vm4, %v2265_v3, 0 }
0x1bef   :  { %v4357_v9 = vpop.f32.mrf.mxu0 }
0x1bf0   :  { %4361 = vmatmul.mubr.msk.bf16.vlgmr.msra.gmra.mxu1 %vm462_vm3, %v2519_v7 }
0x1bf1   :  { %4371 = vmatpush3.bf16.xpose.msra.mxu1 %v2622_v10  ;;  %4372 = vmatprep.mubr.msk.bf16.mxu1 %vm4853_vm2, %v4852_v44  ;;  %v5592_v10 = vld [vmem:[%s5822_s23 + $0x30] sm:$0xff] }
0x1bf2   :  { %4382 = vmatprep.subr.bf16.mxu1 %v4852_v44 }
0x1bf8   :  { %4373 = vmatmul.mubr.msk.bf16.vlgmr.msra.gmra.mxu1 %vm462_vm3, %v2615_v12 }
0x1bf9   :  { %4384 = vmatprep.mubr.msk.bf16.mxu1 %vm4853_vm2, %v4852_v44  ;;  %4383 = vmatpush3.bf16.msra.mxu1 %v5587_v62 }
0x1bfa   :  { %4394 = vmatprep.subr.bf16.mxu1 %v4852_v44 }
0x1ca8   :  { %v2607_v14 = vpop.f32.mrf.mxu0 }
0x1caa   :  { %v4368_v15 = vpop.f32.mrf.mxu0 }
0x1cac   :  { %v2610_v56 = vpop.f32.mrf.mxu0 }
0x1cae   :  { %v4369_v18 = vpop.f32.mrf.mxu0 }
0x1cb0   :  { %v2560_v1 = vpop.f32.mrf.mxu1 }
0x1cb1   :  { %v5554_v20 = vadd.f32 %v2607_v14, %v2560_v1 }
0x1cb2   :  { %v4362_v4 = vpop.f32.mrf.mxu1 }
0x1cb4   :  { %v2563_v22 = vpop.f32.mrf.mxu1 }
0x1cb5   :  { %v5556_v60 = vadd.f32 %v2610_v56, %v2563_v22  ;;  %v5599_v56 = vld [vmem:[%s5822_s23 + $0x38] sm:$0xff] }
0x1cb6   :  { %v4363_v23 = vpop.f32.mrf.mxu1 }
0x1cb8   :  { %v2658_v25 = vpop.f32.mrf.mxu1 }
0x1cb9   :  { %v2659_v27 = vadd.f32 %v2658_v25, %v5559_v8 }
0x1cba   :  { %v4374_v28 = vpop.f32.mrf.mxu1 }
0x1cbb   :  { %v2665_v32 = vsel %vm260_vm0, %v2659_v27, -inf }
0x1cbc   :  { %2666 = vmax.xlane.f32.xlu1 %v2665_v32  ;;  %v2661_v33 = vpop.f32.mrf.mxu1 }
0x1cbd   :  { %v2662_v2 = vadd.f32 %v2661_v33, %v5563_v26 }
0x1cbe   :  { %v4375_v30 = vpop.f32.mrf.mxu1 }
0x1cbf   :  { %v2668_v46 = vsel %vm260_vm0, %v2662_v2, -inf }
0x1cc0   :  { %2669 = vmax.xlane.f32.xlu0 %v2668_v46 }
0x1d45   :  { %v2667_v38 = vpop.xlane.xlu1 %2666 }
0x1d46   :  { %v2671_v35 = vsub.f32 %v2659_v27, %v2667_v38 }
0x1d48   :  { %v2673_v52 = vmul.f32 1.442695, %v2671_v35 }
0x1d49   :  { %v2670_v40 = vpop.xlane.xlu0 %2669 }
0x1d4a   :  { %4670 = vpow2.f32 %v2673_v52  ;;  %v2672_v41 = vsub.f32 %v2662_v2, %v2670_v40 }
0x1d4c   :  { %v2675_v49 = vmul.f32 1.442695, %v2672_v41 }
0x1d4e   :  { %4672 = vpow2.f32 %v2675_v49 }
0x1d57   :  { %v4671_v39 = vpop.eup %4670 }
0x1d58   :  { %v2677_v47 = vsel %vm260_vm0, %v4671_v39, 0.0 }
0x1d59   :  { %2678 = vadd.xlane.f32.xlu0 %v2677_v47 }
0x1d5b   :  { %v4673_v16 = vpop.eup %4672 }
0x1d5c   :  { %v2680_v11 = vsel %vm260_vm0, %v4673_v16, 0.0 }
0x1d5d   :  { %2681 = vadd.xlane.f32.xlu1 %v2680_v11 }
0x1d6e   :  { %2787 = vrot.lane.b32.xlu1 %v5470_v21, %s4860_s14 }
0x1d6f   :  { %2688 = vrot.lane.b32.xlu0 %v5470_v21, %s4863_s1 }
0x1d72   :  { %2785 = vrot.lane.b32.xlu1 %v5476_v48, %s4858_s25 }
0x1de2   :  { %v2679_v24 = vpop.xlane.xlu0 %2678 }
0x1de3   :  { %4674 = vrcp.f32 %v2679_v24 }
0x1de6   :  { %v2682_v13 = vpop.xlane.xlu1 %2681  ;;  %v2689_v19 = vpop.permute.xlu0 %2688 }
0x1de7   :  { %4676 = vrcp.f32 %v2682_v13  ;;  %4377 = vmatpush3.bf16.msra.mxu0 %v2689_v19 }
0x1de8   :  { %4388 = vmatprep.subr.bf16.mxu0 %v4852_v44 }
0x1dea   :  { %v2788_v57 = vpop.permute.xlu1 %2787 }
0x1deb   :  { %v2793_v61 = vsel %vm462_vm3, %v2788_v57, 0 }
0x1dee   :  { %v2786_v48 = vpop.permute.xlu1 %2785 }
0x1df0   :  { %v4675_v53 = vpop.eup %4674 }
0x1df1   :  { %v2685_v51 = vmul.f32 %v4675_v53, %v4671_v39 }
0x1df4   :  { %v4677_v37 = vpop.eup %4676 }
0x1df5   :  { %v2686_v54 = vmul.f32 %v4677_v37, %v4673_v16 }
0x1df7   :  { %v2687_v58 = vpack.c.bf16 %v2686_v54, %v2685_v51 }
0x1df9   :  { %4379 = vmatmul.mubr.msk.bf16.vlgmr.msra.gmra.mxu0 %vm260_vm0, %v2687_v58  ;;  %v2266_v58 = vld [vmem:[%s5823_s28 + $0xc] sm:$0xf] }
0x1dfa   :  { %4389 = vmatpush3.bf16.xpose.msra.mxu0 %v2793_v61  ;;  %4390 = vmatprep.mubr.msk.bf16.mxu0 %vm4853_vm2, %v4852_v44  ;;  %v5639_v61 = vsel %vm539_vm4, %v2266_v58, 0 }
0x1dfb   :  { %4400 = vmatprep.subr.bf16.mxu0 %v4852_v44 }
0x1e01   :  { %4391 = vmatmul.mubr.msk.bf16.vlgmr.msra.gmra.mxu0 %vm462_vm3, %v2786_v48 }
0x1e02   :  { %4402 = vmatprep.mubr.msk.bf16.mxu0 %vm4853_vm2, %v4852_v44  ;;  %4401 = vmatpush3.bf16.msra.mxu0 %v5639_v61 }
0x1e03   :  { %4412 = vmatprep.subr.bf16.mxu0 %v4852_v44 }
0x1eb9   :  { %v2728_v0 = vpop.f32.mrf.mxu0 }
0x1ebb   :  { %v4380_v5 = vpop.f32.mrf.mxu0 }
0x1ebd   :  { %v2731_v6 = vpop.f32.mrf.mxu0 }
0x1ebe   :  { %v2735_v7 = vpack.c.bf16 %v2731_v6, %v2728_v0 }
0x1ebf   :  { %v4381_v9 = vpop.f32.mrf.mxu0 }
0x1ec0   :  { %4385 = vmatmul.mubr.msk.bf16.vlgmr.msra.gmra.mxu1 %vm462_vm3, %v2735_v7 }
0x1ec1   :  { %v2829_v12 = vpop.f32.mrf.mxu0  ;;  %4396 = vmatprep.mubr.msk.bf16.mxu1 %vm4853_vm2, %v4852_v44 }
0x1ec2   :  { %v2830_v14 = vadd.f32 %v2829_v12, %v5592_v10 }
0x1ec3   :  { %v4392_v15 = vpop.f32.mrf.mxu0 }
0x1ec4   :  { %v2836_v18 = vsel %vm260_vm0, %v2830_v14, -inf }
0x1ec5   :  { %2837 = vmax.xlane.f32.xlu0 %v2836_v18  ;;  %v2832_v1 = vpop.f32.mrf.mxu0 }
0x1ec6   :  { %v2833_v4 = vadd.f32 %v2832_v1, %v5599_v56 }
0x1ec7   :  { %v4393_v22 = vpop.f32.mrf.mxu0 }
0x1ec8   :  { %v2839_v23 = vsel %vm260_vm0, %v2833_v4, -inf }
0x1ec9   :  { %2840 = vmax.xlane.f32.xlu1 %v2839_v23 }
0x1eda   :  { %2859 = vrot.lane.b32.xlu1 %v5470_v21, %s4864_s2 }
0x1ede   :  { %3080 = vrot.lane.b32.xlu1 %v5466_v43, %s4856_s17 }
0x1ee2   :  { %3078 = vrot.lane.b32.xlu1 %v5468_v45, %s4854_s9 }
0x1f4e   :  { %v2838_v25 = vpop.xlane.xlu0 %2837 }
0x1f4f   :  { %v2842_v27 = vsub.f32 %v2830_v14, %v2838_v25 }
0x1f51   :  { %v2844_v28 = vmul.f32 1.442695, %v2842_v27 }
0x1f52   :  { %v2841_v32 = vpop.xlane.xlu1 %2840 }
0x1f53   :  { %4678 = vpow2.f32 %v2844_v28  ;;  %v2843_v33 = vsub.f32 %v2833_v4, %v2841_v32 }
0x1f55   :  { %v2846_v2 = vmul.f32 1.442695, %v2843_v33 }
0x1f56   :  { %v2860_v30 = vpop.permute.xlu1 %2859 }
0x1f57   :  { %4680 = vpow2.f32 %v2846_v2  ;;  %4395 = vmatpush3.bf16.msra.mxu1 %v2860_v30 }
0x1f58   :  { %4406 = vmatprep.subr.bf16.mxu1 %v4852_v44 }
0x1f60   :  { %v4679_v46 = vpop.eup %4678 }
0x1f61   :  { %v2848_v21 = vsel %vm260_vm0, %v4679_v46, 0.0 }
0x1f62   :  { %2849 = vadd.xlane.f32.xlu0 %v2848_v21 }
0x1f64   :  { %v4681_v38 = vpop.eup %4680 }
0x1f65   :  { %v2851_v35 = vsel %vm260_vm0, %v4681_v38, 0.0 }
0x1f66   :  { %2852 = vadd.xlane.f32.xlu0 %v2851_v35 }
0x1f7c   :  { %2957 = vrot.lane.b32.xlu0 %v5466_v43, %s4855_s13 }
0x1f80   :  { %v2776_v52 = vpop.f32.mrf.mxu1 }
0x1f81   :  { %v5616_v40 = vadd.f32 %v2776_v52, %v5554_v20  ;;  %v3081_v20 = vpop.permute.xlu1 %3080 }
0x1f82   :  { %v4386_v41 = vpop.f32.mrf.mxu1 }
0x1f84   :  { %v2779_v49 = vpop.f32.mrf.mxu1 }
0x1f85   :  { %v5619_v39 = vadd.f32 %v2779_v49, %v5556_v60  ;;  %v3086_v60 = vsel %vm462_vm3, %v3081_v20, 0  ;;  %v3079_v57 = vpop.permute.xlu1 %3078 }
0x1f86   :  { %v4387_v47 = vpop.f32.mrf.mxu1 }
0x1feb   :  { %v2850_v16 = vpop.xlane.xlu0 %2849 }
0x1fec   :  { %4682 = vrcp.f32 %v2850_v16 }
0x1fef   :  { %v2853_v11 = vpop.xlane.xlu0 %2852 }
0x1ff0   :  { %4684 = vrcp.f32 %v2853_v11 }
0x1ff3   :  { %v2958_v37 = vpop.permute.xlu0 %2957 }
0x1ff4   :  { %v2963_v54 = vsel %vm462_vm3, %v2958_v37, 0 }
0x1ff9   :  { %v4683_v24 = vpop.eup %4682 }
0x1ffa   :  { %v2856_v19 = vmul.f32 %v4683_v24, %v4679_v46 }
0x1ffd   :  { %v4685_v13 = vpop.eup %4684 }
0x1ffe   :  { %v2857_v53 = vmul.f32 %v4685_v13, %v4681_v38 }
0x2000   :  { %v2858_v51 = vpack.c.bf16 %v2857_v53, %v2856_v19 }
0x2002   :  { %4397 = vmatmul.mubr.msk.bf16.vlgmr.msra.gmra.mxu1 %vm260_vm0, %v2858_v51 }
0x2003   :  { %4407 = vmatpush3.bf16.xpose.msra.mxu1 %v2963_v54  ;;  %4408 = vmatprep.mubr.msk.bf16.mxu1 %vm4853_vm2, %v4852_v44 }
0x2004   :  { %4418 = vmatprep.subr.bf16.mxu1 %v4852_v44 }
0x200a   :  { %4409 = vmatmul.mubr.msk.bf16.vlgmr.msra.gmra.mxu1 %vm462_vm3, %v5468_v45 }
0x200b   :  { %4419 = vmatpush3.bf16.xpose.msra.mxu1 %v3086_v60  ;;  %4420 = vmatprep.mubr.msk.bf16.mxu1 %vm4853_vm2, %v4852_v44 }
0x200c   :  { %4430 = vmatprep.subr.bf16.mxu1 %v4852_v44 }
0x2012   :  { %4421 = vmatmul.mubr.msk.bf16.vlgmr.msra.gmra.mxu1 %vm462_vm3, %v3079_v57 }
0x2013   :  { %4431 = vmatpush3.bf16.msra.mxu1 %v5539_v42  ;;  %4432 = vmatprep.mubr.msk.bf16.mxu1 %vm4853_vm2, %v4852_v44 }
0x2014   :  { %4442 = vmatprep.subr.bf16.mxu1 %v4852_v44 }
0x20c2   :  { %v2899_v48 = vpop.f32.mrf.mxu1 }
0x20c4   :  { %v4398_v3 = vpop.f32.mrf.mxu1 }
0x20c6   :  { %v2902_v0 = vpop.f32.mrf.mxu1 }
0x20c7   :  { %v2906_v5 = vpack.c.bf16 %v2902_v0, %v2899_v48 }
0x20c8   :  { %v4399_v6 = vpop.f32.mrf.mxu1 }
0x20c9   :  { %4403 = vmatmul.mubr.msk.bf16.vlgmr.msra.gmra.mxu0 %vm462_vm3, %v2906_v5 }
0x20ca   :  { %v2999_v42 = vpop.f32.mrf.mxu1  ;;  %4414 = vmatprep.mubr.msk.bf16.mxu0 %vm4853_vm2, %v4852_v44 }
0x20cb   :  { %v3000_v7 = vadd.f32 %v2999_v42, %v5492_v29 }
0x20cc   :  { %v4410_v9 = vpop.f32.mrf.mxu1 }
0x20cd   :  { %v3006_v12 = vsel %vm260_vm0, %v3000_v7, -inf }
0x20ce   :  { %3007 = vmax.xlane.f32.xlu0 %v3006_v12  ;;  %v3002_v14 = vpop.f32.mrf.mxu1 }
0x20cf   :  { %v3003_v15 = vadd.f32 %v3002_v14, %v5496_v50 }
0x20d0   :  { %v4411_v18 = vpop.f32.mrf.mxu1 }
0x20d1   :  { %v3009_v1 = vsel %vm260_vm0, %v3003_v15, -inf }
0x20d2   :  { %3010 = vmax.xlane.f32.xlu1 %v3009_v1  ;;  %v3122_v4 = vpop.f32.mrf.mxu1 }
0x20d3   :  { %v3123_v22 = vadd.f32 %v3122_v4, %v5501_v55 }
0x20d4   :  { %v4422_v23 = vpop.f32.mrf.mxu1 }
0x20d5   :  { %v3129_v25 = vsel %vm260_vm0, %v3123_v22, -inf }
0x20d6   :  { %3130 = vmax.xlane.f32.xlu0 %v3129_v25  ;;  %v3125_v27 = vpop.f32.mrf.mxu1 }
0x20d7   :  { %v3126_v29 = vadd.f32 %v3125_v27, %v5506_v63 }
0x20d8   :  { %v4423_v28 = vpop.f32.mrf.mxu1 }
0x20d9   :  { %v3132_v32 = vsel %vm260_vm0, %v3126_v29, -inf }
0x20da   :  { %3133 = vmax.xlane.f32.xlu0 %v3132_v32 }
0x2157   :  { %v3008_v33 = vpop.xlane.xlu0 %3007 }
0x2158   :  { %v3012_v50 = vsub.f32 %v3000_v7, %v3008_v33 }
0x215a   :  { %v3014_v2 = vmul.f32 1.442695, %v3012_v50 }
0x215b   :  { %v3011_v30 = vpop.xlane.xlu1 %3010 }
0x215c   :  { %4686 = vpow2.f32 %v3014_v2  ;;  %v3013_v46 = vsub.f32 %v3003_v15, %v3011_v30 }
0x215e   :  { %v3016_v21 = vmul.f32 1.442695, %v3013_v46 }
0x215f   :  { %v3131_v38 = vpop.xlane.xlu0 %3130 }
0x2160   :  { %4688 = vpow2.f32 %v3016_v21  ;;  %v3135_v55 = vsub.f32 %v3123_v22, %v3131_v38 }
0x2162   :  { %v3137_v35 = vmul.f32 1.442695, %v3135_v55 }
0x2163   :  { %v3134_v52 = vpop.xlane.xlu0 %3133 }
0x2164   :  { %4690 = vpow2.f32 %v3137_v35  ;;  %v3136_v41 = vsub.f32 %v3126_v29, %v3134_v52 }
0x2166   :  { %v3139_v49 = vmul.f32 1.442695, %v3136_v41 }
0x2168   :  { %4692 = vpow2.f32 %v3139_v49 }
0x2169   :  { %v4687_v63 = vpop.eup %4686 }
0x216a   :  { %v3018_v47 = vsel %vm260_vm0, %v4687_v63, 0.0 }
0x216b   :  { %3019 = vadd.xlane.f32.xlu1 %v3018_v47 }
0x216d   :  { %v4689_v16 = vpop.eup %4688 }
0x216e   :  { %v3021_v11 = vsel %vm260_vm0, %v4689_v16, 0.0 }
0x216f   :  { %3022 = vadd.xlane.f32.xlu0 %v3021_v11 }
0x2171   :  { %v4691_v24 = vpop.eup %4690 }
0x2172   :  { %v3141_v13 = vsel %vm260_vm0, %v4691_v24, 0.0 }
0x2173   :  { %3142 = vadd.xlane.f32.xlu1 %v3141_v13 }
0x2175   :  { %v4693_v19 = vpop.eup %4692 }
0x2176   :  { %v3144_v53 = vsel %vm260_vm0, %v4693_v19, 0.0 }
0x2177   :  { %3145 = vadd.xlane.f32.xlu0 %v3144_v53 }
0x2184   :  { %3029 = vrot.lane.b32.xlu1 %v5466_v43, %s4862_s0 }
0x2188   :  { %3290 = vrot.lane.b32.xlu1 %v5466_v43, %s4859_s8 }
0x2189   :  { %v2947_v37 = vpop.f32.mrf.mxu0 }
0x218a   :  { %v5663_v51 = vadd.f32 %v2947_v37, %v5616_v40 }
0x218b   :  { %v4404_v54 = vpop.f32.mrf.mxu0 }
0x218c   :  { %3288 = vrot.lane.b32.xlu1 %v5468_v45, %s4857_s21 }
0x218d   :  { %v2950_v20 = vpop.f32.mrf.mxu0  ;;  %3152 = vrot.lane.b32.xlu0 %v5466_v43, %s4861_s26 }
0x218e   :  { %v5670_v60 = vadd.f32 %v2950_v20, %v5619_v39 }
0x218f   :  { %v4405_v57 = vpop.f32.mrf.mxu0 }
0x21f4   :  { %v3020_v58 = vpop.xlane.xlu1 %3019 }
0x21f5   :  { %4694 = vrcp.f32 %v3020_v58 }
0x21f8   :  { %v3023_v48 = vpop.xlane.xlu0 %3022 }
0x21f9   :  { %4696 = vrcp.f32 %v3023_v48 }
0x21fc   :  { %v3143_v3 = vpop.xlane.xlu1 %3142 }
0x21fd   :  { %4698 = vrcp.f32 %v3143_v3 }
0x2200   :  { %v3030_v40 = vpop.permute.xlu1 %3029  ;;  %v3146_v0 = vpop.xlane.xlu0 %3145 }
0x2201   :  { %4700 = vrcp.f32 %v3146_v0  ;;  %4413 = vmatpush3.bf16.msra.mxu0 %v3030_v40 }
0x2202   :  { %4424 = vmatprep.subr.bf16.mxu0 %v4852_v44  ;;  %v4695_v5 = vpop.eup %4694 }
0x2203   :  { %v3026_v42 = vmul.f32 %v4695_v5, %v4687_v63 }
0x2204   :  { %v3153_v39 = vpop.permute.xlu0 %3152  ;;  %v3291_v32 = vpop.permute.xlu1 %3290 }
0x2205   :  { %v3296_v2 = vsel %vm462_vm3, %v3291_v32, 0 }
0x2206   :  { %v4697_v6 = vpop.eup %4696 }
0x2207   :  { %v3027_v7 = vmul.f32 %v4697_v6, %v4689_v16 }
0x2208   :  { %v3289_v30 = vpop.permute.xlu1 %3288 }
0x2209   :  { %v3028_v9 = vpack.c.bf16 %v3027_v7, %v3026_v42 }
0x220a   :  { %v4699_v12 = vpop.eup %4698 }
0x220b   :  { %4415 = vmatmul.mubr.msk.bf16.vlgmr.msra.gmra.mxu0 %vm260_vm0, %v3028_v9  ;;  %v3149_v15 = vmul.f32 %v4699_v12, %v4691_v24 }
0x220c   :  { %4425 = vmatpush3.bf16.msra.mxu0 %v3153_v39  ;;  %4426 = vmatprep.mubr.msk.bf16.mxu0 %vm4853_vm2, %v4852_v44 }
0x220d   :  { %4436 = vmatprep.subr.bf16.mxu0 %v4852_v44 }
0x220e   :  { %v4701_v14 = vpop.eup %4700 }
0x220f   :  { %v3150_v18 = vmul.f32 %v4701_v14, %v4693_v19 }
0x2211   :  { %v3151_v1 = vpack.c.bf16 %v3150_v18, %v3149_v15 }
0x2213   :  { %4427 = vmatmul.mubr.msk.bf16.vlgmr.msra.gmra.mxu0 %vm260_vm0, %v3151_v1 }
0x2214   :  { %4437 = vmatpush3.bf16.msra.mxu0 %v5533_v31  ;;  %4438 = vmatprep.mubr.msk.bf16.mxu0 %vm4853_vm2, %v4852_v44 }
0x2215   :  { %4448 = vmatprep.subr.bf16.mxu0 %v4852_v44 }
0x22cb   :  { %v3069_v4 = vpop.f32.mrf.mxu0 }
0x22cd   :  { %v4416_v22 = vpop.f32.mrf.mxu0 }
0x22cf   :  { %v3072_v23 = vpop.f32.mrf.mxu0 }
0x22d0   :  { %v3076_v25 = vpack.c.bf16 %v3072_v23, %v3069_v4 }
0x22d1   :  { %v4417_v27 = vpop.f32.mrf.mxu0 }
0x22d2   :  { %4439 = vmatmul.mubr.msk.bf16.vlgmr.msra.gmra.mxu0 %vm462_vm3, %v3076_v25 }
0x22d3   :  { %v3192_v29 = vpop.f32.mrf.mxu0  ;;  %4450 = vmatprep.mubr.msk.bf16.mxu0 %vm4853_vm2, %v4852_v44 }
0x22d5   :  { %v4428_v28 = vpop.f32.mrf.mxu0 }
0x22d7   :  { %v3195_v33 = vpop.f32.mrf.mxu0 }
0x22d8   :  { %v3199_v31 = vpack.c.bf16 %v3195_v33, %v3192_v29 }
0x22d9   :  { %v4429_v50 = vpop.f32.mrf.mxu0 }
0x22da   :  { %4433 = vmatmul.mubr.msk.bf16.vlgmr.msra.gmra.mxu1 %vm462_vm3, %v3199_v31 }
0x22db   :  { %4443 = vmatpush3.bf16.xpose.msra.mxu1 %v3296_v2  ;;  %4444 = vmatprep.mubr.msk.bf16.mxu1 %vm4853_vm2, %v4852_v44 }
0x22dc   :  { %4454 = vmatprep.subr.bf16.mxu1 %v4852_v44 }
0x22e2   :  { %4445 = vmatmul.mubr.msk.bf16.vlgmr.msra.gmra.mxu1 %vm462_vm3, %v3289_v30 }
0x22e3   :  { %4455 = vmatpush3.bf16.msra.mxu1 %v5587_v62  ;;  %4456 = vmatprep.mubr.msk.bf16.mxu1 %vm4853_vm2, %v4852_v44 }
0x22e4   :  { %4466 = vmatprep.subr.bf16.mxu1 %v4852_v44 }
0x2392   :  { %v3281_v46 = vpop.f32.mrf.mxu0 }
0x2394   :  { %v4440_v21 = vpop.f32.mrf.mxu0 }
0x2396   :  { %v3284_v38 = vpop.f32.mrf.mxu0 }
0x2398   :  { %v4441_v55 = vpop.f32.mrf.mxu0 }
0x239a   :  { %v3237_v35 = vpop.f32.mrf.mxu1 }
0x239b   :  { %v5695_v52 = vadd.f32 %v3281_v46, %v3237_v35 }
0x239c   :  { %v4434_v41 = vpop.f32.mrf.mxu1 }
0x239e   :  { %v3240_v49 = vpop.f32.mrf.mxu1 }
0x239f   :  { %v5697_v63 = vadd.f32 %v3284_v38, %v3240_v49 }
0x23a0   :  { %v4435_v47 = vpop.f32.mrf.mxu1 }
0x23a2   :  { %v3332_v16 = vpop.f32.mrf.mxu1 }
0x23a3   :  { %v3333_v62 = vadd.f32 %v3332_v16, %v5559_v8 }
0x23a4   :  { %v4446_v11 = vpop.f32.mrf.mxu1 }
0x23a5   :  { %v3339_v24 = vsel %vm260_vm0, %v3333_v62, -inf }
0x23a6   :  { %3340 = vmax.xlane.f32.xlu0 %v3339_v24  ;;  %v3335_v13 = vpop.f32.mrf.mxu1 }
0x23a7   :  { %v3336_v19 = vadd.f32 %v3335_v13, %v5563_v26 }
0x23a8   :  { %v4447_v53 = vpop.f32.mrf.mxu1 }
0x23a9   :  { %v3342_v37 = vsel %vm260_vm0, %v3336_v19, -inf }
0x23aa   :  { %3343 = vmax.xlane.f32.xlu1 %v3342_v37 }
0x23bb   :  { %3362 = vrot.lane.b32.xlu1 %v5466_v43, %s4863_s1 }
0x23bf   :  { %3456 = vrot.lane.b32.xlu1 %v5468_v45, %s4858_s25 }
0x242f   :  { %v3341_v54 = vpop.xlane.xlu0 %3340 }
0x2430   :  { %v3345_v20 = vsub.f32 %v3333_v62, %v3341_v54 }
0x2432   :  { %v3347_v8 = vmul.f32 1.442695, %v3345_v20 }
0x2433   :  { %v3344_v57 = vpop.xlane.xlu1 %3343 }
0x2434   :  { %4702 = vpow2.f32 %v3347_v8  ;;  %v3346_v58 = vsub.f32 %v3336_v19, %v3344_v57 }
0x2436   :  { %v3349_v48 = vmul.f32 1.442695, %v3346_v58 }
0x2437   :  { %v3363_v3 = vpop.permute.xlu1 %3362 }
0x2438   :  { %4704 = vpow2.f32 %v3349_v48  ;;  %4449 = vmatpush3.bf16.msra.mxu0 %v3363_v3 }
0x2439   :  { %4460 = vmatprep.subr.bf16.mxu0 %v4852_v44 }
0x243b   :  { %v3457_v18 = vpop.permute.xlu1 %3456 }
0x2441   :  { %v4703_v26 = vpop.eup %4702 }
0x2442   :  { %v3351_v40 = vsel %vm260_vm0, %v4703_v26, 0.0 }
0x2443   :  { %3352 = vadd.xlane.f32.xlu0 %v3351_v40 }
0x2445   :  { %v4705_v0 = vpop.eup %4704 }
0x2446   :  { %v3354_v5 = vsel %vm260_vm0, %v4705_v0, 0.0 }
0x2447   :  { %3355 = vadd.xlane.f32.xlu0 %v3354_v5 }
0x245d   :  { %3458 = vrot.lane.b32.xlu0 %v5466_v43, %s4860_s14 }
0x24cc   :  { %v3353_v45 = vpop.xlane.xlu0 %3352 }
0x24cd   :  { %4706 = vrcp.f32 %v3353_v45 }
0x24d0   :  { %v3356_v6 = vpop.xlane.xlu0 %3355 }
0x24d1   :  { %4708 = vrcp.f32 %v3356_v6 }
0x24d4   :  { %v3459_v12 = vpop.permute.xlu0 %3458 }
0x24d5   :  { %v3464_v15 = vsel %vm462_vm3, %v3459_v12, 0 }
0x24da   :  { %v4707_v42 = vpop.eup %4706 }
0x24db   :  { %v3359_v9 = vmul.f32 %v4707_v42, %v4703_v26 }
0x24de   :  { %v4709_v7 = vpop.eup %4708 }
0x24df   :  { %v3360_v39 = vmul.f32 %v4709_v7, %v4705_v0 }
0x24e1   :  { %v3361_v14 = vpack.c.bf16 %v3360_v39, %v3359_v9 }
0x24e3   :  { %4451 = vmatmul.mubr.msk.bf16.vlgmr.msra.gmra.mxu0 %vm260_vm0, %v3361_v14 }
0x24e4   :  { %4461 = vmatpush3.bf16.xpose.msra.mxu0 %v3464_v15  ;;  %4462 = vmatprep.mubr.msk.bf16.mxu0 %vm4853_vm2, %v4852_v44 }
0x24e5   :  { %4472 = vmatprep.subr.bf16.mxu0 %v4852_v44 }
0x24eb   :  { %4463 = vmatmul.mubr.msk.bf16.vlgmr.msra.gmra.mxu0 %vm462_vm3, %v3457_v18 }
0x24ec   :  { %4473 = vmatpush3.bf16.msra.mxu0 %v5639_v61  ;;  %4474 = vmatprep.mubr.msk.bf16.mxu0 %vm4853_vm2, %v4852_v44 }
0x25a3   :  { %v3402_v1 = vpop.f32.mrf.mxu0 }
0x25a5   :  { %v4452_v4 = vpop.f32.mrf.mxu0 }
0x25a7   :  { %v3405_v22 = vpop.f32.mrf.mxu0 }
0x25a8   :  { %v3409_v23 = vpack.c.bf16 %v3405_v22, %v3402_v1 }
0x25a9   :  { %v4453_v25 = vpop.f32.mrf.mxu0 }
0x25aa   :  { %4457 = vmatmul.mubr.msk.bf16.vlgmr.msra.gmra.mxu1 %vm462_vm3, %v3409_v23 }
0x25ab   :  { %v3500_v27 = vpop.f32.mrf.mxu0  ;;  %4468 = vmatprep.mubr.msk.bf16.mxu1 %vm4853_vm2, %v4852_v44 }
0x25ac   :  { %v3501_v29 = vadd.f32 %v3500_v27, %v5592_v10  ;;  %v4009_v10 = vld [vmem:[#allocation4] ss:$0 sm:$0xff] }
0x25ad   :  { %v4464_v28 = vpop.f32.mrf.mxu0  ;;  %v3630_v35 = vadd.f32 %v4009_v10, %v5663_v51  ;;  %v3631_v47 = vadd.f32 %v4009_v10, %v5670_v60 }
0x25ae   :  { %v3507_v32 = vsel %vm260_vm0, %v3501_v29, -inf }
0x25af   :  { %3508 = vmax.xlane.f32.xlu1 %v3507_v32  ;;  %v3503_v61 = vpop.f32.mrf.mxu0  ;;  %v5731_v49 = vadd.f32 %v3630_v35, %v5433_v34  ;;  %v5736_v62 = vadd.f32 %v3631_v47, %v5439_v59 }
0x25b0   :  { %v3504_v33 = vadd.f32 %v3503_v61, %v5599_v56 }
0x25b1   :  { %v4465_v31 = vpop.f32.mrf.mxu0  ;;  %v3638_v11 = vsel %vm182_vm1, %v5731_v49, 0.0  ;;  %v3641_v51 = vsel %vm182_vm1, %v5736_v62, 0.0 }
0x25b2   :  { %v3510_v50 = vsel %vm260_vm0, %v3504_v33, -inf }
0x25b3   :  { %3511 = vmax.xlane.f32.xlu0 %v3510_v50 }
0x2638   :  { %v3509_v2 = vpop.xlane.xlu1 %3508 }
0x2639   :  { %v3513_v30 = vsub.f32 %v3501_v29, %v3509_v2 }
0x263b   :  { %v3515_v46 = vmul.f32 1.442695, %v3513_v30 }
0x263c   :  { %v3512_v21 = vpop.xlane.xlu0 %3511 }
0x263d   :  { %4710 = vpow2.f32 %v3515_v46  ;;  %v3514_v38 = vsub.f32 %v3504_v33, %v3512_v21 }
0x263f   :  { %v3517_v44 = vmul.f32 1.442695, %v3514_v38 }
0x2641   :  { %4712 = vpow2.f32 %v3517_v44 }
0x264a   :  { %v4711_v55 = vpop.eup %4710 }
0x264b   :  { %v3519_v41 = vsel %vm260_vm0, %v4711_v55, 0.0 }
0x264c   :  { %3520 = vadd.xlane.f32.xlu0 %v3519_v41 }
0x264e   :  { %v4713_v56 = vpop.eup %4712 }
0x264f   :  { %v3522_v16 = vsel %vm260_vm0, %v4713_v56, 0.0 }
0x2650   :  { %3523 = vadd.xlane.f32.xlu1 %v3522_v16 }
0x2654   :  { %3639 = vadd.xlane.f32.xlu1 %v3638_v11 }
0x2658   :  { %3642 = vadd.xlane.f32.xlu1 %v3641_v51  ;;  %v4730_v51 = vld [vmem:[%s5813_s24] ss:$0 sm:$0xff] }
0x2662   :  { %3530 = vrot.lane.b32.xlu0 %v5466_v43, %s4864_s2 }
0x266a   :  { %v3447_v34 = vpop.f32.mrf.mxu1 }
0x266b   :  { %v3454_v60 = vadd.f32 %v3447_v34, %v5695_v52 }
0x266c   :  { %v4458_v24 = vpop.f32.mrf.mxu1 }
0x266d   :  { %v4731_v24 = vld [vmem:[%s5814_s5] ss:$0 sm:$0xff] }
0x266e   :  { %v3450_v13 = vpop.f32.mrf.mxu1 }
0x266f   :  { %v3455_v19 = vadd.f32 %v3450_v13, %v5697_v63 }
0x2670   :  { %v4459_v59 = vpop.f32.mrf.mxu1 }
0x26d5   :  { %v3521_v53 = vpop.xlane.xlu0 %3520 }
0x26d6   :  { %4714 = vrcp.f32 %v3521_v53  ;;  %v4556_v53 = vld [vmem:[%s5824_s7 + $0x8] sm:$0xff]  }
0x26d9   :  { %v3524_v37 = vpop.xlane.xlu1 %3523  ;;  %v3531_v54 = vpop.permute.xlu0 %3530 }
0x26da   :  { %4716 = vrcp.f32 %v3524_v37  ;;  %4467 = vmatpush3.bf16.msra.mxu1 %v3531_v54  ;;  %v4557_v37 = vld [vmem:[%s5824_s7] sm:$0xff]   ;;  %v4558_v54 = vld [vmem:[%s5013_s20 + $0x18] sm:$0xff]  }
0x26db   :  { %4478 = vmatprep.subr.bf16.mxu1 %v4556_v53  ;;  %4486 = vmatprep.subr.bf16.mxu0 %v4558_v54 }
0x26dd   :  { %v3640_v63 = vpop.xlane.xlu1 %3639 }
0x26de   :  { %v3650_v6 = vmul.f32 0.03125, %v3640_v63 }
0x26e0   :  { %v3654_v15 = vsub.f32 %v5731_v49, %v3650_v6 }
0x26e1   :  { %v3643_v7 = vpop.xlane.xlu1 %3642 }
0x26e2   :  { %v3651_v18 = vmul.f32 0.03125, %v3643_v7  ;;  %v4560_v7 = vld [vmem:[%s5013_s20 + $0x8] sm:$0xff]  }
0x26e3   :  { %v4715_v20 = vpop.eup %4714 }
0x26e4   :  { %v3527_v57 = vmul.f32 %v4715_v20, %v4711_v55  ;;  %v3655_v23 = vsub.f32 %v5736_v62, %v3651_v18 }
0x26e6   :  { %v3659_v29 = vmul.f32 %v3655_v23, %v3655_v23 }
0x26e7   :  { %v4717_v8 = vpop.eup %4716 }
0x26e8   :  { %v3528_v58 = vmul.f32 %v4717_v8, %v4713_v56  ;;  %v3665_v28 = vsel %vm182_vm1, %v3659_v29, 0.0 }
0x26ea   :  { %v3529_v48 = vpack.c.bf16 %v3528_v58, %v3527_v57 }
0x26ec   :  { %4469 = vmatmul.mubr.msk.bf16.vlgmr.msra.gmra.mxu1 %vm260_vm0, %v3529_v48 }
0x26ed   :  { %4479 = vmatpush3.bf16.msra.mxu1 %v4556_v53 }
0x26ee   :  { %4480 = vmatprep.subr.bf16.mxu1 %v4557_v37 }
0x26f1   :  { %4481 = vmatpush3.bf16.msra.mxu1 %v4557_v37 }
0x27ac   :  { %v3570_v43 = vpop.f32.mrf.mxu1 }
0x27ae   :  { %v4470_v52 = vpop.f32.mrf.mxu1 }
0x27b0   :  { %v3573_v3 = vpop.f32.mrf.mxu1 }
0x27b1   :  { %v3577_v26 = vpack.c.bf16 %v3573_v3, %v3570_v43 }
0x27b2   :  { %v4471_v40 = vpop.f32.mrf.mxu1 }
0x27b3   :  { %4475 = vmatmul.mubr.msk.bf16.vlgmr.msra.gmra.mxu0 %vm462_vm3, %v3577_v26 }
0x27b4   :  { %4487 = vmatpush3.bf16.msra.mxu0 %v4558_v54 }
0x2873   :  { %v3615_v0 = vpop.f32.mrf.mxu0 }
0x2874   :  { %v3622_v5 = vadd.f32 %v3615_v0, %v3454_v60 }
0x2875   :  { %v4476_v45 = vpop.f32.mrf.mxu0 }
0x2876   :  { %v3632_v42 = vadd.f32 %v4009_v10, %v3622_v5 }
0x2877   :  { %v3618_v9 = vpop.f32.mrf.mxu0 }
0x2878   :  { %v5749_v39 = vadd.f32 %v3632_v42, %v5430_v17  ;;  %v3623_v12 = vadd.f32 %v3618_v9, %v3455_v19  ;;  %v3658_v17 = vmul.f32 %v3654_v15, %v3654_v15  ;;  %v4559_v42 = vld [vmem:[%s5013_s20 + $0x10] sm:$0xff]   ;;  %v4561_v9 = vld [vmem:[%s5013_s20] sm:$0xff]  }
0x2879   :  { %v4477_v14 = vpop.f32.mrf.mxu0  ;;  %4488 = vmatprep.subr.bf16.mxu0 %v4559_v42 }
0x287a   :  { %v3633_v1 = vadd.f32 %v4009_v10, %v3623_v12  ;;  %v3644_v4 = vsel %vm182_vm1, %v5749_v39, 0.0  ;;  %v3662_v27 = vsel %vm182_vm1, %v3658_v17, 0.0  ;;  %4489 = vmatpush3.bf16.msra.mxu0 %v4559_v42 }
0x287b   :  { %3645 = vadd.xlane.f32.xlu1 %v3644_v4  ;;  %4490 = vmatprep.subr.bf16.mxu0 %v4560_v7 }
0x287c   :  { %v5755_v22 = vadd.f32 %v3633_v1, %v5443_v36 }
0x287e   :  { %v3647_v25 = vsel %vm182_vm1, %v5755_v22, 0.0  ;;  %4491 = vmatpush3.bf16.msra.mxu0 %v4560_v7 }
0x287f   :  { %3648 = vadd.xlane.f32.xlu1 %v3647_v25  ;;  %4492 = vmatprep.subr.bf16.mxu0 %v4561_v9 }
0x2882   :  { %4493 = vmatpush3.bf16.msra.mxu0 %v4561_v9 }
0x2883   :  { %3663 = vadd.xlane.f32.xlu1 %v3662_v27 }
0x2887   :  { %3666 = vadd.xlane.f32.xlu1 %v3665_v28 }
0x2904   :  { %v3646_v32 = vpop.xlane.xlu1 %3645 }
0x2905   :  { %v3652_v61 = vmul.f32 0.03125, %v3646_v32 }
0x2907   :  { %v3656_v33 = vsub.f32 %v5749_v39, %v3652_v61 }
0x2908   :  { %v3649_v36 = vpop.xlane.xlu1 %3648 }
0x2909   :  { %v3653_v31 = vmul.f32 0.03125, %v3649_v36  ;;  %v3660_v50 = vmul.f32 %v3656_v33, %v3656_v33 }
0x290b   :  { %v3657_v2 = vsub.f32 %v5755_v22, %v3653_v31  ;;  %v3668_v30 = vsel %vm182_vm1, %v3660_v50, 0.0  ;;  %v4021_v31 = vld [vmem:[#allocation7] ss:$0 sm:$0xff] }
0x290c   :  { %3669 = vadd.xlane.f32.xlu0 %v3668_v30  ;;  %v3664_v46 = vpop.xlane.xlu1 %3663 }
0x290d   :  { %v3674_v21 = vmul.f32 0.03125, %v3664_v46  ;;  %v3661_v38 = vmul.f32 %v3657_v2, %v3657_v2 }
0x290f   :  { %v3678_v44 = vadd.f32 1e-05, %v3674_v21  ;;  %v3671_v10 = vsel %vm182_vm1, %v3661_v38, 0.0 }
0x2910   :  { %3672 = vadd.xlane.f32.xlu1 %v3671_v10  ;;  %v3667_v55 = vpop.xlane.xlu1 %3666 }
0x2911   :  { %4718 = vrsqrt.f32 %v3678_v44  ;;  %v3675_v35 = vmul.f32 0.03125, %v3667_v55 }
0x2913   :  { %v3679_v41 = vadd.f32 1e-05, %v3675_v35 }
0x2915   :  { %4720 = vrsqrt.f32 %v3679_v41 }
0x291e   :  { %v4719_v56 = vpop.eup %4718 }
0x291f   :  { %v3686_v47 = vmul.f32 %v4719_v56, %v3654_v15  ;;  %v4010_v15 = vld [vmem:[#allocation6] ss:$0 sm:$0xff] }
0x2921   :  { %v3690_v34 = vmul.f32 %v4730_v51, %v3686_v47 }
0x2922   :  { %v4721_v16 = vpop.eup %4720 }
0x2923   :  { %v3687_v11 = vmul.f32 %v4721_v16, %v3655_v23  ;;  %v3694_v13 = vadd.f32 %v4731_v24, %v3690_v34 }
0x2925   :  { %v3691_v60 = vmul.f32 %v4730_v51, %v3687_v11 }
0x2927   :  { %v3695_v19 = vadd.f32 %v4731_v24, %v3691_v60 }
0x2929   :  { %v3698_v59 = vpack.c.bf16 %v3695_v19, %v3694_v13 }
0x292b   :  { %4482 = vmatprep.mubr.msk.bf16.mxu1 %vm182_vm1, %v3698_v59 }
0x2995   :  { %v3670_v20 = vpop.xlane.xlu0 %3669 }
0x2996   :  { %v3676_v8 = vmul.f32 0.03125, %v3670_v20 }
0x2998   :  { %v3680_v57 = vadd.f32 1e-05, %v3676_v8 }
0x2999   :  { %v3673_v58 = vpop.xlane.xlu1 %3672 }
0x299a   :  { %4722 = vrsqrt.f32 %v3680_v57  ;;  %v3677_v48 = vmul.f32 0.03125, %v3673_v58 }
0x299c   :  { %v3681_v43 = vadd.f32 1e-05, %v3677_v48 }
0x299e   :  { %4724 = vrsqrt.f32 %v3681_v43 }
0x29a7   :  { %v4723_v52 = vpop.eup %4722 }
0x29a8   :  { %v3688_v3 = vmul.f32 %v4723_v52, %v3656_v33 }
0x29aa   :  { %v3692_v40 = vmul.f32 %v4730_v51, %v3688_v3 }
0x29ab   :  { %v4725_v26 = vpop.eup %4724 }
0x29ac   :  { %v3689_v63 = vmul.f32 %v4725_v26, %v3657_v2  ;;  %v3696_v5 = vadd.f32 %v4731_v24, %v3692_v40 }
0x29ae   :  { %v3693_v0 = vmul.f32 %v4730_v51, %v3689_v63 }
0x29b0   :  { %v3697_v45 = vadd.f32 %v4731_v24, %v3693_v0 }
0x29b2   :  { %v3699_v6 = vpack.c.bf16 %v3697_v45, %v3696_v5 }
0x29b4   :  { %4483 = vmatmul.mubr.msk.bf16.vlgmr.msra.gmra.mxu1 %vm182_vm1, %v3699_v6 }
0x2a74   :  { %v4484_v12 = vpop.f32.mrf.mxu1 }
0x2a75   :  { %v3772_v23 = vadd.f32 %v4484_v12, %v4010_v15 }
0x2a76   :  { %v3763_v14 = vpop.f32.mrf.mxu1 }
0x2a77   :  { %v3764_v1 = vadd.f32 %v4010_v15, %v3763_v14  ;;  %v3780_v32 = vmax.f32 %v3772_v23, 0.0 }
0x2a78   :  { %v4485_v18 = vpop.f32.mrf.mxu1 }
0x2a79   :  { %v3775_v4 = vadd.f32 %v4485_v18, %v4010_v15  ;;  %v3778_v29 = vmax.f32 %v3764_v1, 0.0 }
0x2a7a   :  { %v3766_v25 = vpop.f32.mrf.mxu1 }
0x2a7b   :  { %v3767_v17 = vadd.f32 %v4010_v15, %v3766_v25  ;;  %v3781_v27 = vmax.f32 %v3775_v4, 0.0 }
0x2a7d   :  { %v3779_v28 = vmax.f32 %v3767_v17, 0.0  ;;  %v3783_v33 = vpack.c.bf16 %v3781_v27, %v3780_v32 }
0x2a7f   :  { %v3782_v61 = vpack.c.bf16 %v3779_v28, %v3778_v29 }
0x2a81   :  { %4494 = vmatprep.mubr.msk.bf16.mxu0 %vm2030_vm5, %v3782_v61 }
0x2a82   :  { %4495 = vmatmul.mubr.msk.bf16.vlgmr.msra.gmra.mxu0 %vm2030_vm5, %v3783_v33 }
0x2b42   :  { %v4496_v36 = vpop.f32.mrf.mxu0 }
0x2b43   :  { %v3873_v50 = vadd.f32 %v4496_v36, %v5749_v39 }
0x2b44   :  { %v3856_v2 = vpop.f32.mrf.mxu0 }
0x2b45   :  { %v3884_v30 = vadd.f32 %v4021_v31, %v3873_v50  ;;  %v3871_v46 = vadd.f32 %v3856_v2, %v5731_v49 }
0x2b46   :  { %v4497_v21 = vpop.f32.mrf.mxu0 }
0x2b47   :  { %3888 = vst.msk [vmem:[%s5023_s29 + $0x10] sm:$0xff] %vm182_vm1, %v3884_v30  ;;  %v3882_v38 = vadd.f32 %v4021_v31, %v3871_v46  ;;  %v3874_v44 = vadd.f32 %v4497_v21, %v5755_v22 }
0x2b48   :  { %v3859_v10 = vpop.f32.mrf.mxu0 }
0x2b49   :  { %3886 = vst.msk [vmem:[%s5023_s29] sm:$0xff] %vm182_vm1, %v3882_v38  ;;  %v3885_v55 = vadd.f32 %v4021_v31, %v3874_v44  ;;  %v3872_v35 = vadd.f32 %v3859_v10, %v5736_v62 }
0x2b4b   :  { %3889 = vst.msk [vmem:[%s5023_s29 + $0x18] sm:$0xff] %vm182_vm1, %v3885_v55  ;;  %v3883_v41 = vadd.f32 %v4021_v31, %v3872_v35 }
0x2b4d   :  { %3887 = vst.msk [vmem:[%s5023_s29 + $0x8] sm:$0xff] %vm182_vm1, %v3883_v41 }
0x2b4e   :  { %3894 = vsyncpa [#allocation3], 1 }
0x2b4f   :  { %3895 = vsyncpa [#allocation5], 1 }
0x2b50   :  { %3896 = vsyncpa [#allocation8], 1 }

</bundles_post_ra>
